<compile_context>
chip_gen: v7x
topology: tpu7x:2x2x1
jax: 0.10.0
libtpu: 0.0.40
codegen_flags: <defaults>
</compile_context>

<pallas_src>
import functools

import jax
import jax.numpy as jnp
from jax import lax
from jax.experimental import pallas as pl
from jax.experimental.pallas import tpu as pltpu


# ----------------------------------------------------------------------------
# Fused kernel (one grid step == one batch sample).
# ----------------------------------------------------------------------------
def _fused_kernel(concat, high_ref, low_ref, wt_ref, bt_ref, w1_ref, b1_ref,
                  w2_ref, b2_ref, out_ref, upbuf, pad1, pad2):
    _, H, W, Ch = high_ref.shape
    _, Hl, Wl, Cin = low_ref.shape
    Cout = out_ref.shape[-1]
    C1 = pad1.shape[-1]
    f32 = jnp.float32
    bf16 = jnp.bfloat16

    # ---- ConvTranspose2d(kernel=2, stride=2): stride == kernel, so the 4 taps
    #      are 4 independent channel matmuls. Scatter each tap into upbuf whose
    #      (Hl, 2, Wl, 2, Cout) shape turns the stride-2 interleave into plain
    #      static indexing; reading it back as (H, W, Cout) is a pure reshape.
    low = low_ref[...].reshape(Hl * Wl, Cin).astype(bf16)
    for ki in range(2):
        for kj in range(2):
            y = jnp.dot(low, wt_ref[2 * ki + kj],
                        preferred_element_type=f32) + bt_ref[...]
            upbuf[:, ki:ki + 1, :, kj:kj + 1, :] = y.reshape(Hl, 1, Wl, 1, Cout)
    up = upbuf[...].reshape(H, W, Cout)

    # ---- Build padded conv1 input: zero ONLY the 1-px border, then interior.
    pad1[0:1, :, :] = jnp.zeros((1, W + 2, C1), f32)
    pad1[H + 1:H + 2, :, :] = jnp.zeros((1, W + 2, C1), f32)
    pad1[:, 0:1, :] = jnp.zeros((H + 2, 1, C1), f32)
    pad1[:, W + 1:W + 2, :] = jnp.zeros((H + 2, 1, C1), f32)
    if concat:
        pad1[1:H + 1, 1:W + 1, 0:Ch] = high_ref[0]
        pad1[1:H + 1, 1:W + 1, Ch:Ch + Cout] = up
    else:
        pad1[1:H + 1, 1:W + 1, :] = high_ref[0] + up

    # ---- conv1 (3x3, pad=1) + bias + ReLU: 9 shifted matmuls (bf16 operands,
    #      f32 accumulation on the MXU).
    acc = jnp.zeros((H * W, Cout), f32) + b1_ref[...]
    for di in range(3):
        for dj in range(3):
            patch = pad1[di:di + H, dj:dj + W, :].reshape(H * W, C1).astype(bf16)
            acc = acc + jnp.dot(patch, w1_ref[di, dj], preferred_element_type=f32)
    h1 = jnp.maximum(acc, 0.0).reshape(H, W, Cout)

    # ---- conv2 (3x3, pad=1) + bias + ReLU.
    pad2[0:1, :, :] = jnp.zeros((1, W + 2, Cout), f32)
    pad2[H + 1:H + 2, :, :] = jnp.zeros((1, W + 2, Cout), f32)
    pad2[:, 0:1, :] = jnp.zeros((H + 2, 1, Cout), f32)
    pad2[:, W + 1:W + 2, :] = jnp.zeros((H + 2, 1, Cout), f32)
    pad2[1:H + 1, 1:W + 1, :] = h1

    acc2 = jnp.zeros((H * W, Cout), f32) + b2_ref[...]
    for di in range(3):
        for dj in range(3):
            patch = pad2[di:di + H, dj:dj + W, :].reshape(H * W, Cout).astype(bf16)
            acc2 = acc2 + jnp.dot(patch, w2_ref[di, dj], preferred_element_type=f32)
    out_ref[...] = jnp.maximum(acc2, 0.0).reshape(1, H, W, Cout)


# ----------------------------------------------------------------------------
# Wrapper
# ----------------------------------------------------------------------------
def unet_up_conv(high_nchw, low_nchw, params, concat=True):
    high = jnp.transpose(high_nchw, (0, 2, 3, 1)).astype(jnp.float32)  # NHWC
    low = jnp.transpose(low_nchw, (0, 2, 3, 1)).astype(jnp.float32)    # NHWC

    N, Hl, Wl, Cin = low.shape
    Cout = params["wt"].shape[1]
    H, W = 2 * Hl, 2 * Wl
    Ch = high.shape[-1]
    c1 = (Ch + Cout) if concat else Cout

    # ConvTranspose2d weight (Cin, Cout, 2, 2) -> (4, Cin, Cout), tap k = 2*ki+kj.
    wt_k = jnp.transpose(params["wt"], (2, 3, 0, 1)).reshape(4, Cin, Cout)
    wt_k = wt_k.astype(jnp.bfloat16)
    w1 = params["w1"].astype(jnp.bfloat16)                 # (3, 3, c1, Cout) HWIO
    w2 = params["w2"].astype(jnp.bfloat16)                 # (3, 3, Cout, Cout)
    bt = params["bt"].reshape(1, Cout).astype(jnp.float32)
    b1 = params["b1"].reshape(1, Cout).astype(jnp.float32)
    b2 = params["b2"].reshape(1, Cout).astype(jnp.float32)

    # Rough (8,128)-padded VMEM footprint -> explicit scoped-VMEM limit.
    def padded_bytes(shape, itemsize):
        lead = 1
        for d in shape[:-2]:
            lead *= d
        sub = -(-shape[-2] // 8) * 8
        lane = -(-shape[-1] // 128) * 128
        return lead * sub * lane * itemsize

    blk = (padded_bytes((1, H, W, Ch), 4) + padded_bytes((1, Hl, Wl, Cin), 4)
           + padded_bytes((1, H, W, Cout), 4))
    wgt = (padded_bytes(wt_k.shape, 2) + padded_bytes(w1.shape, 2)
           + padded_bytes(w2.shape, 2) + 3 * padded_bytes((1, Cout), 4))
    scr = (padded_bytes((Hl, 2, Wl, 2, Cout), 4)
           + padded_bytes((H + 2, W + 2, c1), 4)
           + padded_bytes((H + 2, W + 2, Cout), 4))
    vmem_limit = int(min(60 * 1024 * 1024,
                         max(16 * 1024 * 1024,
                             2 * (blk + wgt) + scr + 2 * 1024 * 1024)))

    out_nhwc = pl.pallas_call(
        functools.partial(_fused_kernel, concat),
        out_shape=jax.ShapeDtypeStruct((N, H, W, Cout), jnp.float32),
        grid=(N,),
        in_specs=[
            pl.BlockSpec((1, H, W, Ch), lambda n: (n, 0, 0, 0)),
            pl.BlockSpec((1, Hl, Wl, Cin), lambda n: (n, 0, 0, 0)),
            pl.BlockSpec((4, Cin, Cout), lambda n: (0, 0, 0)),
            pl.BlockSpec((1, Cout), lambda n: (0, 0)),
            pl.BlockSpec((3, 3, c1, Cout), lambda n: (0, 0, 0, 0)),
            pl.BlockSpec((1, Cout), lambda n: (0, 0)),
            pl.BlockSpec((3, 3, Cout, Cout), lambda n: (0, 0, 0, 0)),
            pl.BlockSpec((1, Cout), lambda n: (0, 0)),
        ],
        out_specs=pl.BlockSpec((1, H, W, Cout), lambda n: (n, 0, 0, 0)),
        scratch_shapes=[
            pltpu.VMEM((Hl, 2, Wl, 2, Cout), jnp.float32),   # tap scatter buffer
            pltpu.VMEM((H + 2, W + 2, c1), jnp.float32),     # padded conv1 input
            pltpu.VMEM((H + 2, W + 2, Cout), jnp.float32),   # padded conv2 input
        ],
        compiler_params=pltpu.CompilerParams(
            dimension_semantics=("parallel",),
            vmem_limit_bytes=vmem_limit,
        ),
    )(high, low, wt_k, bt, w1, b1, w2, b2)

    return jnp.transpose(out_nhwc, (0, 3, 1, 2))  # back to NCHW


# ----------------------------------------------------------------------------
# Deterministic parameter init (PyTorch-style uniform(-1/sqrt(fan_in), ...)).
# Conv weights stored HWIO; transpose-conv weight stored in PyTorch layout.
# ----------------------------------------------------------------------------
def init_params(key, in_channels, out_channels, concat=True):
    c1_in = in_channels if concat else out_channels
    ks = jax.random.split(key, 6)

    def u(k, shape, fan_in):
        bound = 1.0 / (fan_in ** 0.5)
        return jax.random.uniform(k, shape, jnp.float32, -bound, bound)

    return dict(
        wt=u(ks[0], (in_channels, out_channels, 2, 2), in_channels * 4),
        bt=u(ks[1], (out_channels,), in_channels * 4),
        w1=u(ks[2], (3, 3, c1_in, out_channels), c1_in * 9),
        b1=u(ks[3], (out_channels,), c1_in * 9),
        w2=u(ks[4], (3, 3, out_channels, out_channels), out_channels * 9),
        b2=u(ks[5], (out_channels,), out_channels * 9),
    )


# ----------------------------------------------------------------------------
# Pure-JAX reference with matching bf16 operand rounding (f32 accumulation).
# ----------------------------------------------------------------------------
def reference(high_nchw, low_nchw, params, concat=True):
    f32 = jnp.float32
    hi = lax.Precision.HIGHEST

    def bf(a):
        return a.astype(jnp.bfloat16).astype(f32)

    high = jnp.transpose(high_nchw, (0, 2, 3, 1)).astype(f32)
    low = jnp.transpose(low_nchw, (0, 2, 3, 1)).astype(f32)
    N, Hl, Wl, Cin = low.shape
    Cout = params["wt"].shape[1]

    # transposed conv k=2, s=2
    up = jnp.einsum("nhwc,cokl->nhkwlo", bf(low), bf(params["wt"]), precision=hi)
    up = up.reshape(N, 2 * Hl, 2 * Wl, Cout) + params["bt"]

    x = jnp.concatenate([high, up], axis=-1) if concat else high + up

    dn = ("NHWC", "HWIO", "NHWC")
    x = lax.conv_general_dilated(bf(x), bf(params["w1"]), (1, 1), ((1, 1), (1, 1)),
                                 dimension_numbers=dn, precision=hi) + params["b1"]
    x = jnp.maximum(x, 0.0)
    x = lax.conv_general_dilated(bf(x), bf(params["w2"]), (1, 1), ((1, 1), (1, 1)),
                                 dimension_numbers=dn, precision=hi) + params["b2"]
    x = jnp.maximum(x, 0.0)
    return jnp.transpose(x, (0, 3, 1, 2))


if __name__ == "__main__":
    key = jax.random.PRNGKey(0)
    kp, kh, kl, kp2, kh2 = jax.random.split(key, 5)

    in_channels, out_channels = 8, 4
    N, H, W = 2, 16, 16

    # concat=True: high_res carries (in_channels - out_channels) channels so the
    # channel concat has in_channels channels (matches Conv2d(in_channels, ...)).
    params = init_params(kp, in_channels, out_channels, concat=True)
    high_res = jax.random.normal(kh, (N, in_channels - out_channels, H, W), jnp.float32)
    low_res = jax.random.normal(kl, (N, in_channels, H // 2, W // 2), jnp.float32)

    out = jax.block_until_ready(unet_up_conv(high_res, low_res, params, concat=True))
    ref = reference(high_res, low_res, params, concat=True)
    assert out.shape == (N, out_channels, H, W), out.shape
    err = float(jnp.max(jnp.abs(out - ref)))
    assert err < 5e-3, err

    # concat=False path: high_res must carry out_channels channels (x = high + up).
    params2 = init_params(kp2, in_channels, out_channels, concat=False)
    high_res2 = jax.random.normal(kh2, (N, out_channels, H, W), jnp.float32)
    out2 = jax.block_until_ready(unet_up_conv(high_res2, low_res, params2, concat=False))
    ref2 = reference(high_res2, low_res, params2, concat=False)
    assert out2.shape == (N, out_channels, H, W), out2.shape
    err2 = float(jnp.max(jnp.abs(out2 - ref2)))
    assert err2 < 5e-3, err2

    print("KERNEL_OK")
</pallas_src>

<mosaic_0001>
module attributes {stable_mosaic.version = 11 : i64} {
  func.func @_fused_kernel(%arg0: i32, %arg1: memref<1x16x16x4xf32, #tpu.memory_space<vmem>>, %arg2: memref<1x8x8x8xf32, #tpu.memory_space<vmem>>, %arg3: memref<4x8x4xbf16, #tpu.memory_space<vmem>>, %arg4: memref<1x4xf32, #tpu.memory_space<vmem>>, %arg5: memref<3x3x8x4xbf16, #tpu.memory_space<vmem>>, %arg6: memref<1x4xf32, #tpu.memory_space<vmem>>, %arg7: memref<3x3x4x4xbf16, #tpu.memory_space<vmem>>, %arg8: memref<1x4xf32, #tpu.memory_space<vmem>>, %arg9: memref<1x16x16x4xf32, #tpu.memory_space<vmem>>, %arg10: memref<8x2x8x2x4xf32, #tpu.memory_space<vmem>>, %arg11: memref<18x18x8xf32, #tpu.memory_space<vmem>>, %arg12: memref<18x18x4xf32, #tpu.memory_space<vmem>>) attributes {dimension_semantics = [#tpu.dimension_semantics<parallel>], iteration_bounds = array<i64: 2>, scalar_prefetch = 0 : i64, scratch_operands = 3 : i64, tpu.core_type = #tpu.core_type<tc>, window_params = [{transform_indices = @transform_0, window_bounds = array<i64: 1, 16, 16, 4>}, {transform_indices = @transform_1, window_bounds = array<i64: 1, 8, 8, 8>}, {pipeline_mode = #tpu.pipeline_mode<synchronous>, transform_indices = @transform_2, window_bounds = array<i64: 4, 8, 4>}, {pipeline_mode = #tpu.pipeline_mode<synchronous>, transform_indices = @transform_3, window_bounds = array<i64: 1, 4>}, {pipeline_mode = #tpu.pipeline_mode<synchronous>, transform_indices = @transform_4, window_bounds = array<i64: 3, 3, 8, 4>}, {pipeline_mode = #tpu.pipeline_mode<synchronous>, transform_indices = @transform_5, window_bounds = array<i64: 1, 4>}, {pipeline_mode = #tpu.pipeline_mode<synchronous>, transform_indices = @transform_6, window_bounds = array<i64: 3, 3, 4, 4>}, {pipeline_mode = #tpu.pipeline_mode<synchronous>, transform_indices = @transform_7, window_bounds = array<i64: 1, 4>}, {transform_indices = @transform_8, window_bounds = array<i64: 1, 16, 16, 4>}]} {
    %c0 = arith.constant 0 : index
    %c0_0 = arith.constant 0 : index
    %c0_1 = arith.constant 0 : index
    %c0_2 = arith.constant 0 : index
    %0 = vector.load %arg2[%c0, %c0_0, %c0_1, %c0_2] : memref<1x8x8x8xf32, #tpu.memory_space<vmem>>, vector<1x8x8x8xf32>
    %1 = vector.shape_cast %0 : vector<1x8x8x8xf32> to vector<64x8xf32>
    %2 = arith.truncf %1 : vector<64x8xf32> to vector<64x8xbf16>
    %c0_3 = arith.constant 0 : index
    %c0_4 = arith.constant 0 : index
    %c0_5 = arith.constant 0 : index
    %3 = vector.load %arg3[%c0_3, %c0_4, %c0_5] : memref<4x8x4xbf16, #tpu.memory_space<vmem>>, vector<1x8x4xbf16>
    %4 = vector.shape_cast %3 : vector<1x8x4xbf16> to vector<8x4xbf16>
    %cst = arith.constant dense<0.000000e+00> : vector<64x4xf32>
    %5 = tpu.matmul %2, %4, %cst {dimension_numbers = #tpu.dot_dimension_numbers<[1], [0], [0], [1], [0, 0, 1, 1], [], []>} : vector<64x8xbf16>, vector<8x4xbf16>, vector<64x4xf32> -> vector<64x4xf32>
    %c0_6 = arith.constant 0 : index
    %c0_7 = arith.constant 0 : index
    %6 = vector.load %arg4[%c0_6, %c0_7] : memref<1x4xf32, #tpu.memory_space<vmem>>, vector<1x4xf32>
    %7 = vector.broadcast %6 : vector<1x4xf32> to vector<64x4xf32>
    %8 = arith.addf %5, %7 : vector<64x4xf32>
    %9 = vector.shape_cast %8 : vector<64x4xf32> to vector<8x1x8x1x4xf32>
    %c0_8 = arith.constant 0 : index
    %c0_9 = arith.constant 0 : index
    %c0_10 = arith.constant 0 : index
    %c0_11 = arith.constant 0 : index
    %c0_12 = arith.constant 0 : index
    %10 = vector.load %arg10[%c0_8, %c0_9, %c0_10, %c0_11, %c0_12] : memref<8x2x8x2x4xf32, #tpu.memory_space<vmem>>, vector<8x1x8x1x4xf32>
    tpu.vector_store %arg10[%c0_8, %c0_9, %c0_10, %c0_11, %c0_12], %9 {strides = array<i32>} : memref<8x2x8x2x4xf32, #tpu.memory_space<vmem>>, vector<8x1x8x1x4xf32>,
    %c1 = arith.constant 1 : index
    %c0_13 = arith.constant 0 : index
    %c0_14 = arith.constant 0 : index
    %11 = vector.load %arg3[%c1, %c0_13, %c0_14] : memref<4x8x4xbf16, #tpu.memory_space<vmem>>, vector<1x8x4xbf16>
    %12 = vector.shape_cast %11 : vector<1x8x4xbf16> to vector<8x4xbf16>
    %cst_15 = arith.constant dense<0.000000e+00> : vector<64x4xf32>
    %13 = tpu.matmul %2, %12, %cst_15 {dimension_numbers = #tpu.dot_dimension_numbers<[1], [0], [0], [1], [0, 0, 1, 1], [], []>} : vector<64x8xbf16>, vector<8x4xbf16>, vector<64x4xf32> -> vector<64x4xf32>
    %c0_16 = arith.constant 0 : index
    %c0_17 = arith.constant 0 : index
    %14 = vector.load %arg4[%c0_16, %c0_17] : memref<1x4xf32, #tpu.memory_space<vmem>>, vector<1x4xf32>
    %15 = vector.broadcast %14 : vector<1x4xf32> to vector<64x4xf32>
    %16 = arith.addf %13, %15 : vector<64x4xf32>
    %17 = vector.shape_cast %16 : vector<64x4xf32> to vector<8x1x8x1x4xf32>
    %c0_18 = arith.constant 0 : index
    %c0_19 = arith.constant 0 : index
    %c0_20 = arith.constant 0 : index
    %c1_21 = arith.constant 1 : index
    %c0_22 = arith.constant 0 : index
    %18 = vector.load %arg10[%c0_18, %c0_19, %c0_20, %c1_21, %c0_22] : memref<8x2x8x2x4xf32, #tpu.memory_space<vmem>>, vector<8x1x8x1x4xf32>
    tpu.vector_store %arg10[%c0_18, %c0_19, %c0_20, %c1_21, %c0_22], %17 {strides = array<i32>} : memref<8x2x8x2x4xf32, #tpu.memory_space<vmem>>, vector<8x1x8x1x4xf32>,
    %c2 = arith.constant 2 : index
    %c0_23 = arith.constant 0 : index
    %c0_24 = arith.constant 0 : index
    %19 = vector.load %arg3[%c2, %c0_23, %c0_24] : memref<4x8x4xbf16, #tpu.memory_space<vmem>>, vector<1x8x4xbf16>
    %20 = vector.shape_cast %19 : vector<1x8x4xbf16> to vector<8x4xbf16>
    %cst_25 = arith.constant dense<0.000000e+00> : vector<64x4xf32>
    %21 = tpu.matmul %2, %20, %cst_25 {dimension_numbers = #tpu.dot_dimension_numbers<[1], [0], [0], [1], [0, 0, 1, 1], [], []>} : vector<64x8xbf16>, vector<8x4xbf16>, vector<64x4xf32> -> vector<64x4xf32>
    %c0_26 = arith.constant 0 : index
    %c0_27 = arith.constant 0 : index
    %22 = vector.load %arg4[%c0_26, %c0_27] : memref<1x4xf32, #tpu.memory_space<vmem>>, vector<1x4xf32>
    %23 = vector.broadcast %22 : vector<1x4xf32> to vector<64x4xf32>
    %24 = arith.addf %21, %23 : vector<64x4xf32>
    %25 = vector.shape_cast %24 : vector<64x4xf32> to vector<8x1x8x1x4xf32>
    %c0_28 = arith.constant 0 : index
    %c1_29 = arith.constant 1 : index
    %c0_30 = arith.constant 0 : index
    %c0_31 = arith.constant 0 : index
    %c0_32 = arith.constant 0 : index
    %26 = vector.load %arg10[%c0_28, %c1_29, %c0_30, %c0_31, %c0_32] : memref<8x2x8x2x4xf32, #tpu.memory_space<vmem>>, vector<8x1x8x1x4xf32>
    tpu.vector_store %arg10[%c0_28, %c1_29, %c0_30, %c0_31, %c0_32], %25 {strides = array<i32>} : memref<8x2x8x2x4xf32, #tpu.memory_space<vmem>>, vector<8x1x8x1x4xf32>,
    %c3 = arith.constant 3 : index
    %c0_33 = arith.constant 0 : index
    %c0_34 = arith.constant 0 : index
    %27 = vector.load %arg3[%c3, %c0_33, %c0_34] : memref<4x8x4xbf16, #tpu.memory_space<vmem>>, vector<1x8x4xbf16>
    %28 = vector.shape_cast %27 : vector<1x8x4xbf16> to vector<8x4xbf16>
    %cst_35 = arith.constant dense<0.000000e+00> : vector<64x4xf32>
    %29 = tpu.matmul %2, %28, %cst_35 {dimension_numbers = #tpu.dot_dimension_numbers<[1], [0], [0], [1], [0, 0, 1, 1], [], []>} : vector<64x8xbf16>, vector<8x4xbf16>, vector<64x4xf32> -> vector<64x4xf32>
    %c0_36 = arith.constant 0 : index
    %c0_37 = arith.constant 0 : index
    %30 = vector.load %arg4[%c0_36, %c0_37] : memref<1x4xf32, #tpu.memory_space<vmem>>, vector<1x4xf32>
    %31 = vector.broadcast %30 : vector<1x4xf32> to vector<64x4xf32>
    %32 = arith.addf %29, %31 : vector<64x4xf32>
    %33 = vector.shape_cast %32 : vector<64x4xf32> to vector<8x1x8x1x4xf32>
    %c0_38 = arith.constant 0 : index
    %c1_39 = arith.constant 1 : index
    %c0_40 = arith.constant 0 : index
    %c1_41 = arith.constant 1 : index
    %c0_42 = arith.constant 0 : index
    %34 = vector.load %arg10[%c0_38, %c1_39, %c0_40, %c1_41, %c0_42] : memref<8x2x8x2x4xf32, #tpu.memory_space<vmem>>, vector<8x1x8x1x4xf32>
    tpu.vector_store %arg10[%c0_38, %c1_39, %c0_40, %c1_41, %c0_42], %33 {strides = array<i32>} : memref<8x2x8x2x4xf32, #tpu.memory_space<vmem>>, vector<8x1x8x1x4xf32>,
    %c0_43 = arith.constant 0 : index
    %c0_44 = arith.constant 0 : index
    %c0_45 = arith.constant 0 : index
    %c0_46 = arith.constant 0 : index
    %c0_47 = arith.constant 0 : index
    %35 = vector.load %arg10[%c0_43, %c0_44, %c0_45, %c0_46, %c0_47] : memref<8x2x8x2x4xf32, #tpu.memory_space<vmem>>, vector<8x2x8x2x4xf32>
    %36 = vector.shape_cast %35 : vector<8x2x8x2x4xf32> to vector<16x16x4xf32>
    %cst_48 = arith.constant 0.000000e+00 : f32
    %37 = vector.broadcast %cst_48 : f32 to vector<1x18x8xf32>
    %c0_49 = arith.constant 0 : index
    %c0_50 = arith.constant 0 : index
    %c0_51 = arith.constant 0 : index
    %38 = vector.load %arg11[%c0_49, %c0_50, %c0_51] : memref<18x18x8xf32, #tpu.memory_space<vmem>>, vector<1x18x8xf32>
    tpu.vector_store %arg11[%c0_49, %c0_50, %c0_51], %37 {strides = array<i32>} : memref<18x18x8xf32, #tpu.memory_space<vmem>>, vector<1x18x8xf32>,
    %cst_52 = arith.constant 0.000000e+00 : f32
    %39 = vector.broadcast %cst_52 : f32 to vector<1x18x8xf32>
    %c17 = arith.constant 17 : index
    %c0_53 = arith.constant 0 : index
    %c0_54 = arith.constant 0 : index
    %40 = vector.load %arg11[%c17, %c0_53, %c0_54] : memref<18x18x8xf32, #tpu.memory_space<vmem>>, vector<1x18x8xf32>
    tpu.vector_store %arg11[%c17, %c0_53, %c0_54], %39 {strides = array<i32>} : memref<18x18x8xf32, #tpu.memory_space<vmem>>, vector<1x18x8xf32>,
    %cst_55 = arith.constant 0.000000e+00 : f32
    %41 = vector.broadcast %cst_55 : f32 to vector<18x1x8xf32>
    %c0_56 = arith.constant 0 : index
    %c0_57 = arith.constant 0 : index
    %c0_58 = arith.constant 0 : index
    %42 = vector.load %arg11[%c0_56, %c0_57, %c0_58] : memref<18x18x8xf32, #tpu.memory_space<vmem>>, vector<18x1x8xf32>
    tpu.vector_store %arg11[%c0_56, %c0_57, %c0_58], %41 {strides = array<i32>} : memref<18x18x8xf32, #tpu.memory_space<vmem>>, vector<18x1x8xf32>,
    %cst_59 = arith.constant 0.000000e+00 : f32
    %43 = vector.broadcast %cst_59 : f32 to vector<18x1x8xf32>
    %c0_60 = arith.constant 0 : index
    %c17_61 = arith.constant 17 : index
    %c0_62 = arith.constant 0 : index
    %44 = vector.load %arg11[%c0_60, %c17_61, %c0_62] : memref<18x18x8xf32, #tpu.memory_space<vmem>>, vector<18x1x8xf32>
    tpu.vector_store %arg11[%c0_60, %c17_61, %c0_62], %43 {strides = array<i32>} : memref<18x18x8xf32, #tpu.memory_space<vmem>>, vector<18x1x8xf32>,
    %c0_63 = arith.constant 0 : index
    %c0_64 = arith.constant 0 : index
    %c0_65 = arith.constant 0 : index
    %c0_66 = arith.constant 0 : index
    %45 = vector.load %arg1[%c0_63, %c0_64, %c0_65, %c0_66] : memref<1x16x16x4xf32, #tpu.memory_space<vmem>>, vector<1x16x16x4xf32>
    %46 = vector.shape_cast %45 : vector<1x16x16x4xf32> to vector<16x16x4xf32>
    %c1_67 = arith.constant 1 : index
    %c1_68 = arith.constant 1 : index
    %c0_69 = arith.constant 0 : index
    %47 = vector.load %arg11[%c1_67, %c1_68, %c0_69] : memref<18x18x8xf32, #tpu.memory_space<vmem>>, vector<16x16x4xf32>
    tpu.vector_store %arg11[%c1_67, %c1_68, %c0_69], %46 {strides = array<i32>} : memref<18x18x8xf32, #tpu.memory_space<vmem>>, vector<16x16x4xf32>,
    %c1_70 = arith.constant 1 : index
    %c1_71 = arith.constant 1 : index
    %c4 = arith.constant 4 : index
    %48 = vector.load %arg11[%c1_70, %c1_71, %c4] : memref<18x18x8xf32, #tpu.memory_space<vmem>>, vector<16x16x4xf32>
    tpu.vector_store %arg11[%c1_70, %c1_71, %c4], %36 {strides = array<i32>} : memref<18x18x8xf32, #tpu.memory_space<vmem>>, vector<16x16x4xf32>,
    %cst_72 = arith.constant 0.000000e+00 : f32
    %49 = vector.broadcast %cst_72 : f32 to vector<256x4xf32>
    %c0_73 = arith.constant 0 : index
    %c0_74 = arith.constant 0 : index
    %50 = vector.load %arg6[%c0_73, %c0_74] : memref<1x4xf32, #tpu.memory_space<vmem>>, vector<1x4xf32>
    %51 = vector.broadcast %50 : vector<1x4xf32> to vector<256x4xf32>
    %52 = arith.addf %49, %51 : vector<256x4xf32>
    %c0_75 = arith.constant 0 : index
    %c0_76 = arith.constant 0 : index
    %c0_77 = arith.constant 0 : index
    %53 = vector.load %arg11[%c0_75, %c0_76, %c0_77] : memref<18x18x8xf32, #tpu.memory_space<vmem>>, vector<16x16x8xf32>
    %54 = vector.shape_cast %53 : vector<16x16x8xf32> to vector<256x8xf32>
    %55 = arith.truncf %54 : vector<256x8xf32> to vector<256x8xbf16>
    %c0_78 = arith.constant 0 : index
    %c0_79 = arith.constant 0 : index
    %c0_80 = arith.constant 0 : index
    %c0_81 = arith.constant 0 : index
    %56 = vector.load %arg5[%c0_78, %c0_79, %c0_80, %c0_81] : memref<3x3x8x4xbf16, #tpu.memory_space<vmem>>, vector<1x1x8x4xbf16>
    %57 = vector.shape_cast %56 : vector<1x1x8x4xbf16> to vector<8x4xbf16>
    %cst_82 = arith.constant dense<0.000000e+00> : vector<256x4xf32>
    %58 = tpu.matmul %55, %57, %cst_82 {dimension_numbers = #tpu.dot_dimension_numbers<[1], [0], [0], [1], [0, 0, 1, 1], [], []>} : vector<256x8xbf16>, vector<8x4xbf16>, vector<256x4xf32> -> vector<256x4xf32>
    %59 = arith.addf %52, %58 : vector<256x4xf32>
    %c0_83 = arith.constant 0 : index
    %c1_84 = arith.constant 1 : index
    %c0_85 = arith.constant 0 : index
    %60 = vector.load %arg11[%c0_83, %c1_84, %c0_85] : memref<18x18x8xf32, #tpu.memory_space<vmem>>, vector<16x16x8xf32>
    %61 = vector.shape_cast %60 : vector<16x16x8xf32> to vector<256x8xf32>
    %62 = arith.truncf %61 : vector<256x8xf32> to vector<256x8xbf16>
    %c0_86 = arith.constant 0 : index
    %c1_87 = arith.constant 1 : index
    %c0_88 = arith.constant 0 : index
    %c0_89 = arith.constant 0 : index
    %63 = vector.load %arg5[%c0_86, %c1_87, %c0_88, %c0_89] : memref<3x3x8x4xbf16, #tpu.memory_space<vmem>>, vector<1x1x8x4xbf16>
    %64 = vector.shape_cast %63 : vector<1x1x8x4xbf16> to vector<8x4xbf16>
    %cst_90 = arith.constant dense<0.000000e+00> : vector<256x4xf32>
    %65 = tpu.matmul %62, %64, %cst_90 {dimension_numbers = #tpu.dot_dimension_numbers<[1], [0], [0], [1], [0, 0, 1, 1], [], []>} : vector<256x8xbf16>, vector<8x4xbf16>, vector<256x4xf32> -> vector<256x4xf32>
    %66 = arith.addf %59, %65 : vector<256x4xf32>
    %c0_91 = arith.constant 0 : index
    %c2_92 = arith.constant 2 : index
    %c0_93 = arith.constant 0 : index
    %67 = vector.load %arg11[%c0_91, %c2_92, %c0_93] : memref<18x18x8xf32, #tpu.memory_space<vmem>>, vector<16x16x8xf32>
    %68 = vector.shape_cast %67 : vector<16x16x8xf32> to vector<256x8xf32>
    %69 = arith.truncf %68 : vector<256x8xf32> to vector<256x8xbf16>
    %c0_94 = arith.constant 0 : index
    %c2_95 = arith.constant 2 : index
    %c0_96 = arith.constant 0 : index
    %c0_97 = arith.constant 0 : index
    %70 = vector.load %arg5[%c0_94, %c2_95, %c0_96, %c0_97] : memref<3x3x8x4xbf16, #tpu.memory_space<vmem>>, vector<1x1x8x4xbf16>
    %71 = vector.shape_cast %70 : vector<1x1x8x4xbf16> to vector<8x4xbf16>
    %cst_98 = arith.constant dense<0.000000e+00> : vector<256x4xf32>
    %72 = tpu.matmul %69, %71, %cst_98 {dimension_numbers = #tpu.dot_dimension_numbers<[1], [0], [0], [1], [0, 0, 1, 1], [], []>} : vector<256x8xbf16>, vector<8x4xbf16>, vector<256x4xf32> -> vector<256x4xf32>
    %73 = arith.addf %66, %72 : vector<256x4xf32>
    %c1_99 = arith.constant 1 : index
    %c0_100 = arith.constant 0 : index
    %c0_101 = arith.constant 0 : index
    %74 = vector.load %arg11[%c1_99, %c0_100, %c0_101] : memref<18x18x8xf32, #tpu.memory_space<vmem>>, vector<16x16x8xf32>
    %75 = vector.shape_cast %74 : vector<16x16x8xf32> to vector<256x8xf32>
    %76 = arith.truncf %75 : vector<256x8xf32> to vector<256x8xbf16>
    %c1_102 = arith.constant 1 : index
    %c0_103 = arith.constant 0 : index
    %c0_104 = arith.constant 0 : index
    %c0_105 = arith.constant 0 : index
    %77 = vector.load %arg5[%c1_102, %c0_103, %c0_104, %c0_105] : memref<3x3x8x4xbf16, #tpu.memory_space<vmem>>, vector<1x1x8x4xbf16>
    %78 = vector.shape_cast %77 : vector<1x1x8x4xbf16> to vector<8x4xbf16>
    %cst_106 = arith.constant dense<0.000000e+00> : vector<256x4xf32>
    %79 = tpu.matmul %76, %78, %cst_106 {dimension_numbers = #tpu.dot_dimension_numbers<[1], [0], [0], [1], [0, 0, 1, 1], [], []>} : vector<256x8xbf16>, vector<8x4xbf16>, vector<256x4xf32> -> vector<256x4xf32>
    %80 = arith.addf %73, %79 : vector<256x4xf32>
    %c1_107 = arith.constant 1 : index
    %c1_108 = arith.constant 1 : index
    %c0_109 = arith.constant 0 : index
    %81 = vector.load %arg11[%c1_107, %c1_108, %c0_109] : memref<18x18x8xf32, #tpu.memory_space<vmem>>, vector<16x16x8xf32>
    %82 = vector.shape_cast %81 : vector<16x16x8xf32> to vector<256x8xf32>
    %83 = arith.truncf %82 : vector<256x8xf32> to vector<256x8xbf16>
    %c1_110 = arith.constant 1 : index
    %c1_111 = arith.constant 1 : index
    %c0_112 = arith.constant 0 : index
    %c0_113 = arith.constant 0 : index
    %84 = vector.load %arg5[%c1_110, %c1_111, %c0_112, %c0_113] : memref<3x3x8x4xbf16, #tpu.memory_space<vmem>>, vector<1x1x8x4xbf16>
    %85 = vector.shape_cast %84 : vector<1x1x8x4xbf16> to vector<8x4xbf16>
    %cst_114 = arith.constant dense<0.000000e+00> : vector<256x4xf32>
    %86 = tpu.matmul %83, %85, %cst_114 {dimension_numbers = #tpu.dot_dimension_numbers<[1], [0], [0], [1], [0, 0, 1, 1], [], []>} : vector<256x8xbf16>, vector<8x4xbf16>, vector<256x4xf32> -> vector<256x4xf32>
    %87 = arith.addf %80, %86 : vector<256x4xf32>
    %c1_115 = arith.constant 1 : index
    %c2_116 = arith.constant 2 : index
    %c0_117 = arith.constant 0 : index
    %88 = vector.load %arg11[%c1_115, %c2_116, %c0_117] : memref<18x18x8xf32, #tpu.memory_space<vmem>>, vector<16x16x8xf32>
    %89 = vector.shape_cast %88 : vector<16x16x8xf32> to vector<256x8xf32>
    %90 = arith.truncf %89 : vector<256x8xf32> to vector<256x8xbf16>
    %c1_118 = arith.constant 1 : index
    %c2_119 = arith.constant 2 : index
    %c0_120 = arith.constant 0 : index
    %c0_121 = arith.constant 0 : index
    %91 = vector.load %arg5[%c1_118, %c2_119, %c0_120, %c0_121] : memref<3x3x8x4xbf16, #tpu.memory_space<vmem>>, vector<1x1x8x4xbf16>
    %92 = vector.shape_cast %91 : vector<1x1x8x4xbf16> to vector<8x4xbf16>
    %cst_122 = arith.constant dense<0.000000e+00> : vector<256x4xf32>
    %93 = tpu.matmul %90, %92, %cst_122 {dimension_numbers = #tpu.dot_dimension_numbers<[1], [0], [0], [1], [0, 0, 1, 1], [], []>} : vector<256x8xbf16>, vector<8x4xbf16>, vector<256x4xf32> -> vector<256x4xf32>
    %94 = arith.addf %87, %93 : vector<256x4xf32>
    %c2_123 = arith.constant 2 : index
    %c0_124 = arith.constant 0 : index
    %c0_125 = arith.constant 0 : index
    %95 = vector.load %arg11[%c2_123, %c0_124, %c0_125] : memref<18x18x8xf32, #tpu.memory_space<vmem>>, vector<16x16x8xf32>
    %96 = vector.shape_cast %95 : vector<16x16x8xf32> to vector<256x8xf32>
    %97 = arith.truncf %96 : vector<256x8xf32> to vector<256x8xbf16>
    %c2_126 = arith.constant 2 : index
    %c0_127 = arith.constant 0 : index
    %c0_128 = arith.constant 0 : index
    %c0_129 = arith.constant 0 : index
    %98 = vector.load %arg5[%c2_126, %c0_127, %c0_128, %c0_129] : memref<3x3x8x4xbf16, #tpu.memory_space<vmem>>, vector<1x1x8x4xbf16>
    %99 = vector.shape_cast %98 : vector<1x1x8x4xbf16> to vector<8x4xbf16>
    %cst_130 = arith.constant dense<0.000000e+00> : vector<256x4xf32>
    %100 = tpu.matmul %97, %99, %cst_130 {dimension_numbers = #tpu.dot_dimension_numbers<[1], [0], [0], [1], [0, 0, 1, 1], [], []>} : vector<256x8xbf16>, vector<8x4xbf16>, vector<256x4xf32> -> vector<256x4xf32>
    %101 = arith.addf %94, %100 : vector<256x4xf32>
    %c2_131 = arith.constant 2 : index
    %c1_132 = arith.constant 1 : index
    %c0_133 = arith.constant 0 : index
    %102 = vector.load %arg11[%c2_131, %c1_132, %c0_133] : memref<18x18x8xf32, #tpu.memory_space<vmem>>, vector<16x16x8xf32>
    %103 = vector.shape_cast %102 : vector<16x16x8xf32> to vector<256x8xf32>
    %104 = arith.truncf %103 : vector<256x8xf32> to vector<256x8xbf16>
    %c2_134 = arith.constant 2 : index
    %c1_135 = arith.constant 1 : index
    %c0_136 = arith.constant 0 : index
    %c0_137 = arith.constant 0 : index
    %105 = vector.load %arg5[%c2_134, %c1_135, %c0_136, %c0_137] : memref<3x3x8x4xbf16, #tpu.memory_space<vmem>>, vector<1x1x8x4xbf16>
    %106 = vector.shape_cast %105 : vector<1x1x8x4xbf16> to vector<8x4xbf16>
    %cst_138 = arith.constant dense<0.000000e+00> : vector<256x4xf32>
    %107 = tpu.matmul %104, %106, %cst_138 {dimension_numbers = #tpu.dot_dimension_numbers<[1], [0], [0], [1], [0, 0, 1, 1], [], []>} : vector<256x8xbf16>, vector<8x4xbf16>, vector<256x4xf32> -> vector<256x4xf32>
    %108 = arith.addf %101, %107 : vector<256x4xf32>
    %c2_139 = arith.constant 2 : index
    %c2_140 = arith.constant 2 : index
    %c0_141 = arith.constant 0 : index
    %109 = vector.load %arg11[%c2_139, %c2_140, %c0_141] : memref<18x18x8xf32, #tpu.memory_space<vmem>>, vector<16x16x8xf32>
    %110 = vector.shape_cast %109 : vector<16x16x8xf32> to vector<256x8xf32>
    %111 = arith.truncf %110 : vector<256x8xf32> to vector<256x8xbf16>
    %c2_142 = arith.constant 2 : index
    %c2_143 = arith.constant 2 : index
    %c0_144 = arith.constant 0 : index
    %c0_145 = arith.constant 0 : index
    %112 = vector.load %arg5[%c2_142, %c2_143, %c0_144, %c0_145] : memref<3x3x8x4xbf16, #tpu.memory_space<vmem>>, vector<1x1x8x4xbf16>
    %113 = vector.shape_cast %112 : vector<1x1x8x4xbf16> to vector<8x4xbf16>
    %cst_146 = arith.constant dense<0.000000e+00> : vector<256x4xf32>
    %114 = tpu.matmul %111, %113, %cst_146 {dimension_numbers = #tpu.dot_dimension_numbers<[1], [0], [0], [1], [0, 0, 1, 1], [], []>} : vector<256x8xbf16>, vector<8x4xbf16>, vector<256x4xf32> -> vector<256x4xf32>
    %115 = arith.addf %108, %114 : vector<256x4xf32>
    %cst_147 = arith.constant 0.000000e+00 : f32
    %116 = vector.broadcast %cst_147 : f32 to vector<256x4xf32>
    %117 = arith.maximumf %115, %116 : vector<256x4xf32>
    %118 = vector.shape_cast %117 : vector<256x4xf32> to vector<16x16x4xf32>
    %cst_148 = arith.constant 0.000000e+00 : f32
    %119 = vector.broadcast %cst_148 : f32 to vector<1x18x4xf32>
    %c0_149 = arith.constant 0 : index
    %c0_150 = arith.constant 0 : index
    %c0_151 = arith.constant 0 : index
    %120 = vector.load %arg12[%c0_149, %c0_150, %c0_151] : memref<18x18x4xf32, #tpu.memory_space<vmem>>, vector<1x18x4xf32>
    tpu.vector_store %arg12[%c0_149, %c0_150, %c0_151], %119 {strides = array<i32>} : memref<18x18x4xf32, #tpu.memory_space<vmem>>, vector<1x18x4xf32>,
    %cst_152 = arith.constant 0.000000e+00 : f32
    %121 = vector.broadcast %cst_152 : f32 to vector<1x18x4xf32>
    %c17_153 = arith.constant 17 : index
    %c0_154 = arith.constant 0 : index
    %c0_155 = arith.constant 0 : index
    %122 = vector.load %arg12[%c17_153, %c0_154, %c0_155] : memref<18x18x4xf32, #tpu.memory_space<vmem>>, vector<1x18x4xf32>
    tpu.vector_store %arg12[%c17_153, %c0_154, %c0_155], %121 {strides = array<i32>} : memref<18x18x4xf32, #tpu.memory_space<vmem>>, vector<1x18x4xf32>,
    %cst_156 = arith.constant 0.000000e+00 : f32
    %123 = vector.broadcast %cst_156 : f32 to vector<18x1x4xf32>
    %c0_157 = arith.constant 0 : index
    %c0_158 = arith.constant 0 : index
    %c0_159 = arith.constant 0 : index
    %124 = vector.load %arg12[%c0_157, %c0_158, %c0_159] : memref<18x18x4xf32, #tpu.memory_space<vmem>>, vector<18x1x4xf32>
    tpu.vector_store %arg12[%c0_157, %c0_158, %c0_159], %123 {strides = array<i32>} : memref<18x18x4xf32, #tpu.memory_space<vmem>>, vector<18x1x4xf32>,
    %cst_160 = arith.constant 0.000000e+00 : f32
    %125 = vector.broadcast %cst_160 : f32 to vector<18x1x4xf32>
    %c0_161 = arith.constant 0 : index
    %c17_162 = arith.constant 17 : index
    %c0_163 = arith.constant 0 : index
    %126 = vector.load %arg12[%c0_161, %c17_162, %c0_163] : memref<18x18x4xf32, #tpu.memory_space<vmem>>, vector<18x1x4xf32>
    tpu.vector_store %arg12[%c0_161, %c17_162, %c0_163], %125 {strides = array<i32>} : memref<18x18x4xf32, #tpu.memory_space<vmem>>, vector<18x1x4xf32>,
    %c1_164 = arith.constant 1 : index
    %c1_165 = arith.constant 1 : index
    %c0_166 = arith.constant 0 : index
    %127 = vector.load %arg12[%c1_164, %c1_165, %c0_166] : memref<18x18x4xf32, #tpu.memory_space<vmem>>, vector<16x16x4xf32>
    tpu.vector_store %arg12[%c1_164, %c1_165, %c0_166], %118 {strides = array<i32>} : memref<18x18x4xf32, #tpu.memory_space<vmem>>, vector<16x16x4xf32>,
    %cst_167 = arith.constant 0.000000e+00 : f32
    %128 = vector.broadcast %cst_167 : f32 to vector<256x4xf32>
    %c0_168 = arith.constant 0 : index
    %c0_169 = arith.constant 0 : index
    %129 = vector.load %arg8[%c0_168, %c0_169] : memref<1x4xf32, #tpu.memory_space<vmem>>, vector<1x4xf32>
    %130 = vector.broadcast %129 : vector<1x4xf32> to vector<256x4xf32>
    %131 = arith.addf %128, %130 : vector<256x4xf32>
    %c0_170 = arith.constant 0 : index
    %c0_171 = arith.constant 0 : index
    %c0_172 = arith.constant 0 : index
    %132 = vector.load %arg12[%c0_170, %c0_171, %c0_172] : memref<18x18x4xf32, #tpu.memory_space<vmem>>, vector<16x16x4xf32>
    %133 = vector.shape_cast %132 : vector<16x16x4xf32> to vector<256x4xf32>
    %134 = arith.truncf %133 : vector<256x4xf32> to vector<256x4xbf16>
    %c0_173 = arith.constant 0 : index
    %c0_174 = arith.constant 0 : index
    %c0_175 = arith.constant 0 : index
    %c0_176 = arith.constant 0 : index
    %135 = vector.load %arg7[%c0_173, %c0_174, %c0_175, %c0_176] : memref<3x3x4x4xbf16, #tpu.memory_space<vmem>>, vector<1x1x4x4xbf16>
    %136 = vector.shape_cast %135 : vector<1x1x4x4xbf16> to vector<4x4xbf16>
    %cst_177 = arith.constant dense<0.000000e+00> : vector<256x4xf32>
    %137 = tpu.matmul %134, %136, %cst_177 {dimension_numbers = #tpu.dot_dimension_numbers<[1], [0], [0], [1], [0, 0, 1, 1], [], []>} : vector<256x4xbf16>, vector<4x4xbf16>, vector<256x4xf32> -> vector<256x4xf32>
    %138 = arith.addf %131, %137 : vector<256x4xf32>
    %c0_178 = arith.constant 0 : index
    %c1_179 = arith.constant 1 : index
    %c0_180 = arith.constant 0 : index
    %139 = vector.load %arg12[%c0_178, %c1_179, %c0_180] : memref<18x18x4xf32, #tpu.memory_space<vmem>>, vector<16x16x4xf32>
    %140 = vector.shape_cast %139 : vector<16x16x4xf32> to vector<256x4xf32>
    %141 = arith.truncf %140 : vector<256x4xf32> to vector<256x4xbf16>
    %c0_181 = arith.constant 0 : index
    %c1_182 = arith.constant 1 : index
    %c0_183 = arith.constant 0 : index
    %c0_184 = arith.constant 0 : index
    %142 = vector.load %arg7[%c0_181, %c1_182, %c0_183, %c0_184] : memref<3x3x4x4xbf16, #tpu.memory_space<vmem>>, vector<1x1x4x4xbf16>
    %143 = vector.shape_cast %142 : vector<1x1x4x4xbf16> to vector<4x4xbf16>
    %cst_185 = arith.constant dense<0.000000e+00> : vector<256x4xf32>
    %144 = tpu.matmul %141, %143, %cst_185 {dimension_numbers = #tpu.dot_dimension_numbers<[1], [0], [0], [1], [0, 0, 1, 1], [], []>} : vector<256x4xbf16>, vector<4x4xbf16>, vector<256x4xf32> -> vector<256x4xf32>
    %145 = arith.addf %138, %144 : vector<256x4xf32>
    %c0_186 = arith.constant 0 : index
    %c2_187 = arith.constant 2 : index
    %c0_188 = arith.constant 0 : index
    %146 = vector.load %arg12[%c0_186, %c2_187, %c0_188] : memref<18x18x4xf32, #tpu.memory_space<vmem>>, vector<16x16x4xf32>
    %147 = vector.shape_cast %146 : vector<16x16x4xf32> to vector<256x4xf32>
    %148 = arith.truncf %147 : vector<256x4xf32> to vector<256x4xbf16>
    %c0_189 = arith.constant 0 : index
    %c2_190 = arith.constant 2 : index
    %c0_191 = arith.constant 0 : index
    %c0_192 = arith.constant 0 : index
    %149 = vector.load %arg7[%c0_189, %c2_190, %c0_191, %c0_192] : memref<3x3x4x4xbf16, #tpu.memory_space<vmem>>, vector<1x1x4x4xbf16>
    %150 = vector.shape_cast %149 : vector<1x1x4x4xbf16> to vector<4x4xbf16>
    %cst_193 = arith.constant dense<0.000000e+00> : vector<256x4xf32>
    %151 = tpu.matmul %148, %150, %cst_193 {dimension_numbers = #tpu.dot_dimension_numbers<[1], [0], [0], [1], [0, 0, 1, 1], [], []>} : vector<256x4xbf16>, vector<4x4xbf16>, vector<256x4xf32> -> vector<256x4xf32>
    %152 = arith.addf %145, %151 : vector<256x4xf32>
    %c1_194 = arith.constant 1 : index
    %c0_195 = arith.constant 0 : index
    %c0_196 = arith.constant 0 : index
    %153 = vector.load %arg12[%c1_194, %c0_195, %c0_196] : memref<18x18x4xf32, #tpu.memory_space<vmem>>, vector<16x16x4xf32>
    %154 = vector.shape_cast %153 : vector<16x16x4xf32> to vector<256x4xf32>
    %155 = arith.truncf %154 : vector<256x4xf32> to vector<256x4xbf16>
    %c1_197 = arith.constant 1 : index
    %c0_198 = arith.constant 0 : index
    %c0_199 = arith.constant 0 : index
    %c0_200 = arith.constant 0 : index
    %156 = vector.load %arg7[%c1_197, %c0_198, %c0_199, %c0_200] : memref<3x3x4x4xbf16, #tpu.memory_space<vmem>>, vector<1x1x4x4xbf16>
    %157 = vector.shape_cast %156 : vector<1x1x4x4xbf16> to vector<4x4xbf16>
    %cst_201 = arith.constant dense<0.000000e+00> : vector<256x4xf32>
    %158 = tpu.matmul %155, %157, %cst_201 {dimension_numbers = #tpu.dot_dimension_numbers<[1], [0], [0], [1], [0, 0, 1, 1], [], []>} : vector<256x4xbf16>, vector<4x4xbf16>, vector<256x4xf32> -> vector<256x4xf32>
    %159 = arith.addf %152, %158 : vector<256x4xf32>
    %c1_202 = arith.constant 1 : index
    %c1_203 = arith.constant 1 : index
    %c0_204 = arith.constant 0 : index
    %160 = vector.load %arg12[%c1_202, %c1_203, %c0_204] : memref<18x18x4xf32, #tpu.memory_space<vmem>>, vector<16x16x4xf32>
    %161 = vector.shape_cast %160 : vector<16x16x4xf32> to vector<256x4xf32>
    %162 = arith.truncf %161 : vector<256x4xf32> to vector<256x4xbf16>
    %c1_205 = arith.constant 1 : index
    %c1_206 = arith.constant 1 : index
    %c0_207 = arith.constant 0 : index
    %c0_208 = arith.constant 0 : index
    %163 = vector.load %arg7[%c1_205, %c1_206, %c0_207, %c0_208] : memref<3x3x4x4xbf16, #tpu.memory_space<vmem>>, vector<1x1x4x4xbf16>
    %164 = vector.shape_cast %163 : vector<1x1x4x4xbf16> to vector<4x4xbf16>
    %cst_209 = arith.constant dense<0.000000e+00> : vector<256x4xf32>
    %165 = tpu.matmul %162, %164, %cst_209 {dimension_numbers = #tpu.dot_dimension_numbers<[1], [0], [0], [1], [0, 0, 1, 1], [], []>} : vector<256x4xbf16>, vector<4x4xbf16>, vector<256x4xf32> -> vector<256x4xf32>
    %166 = arith.addf %159, %165 : vector<256x4xf32>
    %c1_210 = arith.constant 1 : index
    %c2_211 = arith.constant 2 : index
    %c0_212 = arith.constant 0 : index
    %167 = vector.load %arg12[%c1_210, %c2_211, %c0_212] : memref<18x18x4xf32, #tpu.memory_space<vmem>>, vector<16x16x4xf32>
    %168 = vector.shape_cast %167 : vector<16x16x4xf32> to vector<256x4xf32>
    %169 = arith.truncf %168 : vector<256x4xf32> to vector<256x4xbf16>
    %c1_213 = arith.constant 1 : index
    %c2_214 = arith.constant 2 : index
    %c0_215 = arith.constant 0 : index
    %c0_216 = arith.constant 0 : index
    %170 = vector.load %arg7[%c1_213, %c2_214, %c0_215, %c0_216] : memref<3x3x4x4xbf16, #tpu.memory_space<vmem>>, vector<1x1x4x4xbf16>
    %171 = vector.shape_cast %170 : vector<1x1x4x4xbf16> to vector<4x4xbf16>
    %cst_217 = arith.constant dense<0.000000e+00> : vector<256x4xf32>
    %172 = tpu.matmul %169, %171, %cst_217 {dimension_numbers = #tpu.dot_dimension_numbers<[1], [0], [0], [1], [0, 0, 1, 1], [], []>} : vector<256x4xbf16>, vector<4x4xbf16>, vector<256x4xf32> -> vector<256x4xf32>
    %173 = arith.addf %166, %172 : vector<256x4xf32>
    %c2_218 = arith.constant 2 : index
    %c0_219 = arith.constant 0 : index
    %c0_220 = arith.constant 0 : index
    %174 = vector.load %arg12[%c2_218, %c0_219, %c0_220] : memref<18x18x4xf32, #tpu.memory_space<vmem>>, vector<16x16x4xf32>
    %175 = vector.shape_cast %174 : vector<16x16x4xf32> to vector<256x4xf32>
    %176 = arith.truncf %175 : vector<256x4xf32> to vector<256x4xbf16>
    %c2_221 = arith.constant 2 : index
    %c0_222 = arith.constant 0 : index
    %c0_223 = arith.constant 0 : index
    %c0_224 = arith.constant 0 : index
    %177 = vector.load %arg7[%c2_221, %c0_222, %c0_223, %c0_224] : memref<3x3x4x4xbf16, #tpu.memory_space<vmem>>, vector<1x1x4x4xbf16>
    %178 = vector.shape_cast %177 : vector<1x1x4x4xbf16> to vector<4x4xbf16>
    %cst_225 = arith.constant dense<0.000000e+00> : vector<256x4xf32>
    %179 = tpu.matmul %176, %178, %cst_225 {dimension_numbers = #tpu.dot_dimension_numbers<[1], [0], [0], [1], [0, 0, 1, 1], [], []>} : vector<256x4xbf16>, vector<4x4xbf16>, vector<256x4xf32> -> vector<256x4xf32>
    %180 = arith.addf %173, %179 : vector<256x4xf32>
    %c2_226 = arith.constant 2 : index
    %c1_227 = arith.constant 1 : index
    %c0_228 = arith.constant 0 : index
    %181 = vector.load %arg12[%c2_226, %c1_227, %c0_228] : memref<18x18x4xf32, #tpu.memory_space<vmem>>, vector<16x16x4xf32>
    %182 = vector.shape_cast %181 : vector<16x16x4xf32> to vector<256x4xf32>
    %183 = arith.truncf %182 : vector<256x4xf32> to vector<256x4xbf16>
    %c2_229 = arith.constant 2 : index
    %c1_230 = arith.constant 1 : index
    %c0_231 = arith.constant 0 : index
    %c0_232 = arith.constant 0 : index
    %184 = vector.load %arg7[%c2_229, %c1_230, %c0_231, %c0_232] : memref<3x3x4x4xbf16, #tpu.memory_space<vmem>>, vector<1x1x4x4xbf16>
    %185 = vector.shape_cast %184 : vector<1x1x4x4xbf16> to vector<4x4xbf16>
    %cst_233 = arith.constant dense<0.000000e+00> : vector<256x4xf32>
    %186 = tpu.matmul %183, %185, %cst_233 {dimension_numbers = #tpu.dot_dimension_numbers<[1], [0], [0], [1], [0, 0, 1, 1], [], []>} : vector<256x4xbf16>, vector<4x4xbf16>, vector<256x4xf32> -> vector<256x4xf32>
    %187 = arith.addf %180, %186 : vector<256x4xf32>
    %c2_234 = arith.constant 2 : index
    %c2_235 = arith.constant 2 : index
    %c0_236 = arith.constant 0 : index
    %188 = vector.load %arg12[%c2_234, %c2_235, %c0_236] : memref<18x18x4xf32, #tpu.memory_space<vmem>>, vector<16x16x4xf32>
    %189 = vector.shape_cast %188 : vector<16x16x4xf32> to vector<256x4xf32>
    %190 = arith.truncf %189 : vector<256x4xf32> to vector<256x4xbf16>
    %c2_237 = arith.constant 2 : index
    %c2_238 = arith.constant 2 : index
    %c0_239 = arith.constant 0 : index
    %c0_240 = arith.constant 0 : index
    %191 = vector.load %arg7[%c2_237, %c2_238, %c0_239, %c0_240] : memref<3x3x4x4xbf16, #tpu.memory_space<vmem>>, vector<1x1x4x4xbf16>
    %192 = vector.shape_cast %191 : vector<1x1x4x4xbf16> to vector<4x4xbf16>
    %cst_241 = arith.constant dense<0.000000e+00> : vector<256x4xf32>
    %193 = tpu.matmul %190, %192, %cst_241 {dimension_numbers = #tpu.dot_dimension_numbers<[1], [0], [0], [1], [0, 0, 1, 1], [], []>} : vector<256x4xbf16>, vector<4x4xbf16>, vector<256x4xf32> -> vector<256x4xf32>
    %194 = arith.addf %187, %193 : vector<256x4xf32>
    %cst_242 = arith.constant 0.000000e+00 : f32
    %195 = vector.broadcast %cst_242 : f32 to vector<256x4xf32>
    %196 = arith.maximumf %194, %195 : vector<256x4xf32>
    %197 = vector.shape_cast %196 : vector<256x4xf32> to vector<1x16x16x4xf32>
    %c0_243 = arith.constant 0 : index
    %c0_244 = arith.constant 0 : index
    %c0_245 = arith.constant 0 : index
    %c0_246 = arith.constant 0 : index
    %198 = vector.load %arg9[%c0_243, %c0_244, %c0_245, %c0_246] : memref<1x16x16x4xf32, #tpu.memory_space<vmem>>, vector<1x16x16x4xf32>
    tpu.vector_store %arg9[%c0_243, %c0_244, %c0_245, %c0_246], %197 {strides = array<i32>} : memref<1x16x16x4xf32, #tpu.memory_space<vmem>>, vector<1x16x16x4xf32>,
    return
  }
  func.func @transform_0(%arg0: i32) -> (i32, i32, i32, i32) {
    %c0_i32 = arith.constant 0 : i32
    %c0_i32_0 = arith.constant 0 : i32
    %c0_i32_1 = arith.constant 0 : i32
    %c0_i32_2 = arith.constant 0 : i32
    return %arg0, %c0_i32, %c0_i32_0, %c0_i32_1 : i32, i32, i32, i32
  }
  func.func @transform_1(%arg0: i32) -> (i32, i32, i32, i32) {
    %c0_i32 = arith.constant 0 : i32
    %c0_i32_0 = arith.constant 0 : i32
    %c0_i32_1 = arith.constant 0 : i32
    %c0_i32_2 = arith.constant 0 : i32
    return %arg0, %c0_i32, %c0_i32_0, %c0_i32_1 : i32, i32, i32, i32
  }
  func.func @transform_2(%arg0: i32) -> (i32, i32, i32) {
    %c0_i32 = arith.constant 0 : i32
    %c0_i32_0 = arith.constant 0 : i32
    %c0_i32_1 = arith.constant 0 : i32
    %c0_i32_2 = arith.constant 0 : i32
    return %c0_i32, %c0_i32_0, %c0_i32_1 : i32, i32, i32
  }
  func.func @transform_3(%arg0: i32) -> (i32, i32) {
    %c0_i32 = arith.constant 0 : i32
    %c0_i32_0 = arith.constant 0 : i32
    %c0_i32_1 = arith.constant 0 : i32
    return %c0_i32, %c0_i32_0 : i32, i32
  }
  func.func @transform_4(%arg0: i32) -> (i32, i32, i32, i32) {
    %c0_i32 = arith.constant 0 : i32
    %c0_i32_0 = arith.constant 0 : i32
    %c0_i32_1 = arith.constant 0 : i32
    %c0_i32_2 = arith.constant 0 : i32
    %c0_i32_3 = arith.constant 0 : i32
    return %c0_i32, %c0_i32_0, %c0_i32_1, %c0_i32_2 : i32, i32, i32, i32
  }
  func.func @transform_5(%arg0: i32) -> (i32, i32) {
    %c0_i32 = arith.constant 0 : i32
    %c0_i32_0 = arith.constant 0 : i32
    %c0_i32_1 = arith.constant 0 : i32
    return %c0_i32, %c0_i32_0 : i32, i32
  }
  func.func @transform_6(%arg0: i32) -> (i32, i32, i32, i32) {
    %c0_i32 = arith.constant 0 : i32
    %c0_i32_0 = arith.constant 0 : i32
    %c0_i32_1 = arith.constant 0 : i32
    %c0_i32_2 = arith.constant 0 : i32
    %c0_i32_3 = arith.constant 0 : i32
    return %c0_i32, %c0_i32_0, %c0_i32_1, %c0_i32_2 : i32, i32, i32, i32
  }
  func.func @transform_7(%arg0: i32) -> (i32, i32) {
    %c0_i32 = arith.constant 0 : i32
    %c0_i32_0 = arith.constant 0 : i32
    %c0_i32_1 = arith.constant 0 : i32
    return %c0_i32, %c0_i32_0 : i32, i32
  }
  func.func @transform_8(%arg0: i32) -> (i32, i32, i32, i32) {
    %c0_i32 = arith.constant 0 : i32
    %c0_i32_0 = arith.constant 0 : i32
    %c0_i32_1 = arith.constant 0 : i32
    %c0_i32_2 = arith.constant 0 : i32
    return %arg0, %c0_i32, %c0_i32_0, %c0_i32_1 : i32, i32, i32, i32
  }
}

</mosaic_0001>

<bundles_post_ra>
// kernel: tpu_custom_call.1
= control target key start
LH: loop header
LB: loop body
LE: loop exit
PB: predicated region body
PF: predicated region fallthrough
CT: control target
= control target key end

     0   :  { %s11354_s27 = smov 0   ;;  %s13511_s0 = inlined_call_operand.vmem [shape: f32[2,16,16,4], index: 0, kind: input, shape index: {}]   ;;  %s13512_s1 = inlined_call_operand.vmem [shape: f32[2,8,8,8], index: 1, kind: input, shape index: {}]   ;;  %s13513_s2 = inlined_call_operand.vmem [shape: bf16[4,8,4], index: 2, kind: input, shape index: {}]   ;;  %s13514_s3 = inlined_call_operand.vmem [shape: f32[1,4], index: 3, kind: input, shape index: {}]   ;;  %s13515_s4 = inlined_call_operand.vmem [shape: bf16[3,3,8,4], index: 4, kind: input, shape index: {}]   ;;  %s13516_s5 = inlined_call_operand.vmem [shape: f32[1,4], index: 5, kind: input, shape index: {}]   ;;  %s13517_s6 = inlined_call_operand.vmem [shape: bf16[3,3,4,4], index: 6, kind: input, shape index: {}]   ;;  %s13518_s7 = inlined_call_operand.vmem [shape: f32[1,4], index: 7, kind: input, shape index: {}]   ;;  %s13519_s8 = inlined_call_operand.vmem [shape: f32[2,16,16,4], index: 8, kind: output, shape index: {}]  }
   0x1 LB: > { %s9363_s28 = sadd.s32 4294967295, %s11303_s27   ;;  %p9367_p0 = scmp.ge.s32.totalorder %s11303_s27, 1  ;;  %s11303_s27 = sphi %s11354_s27, %s18_s27  }
   0x2   : > { %p272_p1 = scmp.lt.s32.totalorder %s11303_s27, 3 }
   0x4   : > { %p273_p2 = pnand %p9367_p0, %p272_p1 }
   0x5   : > { %v339_v0 = vld [vmem:[%s13513_s2] sm:$0xf] (!%p273_p2)  ;;  %vm360_vm0 = vcmask (!%p273_p2), 1043456   ;;  %v9379_v1 = vld [vmem:[%s13513_s2 + $0x4] sm:$0xf] (!%p273_p2)  ;;  %p311_p3 = scmp.lt.s32.totalorder (!%p273_p2), %s9363_s28, 1  ;;  %v441_v22 = vlaneseq (!%p273_p2) }
   0x6   : > { %276 = sbr.rel (%p273_p2) target bundleno = 2034 (0x7f2), region = 52  ;;  %11262 = vmatprep.subr.msk.bf16.mxu0 (!%p273_p2), %vm360_vm0, %v339_v0  ;;  %11263 = vmatprep.subr.msk.bf16.mxu1 (!%p273_p2), %vm360_vm0, %v9379_v1  ;;  %v362_v2 = vsel (!%p273_p2), %vm360_vm0, %v339_v0, 0  ;;  %v968_v3 = vsel (!%p273_p2), %vm360_vm0, %v9379_v1, 0  ;;  %v9385_v4 = vld [vmem:[%s13513_s2 + $0x8] sm:$0xf] (!%p273_p2)  ;;  %vm347_vm1 = vcmask (!%p273_p2), 64512  }
   0x7   : > { %10035 = vmatpush3.bf16.msra.mxu0 (!%p273_p2), %v362_v2  ;;  %10045 = vmatpush3.bf16.msra.mxu1 (!%p273_p2), %v968_v3  ;;  %v9391_v5 = vld [vmem:[%s13513_s2 + $0xc] sm:$0xf] (!%p273_p2)  ;;  %v1573_v14 = vsel (!%p273_p2), %vm360_vm0, %v9385_v4, 0  ;;  %v11305_v20 = vmov (!%p273_p2), 1966171168   ;;  %v442_v26 = vshrl.u32 (!%p273_p2), %v441_v22, 7 }
   0x8   : > { %11264 = vmatprep.subr.msk.bf16.mxu0 (!%p273_p2), %vm360_vm0, %v9385_v4  ;;  %11265 = vmatprep.subr.msk.bf16.mxu1 (!%p273_p2), %vm360_vm0, %v9391_v5  ;;  %v2179_v15 = vsel (!%p273_p2), %vm360_vm0, %v9391_v5, 0  ;;  %v439_v21 = vunpack.c.l.s4 (!%p273_p2), %v11305_v20  ;;  %v11306_v23 = vmov (!%p273_p2), 1983009808   ;;  %v11407_v27 = vld [vmem:[%s13514_s3] ss:$0 sm:$0xff] (!%p273_p2)  ;;  %vm893_vm2 = vcmask (!%p273_p2), 24576  }
   0x9   : > { %v3144_v24 = vunpack.c.l.s4 (!%p273_p2), %v11306_v23  ;;  %s11307_s25 = smov (!%p273_p2), 4   ;;  %vm2980_vm3 = vcmask (!%p273_p2), 31744   ;;  %vm2910_vm4 = vcmask (!%p273_p2), 57344   ;;  %vm2904_vm5 = vcmask (!%p273_p2), 58368  }
   0xa   : > { %v440_v25 = vunpack.c.0.s8 (!%p273_p2), %v439_v21  ;;  %vm3781_vm6 = vcmask (!%p273_p2), 64544   ;;  %vm6682_vm7 = vcmask (!%p273_p2), 1041408   ;;  %vm6502_vm8 = vcmask (!%p273_p2), 25600  }
   0xb   : > { %v3145_v28 = vunpack.c.0.s8 (!%p273_p2), %v3144_v24 }
   0xc   : > { %v11409_v29 = vsub.s32 (!%p273_p2), %v440_v25, %v442_v26 }
   0xd   : > { %s13521_s28 = smov (!%p311_p3, %s9363_s28), 1  ;;  %v11421_v40 = vsub.s32 %v3145_v28, %v442_v26 }
   0xe   : > { %s9706_s15 = sshll.u32 %s13521_s28, 6  ;;  %s9705_s26 = sshll.u32 %s13521_s28, 8 }
   0xf   : > { %s320_s18 = scalar_lea.vmem %s13512_s1, %s9706_s15  ;;  %s12074_s9 = scalar_lea.vmem %s13511_s0, %s9705_s26 }
  0x10   : > { %v327_v6 = vld [vmem:[%s320_s18] sm:$0xff]  ;;  %v328_v7 = vld [vmem:[%s320_s18 + $0x8] sm:$0xff]  ;;  %v329_v8 = vld [vmem:[%s320_s18 + $0x10] sm:$0xff]  ;;  %s13411_s12 = scalar_lea.vmem %s13519_s8, %s9705_s26 }
  0x11   : > { %v335_v9 = vpack.c.bf16 %v328_v7, %v327_v6  ;;  %v330_v10 = vld [vmem:[%s320_s18 + $0x18] sm:$0xff]  ;;  %v331_v11 = vld [vmem:[%s320_s18 + $0x20] sm:$0xff]  ;;  %v332_v12 = vld [vmem:[%s320_s18 + $0x28] sm:$0xff] }
  0x12   : > { %v336_v13 = vpack.c.bf16 %v330_v10, %v329_v8  ;;  %v337_v16 = vpack.c.bf16 %v332_v12, %v331_v11  ;;  %v333_v17 = vld [vmem:[%s320_s18 + $0x30] sm:$0xff]  ;;  %v334_v18 = vld [vmem:[%s320_s18 + $0x38] sm:$0xff] }
  0x13   : > { %10036 = vmatprep.mubr.msk.bf16.mxu0 %vm347_vm1, %v335_v9  ;;  %10046 = vmatprep.mubr.msk.bf16.mxu1 %vm347_vm1, %v335_v9  ;;  %v338_v19 = vpack.c.bf16 %v334_v18, %v333_v17 }
  0x14   : > { %10037 = vmatmul.mubr.msk.bf16.vlgmr.msra.gmra.mrb[0].mxu0 %vm347_vm1, %v336_v13  ;;  %10047 = vmatmul.mubr.msk.bf16.vlgmr.msra.gmra.mrb[0].mxu1 %vm347_vm1, %v336_v13 }
  0x15   : > { %10055 = vmatpush3.bf16.msra.mxu0 %v1573_v14  ;;  %10065 = vmatpush3.bf16.msra.mxu1 %v2179_v15 }
  0x16   : > { %10040 = vmatprep.mubr.msk.bf16.mxu0 %vm347_vm1, %v337_v16  ;;  %10050 = vmatprep.mubr.msk.bf16.mxu1 %vm347_vm1, %v337_v16 }
  0x1c   : > { %10041 = vmatmul.mubr.msk.bf16.gmra.mrb[4].mxu0 %vm347_vm1, %v338_v19  ;;  %10051 = vmatmul.mubr.msk.bf16.gmra.mrb[4].mxu1 %vm347_vm1, %v338_v19 }
  0x1d   : > { %10056 = vmatprep.mubr.msk.bf16.mxu0 %vm347_vm1, %v335_v9  ;;  %10066 = vmatprep.mubr.msk.bf16.mxu1 %vm347_vm1, %v335_v9 }
  0x24   : > { %10057 = vmatmul.mubr.msk.bf16.vlgmr.msra.gmra.mrb[8].mxu0 %vm347_vm1, %v336_v13  ;;  %10067 = vmatmul.mubr.msk.bf16.vlgmr.msra.gmra.mrb[8].mxu1 %vm347_vm1, %v336_v13 }
  0x25   : > { %10060 = vmatprep.mubr.msk.bf16.mxu0 %vm347_vm1, %v337_v16  ;;  %10070 = vmatprep.mubr.msk.bf16.mxu1 %vm347_vm1, %v337_v16 }
  0x2c   : > { %10061 = vmatmul.mubr.msk.bf16.gmra.mrb[12].mxu0 %vm347_vm1, %v338_v19  ;;  %10071 = vmatmul.mubr.msk.bf16.gmra.mrb[12].mxu1 %vm347_vm1, %v338_v19 }
  0xe7   : > { %v10038_v30 = vpop.f32.mrb[0].mxu0  ;;  %v10048_v31 = vpop.f32.mrb[0].mxu1 }
  0xe8   : > { %v407_v32 = vadd.f32 %v10038_v30, %v11407_v27  ;;  %v1013_v33 = vadd.f32 %v10048_v31, %v11407_v27  ;;  %v398_v34 = vpop.f32.mrb[1].mxu0  ;;  %v1004_v35 = vpop.f32.mrb[1].mxu1 }
  0xe9   : > { %v399_v36 = vadd.f32 %v11407_v27, %v398_v34  ;;  %v11415_v37 = vadd.f32 %v11407_v27, %v1004_v35  ;;  %v11417_v38 = vpop.f32.mrb[2].mxu0  ;;  %v11419_v39 = vpop.f32.mrb[2].mxu1 }
  0xea   : > { %v535_v41 = vcombine.high %v407_v32, %v407_v32  ;;  %v542_v42 = vrot.slane %v407_v32, %v11409_v29  ;;  %v1141_v43 = vcombine.high %v1013_v33, %v1013_v33  ;;  %v1148_v44 = vrot.slane %v1013_v33, %v11409_v29  ;;  %v11425_v45 = vpop.f32.mrb[3].mxu0  ;;  %v11427_v46 = vpop.f32.mrb[3].mxu1 }
  0xeb   : > { %v437_v47 = vcombine.high %v399_v36, %v399_v36  ;;  %v444_v48 = vrot.slane %v399_v36, %v11409_v29  ;;  %v1043_v49 = vcombine.high %v11415_v37, %v11415_v37  ;;  %v11434_v50 = vrot.slane %v11415_v37, %v11409_v29 }
  0xec   : > { %v549_v51 = vrot.slane %v535_v41, %v11409_v29  ;;  %v550_v52 = vcombine.high %v542_v42, %v542_v42  ;;  %v558_v53 = vrot.slane %v542_v42, %v11409_v29  ;;  %v1155_v54 = vrot.slane %v1141_v43, %v11409_v29 }
  0xed   : > { %v1156_v55 = vcombine.high %v1148_v44, %v1148_v44  ;;  %v1164_v56 = vrot.slane %v1148_v44, %v11409_v29  ;;  %v451_v57 = vrot.slane %v437_v47, %v11409_v29  ;;  %v452_v58 = vcombine.high %v444_v48, %v444_v48 }
  0xee   : > { %v551_v59 = vcombine.high %v549_v51, %v549_v51  ;;  %v565_v60 = vrot.slane %v549_v51, %v11409_v29  ;;  %v572_v61 = vrot.slane %v550_v52, %v11409_v29  ;;  %v580_v62 = vcombine.high %v558_v53, %v558_v53  ;;  %910 = vst.msk [vmem:[#allocation2 + $0x40] sm:$0x1] %vm893_vm2, %v558_v53 }
  0xef   : > { %v1157_v63 = vcombine.high %v1155_v54, %v1155_v54  ;;  %v1171_v0 = vrot.slane %v1155_v54, %v11409_v29  ;;  %v1178_v1 = vrot.slane %v1156_v55, %v11409_v29  ;;  %v1186_v2 = vcombine.high %v1164_v56, %v1164_v56  ;;  %1515 = vst.msk [vmem:[#allocation2 + $0x41] sm:$0x1] %vm893_vm2, %v1164_v56  ;;  %v11447_v3 = vpop.f32.mrb[4].mxu0  ;;  %v11449_v4 = vpop.f32.mrb[4].mxu1 }
  0xf0   : > { %v579_v5 = vrot.slane %v551_v59, %v11409_v29  ;;  %v581_v6 = vcombine.high %v565_v60, %v565_v60  ;;  %v582_v7 = vcombine.high %v572_v61, %v572_v61  ;;  %911 = vst.msk [vmem:[#allocation2 + $0x42] sm:$0x1] %vm893_vm2, %v572_v61  ;;  %912 = vst.msk [vmem:[#allocation2 + $0x44] sm:$0x1] %vm893_vm2, %v580_v62  ;;  %v11455_v9 = vpop.f32.mrb[5].mxu0  ;;  %v11457_v10 = vpop.f32.mrb[5].mxu1 }
  0xf1   : > { %914 = vst.msk [vmem:[#allocation2 + $0x48] sm:$0x1] %vm893_vm2, %v565_v60  ;;  %v453_v8 = vcombine.high %v451_v57, %v451_v57  ;;  %v1185_v11 = vrot.slane %v1157_v63, %v11409_v29  ;;  %v1187_v12 = vcombine.high %v1171_v0, %v1171_v0  ;;  %v1188_v13 = vcombine.high %v1178_v1, %v1178_v1  ;;  %v11464_v15 = vpop.f32.mrb[6].mxu0  ;;  %v11466_v16 = vpop.f32.mrb[6].mxu1 }
  0xf2   : > { %1516 = vst.msk [vmem:[#allocation2 + $0x43] sm:$0x1] %vm893_vm2, %v1178_v1  ;;  %1517 = vst.msk [vmem:[#allocation2 + $0x45] sm:$0x1] %vm893_vm2, %v1186_v2  ;;  %v460_v14 = vrot.slane %v444_v48, %v11409_v29  ;;  %v583_v17 = vcombine.high %v579_v5, %v579_v5  ;;  %v467_v18 = vrot.slane %v451_v57, %v11409_v29  ;;  %v11474_v21 = vpop.f32.mrb[7].mxu0  ;;  %v11476_v22 = vpop.f32.mrb[7].mxu1 }
  0xf3   : > { %1519 = vst.msk [vmem:[#allocation2 + $0x49] sm:$0x1] %vm893_vm2, %v1171_v0  ;;  %913 = vst.msk [vmem:[#allocation2 + $0x46] sm:$0x1] %vm893_vm2, %v582_v7  ;;  %v474_v19 = vrot.slane %v452_v58, %v11409_v29  ;;  %v481_v20 = vrot.slane %v453_v8, %v11409_v29  ;;  %v1189_v23 = vcombine.high %v1185_v11, %v1185_v11 }
  0xf4   : > { %915 = vst.msk [vmem:[#allocation2 + $0x4a] sm:$0x1] %vm893_vm2, %v579_v5  ;;  %916 = vst.msk [vmem:[#allocation2 + $0x4c] sm:$0x1] %vm893_vm2, %v581_v6  ;;  %v482_v24 = vcombine.high %v460_v14, %v460_v14  ;;  %v1057_v25 = vrot.slane %v1043_v49, %v11409_v29  ;;  %v1058_v26 = vcombine.high %v11434_v50, %v11434_v50 }
  0xf5   : > { %1518 = vst.msk [vmem:[#allocation2 + $0x47] sm:$0x1] %vm893_vm2, %v1188_v13  ;;  %1520 = vst.msk [vmem:[#allocation2 + $0x4b] sm:$0x1] %vm893_vm2, %v1185_v11  ;;  %v483_v28 = vcombine.high %v467_v18, %v467_v18  ;;  %v484_v30 = vcombine.high %v474_v19, %v474_v19  ;;  %v485_v31 = vcombine.high %v481_v20, %v481_v20 }
  0xf6   : > { %1521 = vst.msk [vmem:[#allocation2 + $0x4d] sm:$0x1] %vm893_vm2, %v1187_v12  ;;  %894 = vst.msk [vmem:[#allocation2] sm:$0x1] %vm893_vm2, %v460_v14  ;;  %v1066_v32 = vrot.slane %v11434_v50, %v11409_v29  ;;  %v1059_v33 = vcombine.high %v1057_v25, %v1057_v25  ;;  %v1073_v34 = vrot.slane %v1057_v25, %v11409_v29 }
  0xf7   : > { %917 = vst.msk [vmem:[#allocation2 + $0x4e] sm:$0x1] %vm893_vm2, %v583_v17  ;;  %895 = vst.msk [vmem:[#allocation2 + $0x2] sm:$0x1] %vm893_vm2, %v474_v19  ;;  %v1080_v35 = vrot.slane %v1058_v26, %v11409_v29  ;;  %v410_v36 = vadd.f32 %v11417_v38, %v11407_v27  ;;  %v1016_v41 = vadd.f32 %v11419_v39, %v11407_v27  ;;  %v11512_v49 = vpop.f32.mrb[8].mxu0  ;;  %v11514_v50 = vpop.f32.mrb[8].mxu1 }
  0xf8   : > { %898 = vst.msk [vmem:[#allocation2 + $0x8] sm:$0x1] %vm893_vm2, %v467_v18  ;;  %899 = vst.msk [vmem:[#allocation2 + $0xa] sm:$0x1] %vm893_vm2, %v481_v20  ;;  %v1088_v37 = vcombine.high %v1066_v32, %v1066_v32  ;;  %v402_v42 = vadd.f32 %v11407_v27, %v11425_v45  ;;  %v11507_v43 = vadd.f32 %v11407_v27, %v11427_v46  ;;  %v11519_v52 = vpop.f32.mrb[9].mxu0  ;;  %v11521_v53 = vpop.f32.mrb[9].mxu1 }
  0xf9   : > { %1522 = vst.msk [vmem:[#allocation2 + $0x4f] sm:$0x1] %vm893_vm2, %v1189_v23  ;;  %896 = vst.msk [vmem:[#allocation2 + $0x4] sm:$0x1] %vm893_vm2, %v482_v24  ;;  %v1087_v38 = vrot.slane %v1059_v33, %v11409_v29  ;;  %v1089_v44 = vcombine.high %v1073_v34, %v1073_v34  ;;  %v1090_v47 = vcombine.high %v1080_v35, %v1080_v35  ;;  %v11530_v58 = vpop.f32.mrb[10].mxu0  ;;  %v11532_v59 = vpop.f32.mrb[10].mxu1 }
  0xfa   : > { %897 = vst.msk [vmem:[#allocation2 + $0x6] sm:$0x1] %vm893_vm2, %v484_v30  ;;  %900 = vst.msk [vmem:[#allocation2 + $0xc] sm:$0x1] %vm893_vm2, %v483_v28  ;;  %v584_v48 = vcombine.high %v410_v36, %v410_v36  ;;  %v591_v39 = vrot.slane %v410_v36, %v11409_v29  ;;  %v1190_v45 = vcombine.high %v1016_v41, %v1016_v41  ;;  %v11536_v0 = vpop.f32.mrb[11].mxu0  ;;  %v11538_v1 = vpop.f32.mrb[11].mxu1 }
  0xfb   : > { %901 = vst.msk [vmem:[#allocation2 + $0xe] sm:$0x1] %vm893_vm2, %v485_v31  ;;  %1499 = vst.msk [vmem:[#allocation2 + $0x1] sm:$0x1] %vm893_vm2, %v1066_v32  ;;  %v1197_v46 = vrot.slane %v1016_v41, %v11409_v29  ;;  %v486_v51 = vcombine.high %v402_v42, %v402_v42  ;;  %v1091_v54 = vcombine.high %v1087_v38, %v1087_v38 }
  0xfc   : > { %1500 = vst.msk [vmem:[#allocation2 + $0x3] sm:$0x1] %vm893_vm2, %v1080_v35  ;;  %1503 = vst.msk [vmem:[#allocation2 + $0x9] sm:$0x1] %vm893_vm2, %v1073_v34  ;;  %v598_v55 = vrot.slane %v584_v48, %v11409_v29  ;;  %v493_v56 = vrot.slane %v402_v42, %v11409_v29  ;;  %v1092_v57 = vcombine.high %v11507_v43, %v11507_v43 }
  0xfd   : > { %1501 = vst.msk [vmem:[#allocation2 + $0x5] sm:$0x1] %vm893_vm2, %v1088_v37  ;;  %1502 = vst.msk [vmem:[#allocation2 + $0x7] sm:$0x1] %vm893_vm2, %v1090_v47  ;;  %v599_v60 = vcombine.high %v591_v39, %v591_v39  ;;  %v607_v61 = vrot.slane %v591_v39, %v11409_v29  ;;  %v1204_v62 = vrot.slane %v1190_v45, %v11409_v29 }
  0xfe   : > { %1504 = vst.msk [vmem:[#allocation2 + $0xb] sm:$0x1] %vm893_vm2, %v1087_v38  ;;  %1505 = vst.msk [vmem:[#allocation2 + $0xd] sm:$0x1] %vm893_vm2, %v1089_v44  ;;  %v1205_v63 = vcombine.high %v1197_v46, %v1197_v46  ;;  %v600_v2 = vcombine.high %v598_v55, %v598_v55  ;;  %v614_v5 = vrot.slane %v598_v55, %v11409_v29 }
  0xff   : > { %1506 = vst.msk [vmem:[#allocation2 + $0xf] sm:$0x1] %vm893_vm2, %v1091_v54  ;;  %v1213_v6 = vrot.slane %v1197_v46, %v11409_v29  ;;  %v500_v7 = vrot.slane %v486_v51, %v11409_v29  ;;  %v621_v8 = vrot.slane %v599_v60, %v11409_v29  ;;  %v629_v11 = vcombine.high %v607_v61, %v607_v61  ;;  %v11560_v32 = vpop.f32.mrb[12].mxu0  ;;  %v11562_v33 = vpop.f32.mrb[12].mxu1 }
 0x100   : > { %918 = vst.msk [vmem:[#allocation2 + $0x60] sm:$0x1] %vm893_vm2, %v607_v61  ;;  %v1206_v12 = vcombine.high %v1204_v62, %v1204_v62  ;;  %v1220_v13 = vrot.slane %v1204_v62, %v11409_v29  ;;  %v628_v14 = vrot.slane %v600_v2, %v11409_v29  ;;  %v630_v17 = vcombine.high %v614_v5, %v614_v5  ;;  %v11578_v47 = vpop.f32.mrb[13].mxu0  ;;  %v11580_v48 = vpop.f32.mrb[13].mxu1 }
 0x101   : > { %922 = vst.msk [vmem:[#allocation2 + $0x68] sm:$0x1] %vm893_vm2, %v614_v5  ;;  %v1227_v18 = vrot.slane %v1205_v63, %v11409_v29  ;;  %v1235_v19 = vcombine.high %v1213_v6, %v1213_v6  ;;  %1523 = vst.msk [vmem:[#allocation2 + $0x61] sm:$0x1] %vm893_vm2, %v1213_v6  ;;  %v631_v20 = vcombine.high %v621_v8, %v621_v8  ;;  %v11586_v51 = vpop.f32.mrb[14].mxu0  ;;  %v11588_v54 = vpop.f32.mrb[14].mxu1 }
 0x102   : > { %919 = vst.msk [vmem:[#allocation2 + $0x62] sm:$0x1] %vm893_vm2, %v621_v8  ;;  %920 = vst.msk [vmem:[#allocation2 + $0x64] sm:$0x1] %vm893_vm2, %v629_v11  ;;  %v1234_v23 = vrot.slane %v1206_v12, %v11409_v29  ;;  %v1236_v24 = vcombine.high %v1220_v13, %v1220_v13  ;;  %v501_v25 = vcombine.high %v493_v56, %v493_v56  ;;  %v11593_v60 = vpop.f32.mrb[15].mxu0  ;;  %v11595_v61 = vpop.f32.mrb[15].mxu1 }
 0x103   : > { %1527 = vst.msk [vmem:[#allocation2 + $0x69] sm:$0x1] %vm893_vm2, %v1220_v13  ;;  %v632_v26 = vcombine.high %v628_v14, %v628_v14  ;;  %923 = vst.msk [vmem:[#allocation2 + $0x6a] sm:$0x1] %vm893_vm2, %v628_v14  ;;  %v1237_v28 = vcombine.high %v1227_v18, %v1227_v18  ;;  %v502_v30 = vcombine.high %v500_v7, %v500_v7 }
 0x104   : > { %924 = vst.msk [vmem:[#allocation2 + $0x6c] sm:$0x1] %vm893_vm2, %v630_v17  ;;  %1524 = vst.msk [vmem:[#allocation2 + $0x63] sm:$0x1] %vm893_vm2, %v1227_v18  ;;  %v509_v31 = vrot.slane %v493_v56, %v11409_v29  ;;  %v1238_v34 = vcombine.high %v1234_v23, %v1234_v23  ;;  %v516_v35 = vrot.slane %v500_v7, %v11409_v29 }
 0x105   : > { %1525 = vst.msk [vmem:[#allocation2 + $0x65] sm:$0x1] %vm893_vm2, %v1235_v19  ;;  %921 = vst.msk [vmem:[#allocation2 + $0x66] sm:$0x1] %vm893_vm2, %v631_v20  ;;  %v523_v36 = vrot.slane %v501_v25, %v11409_v29  ;;  %v1099_v37 = vrot.slane %v11507_v43, %v11409_v29  ;;  %v530_v41 = vrot.slane %v502_v30, %v11409_v29 }
 0x106   : > { %1528 = vst.msk [vmem:[#allocation2 + $0x6b] sm:$0x1] %vm893_vm2, %v1234_v23  ;;  %1529 = vst.msk [vmem:[#allocation2 + $0x6d] sm:$0x1] %vm893_vm2, %v1236_v24  ;;  %v531_v42 = vcombine.high %v509_v31, %v509_v31  ;;  %v1106_v38 = vrot.slane %v1092_v57, %v11409_v29  ;;  %v423_v44 = vadd.f32 %v11447_v3, %v11407_v27 }
 0x107   : > { %925 = vst.msk [vmem:[#allocation2 + $0x6e] sm:$0x1] %vm893_vm2, %v632_v26  ;;  %1526 = vst.msk [vmem:[#allocation2 + $0x67] sm:$0x1] %vm893_vm2, %v1237_v28  ;;  %v532_v43 = vcombine.high %v516_v35, %v516_v35  ;;  %v533_v39 = vcombine.high %v523_v36, %v523_v36  ;;  %v1107_v45 = vcombine.high %v1099_v37, %v1099_v37 }
 0x108   : > { %902 = vst.msk [vmem:[#allocation2 + $0x20] sm:$0x1] %vm893_vm2, %v509_v31  ;;  %1530 = vst.msk [vmem:[#allocation2 + $0x6f] sm:$0x1] %vm893_vm2, %v1238_v34  ;;  %v1115_v46 = vrot.slane %v1099_v37, %v11409_v29  ;;  %v534_v3 = vcombine.high %v530_v41, %v530_v41  ;;  %v1108_v55 = vcombine.high %v1106_v38, %v1106_v38 }
 0x109   : > { %903 = vst.msk [vmem:[#allocation2 + $0x22] sm:$0x1] %vm893_vm2, %v523_v36  ;;  %906 = vst.msk [vmem:[#allocation2 + $0x28] sm:$0x1] %vm893_vm2, %v516_v35  ;;  %v1122_v56 = vrot.slane %v1106_v38, %v11409_v29  ;;  %v731_v57 = vcombine.high %v423_v44, %v423_v44  ;;  %v1129_v62 = vrot.slane %v1107_v45, %v11409_v29 }
 0x10a   : > { %904 = vst.msk [vmem:[#allocation2 + $0x24] sm:$0x1] %vm893_vm2, %v531_v42  ;;  %907 = vst.msk [vmem:[#allocation2 + $0x2a] sm:$0x1] %vm893_vm2, %v530_v41  ;;  %v1137_v63 = vcombine.high %v1115_v46, %v1115_v46  ;;  %v738_v2 = vrot.slane %v423_v44, %v11409_v29  ;;  %v1029_v5 = vadd.f32 %v11449_v4, %v11407_v27 }
 0x10b   : > { %905 = vst.msk [vmem:[#allocation2 + $0x26] sm:$0x1] %vm893_vm2, %v533_v39  ;;  %908 = vst.msk [vmem:[#allocation2 + $0x2c] sm:$0x1] %vm893_vm2, %v532_v43  ;;  %v1136_v6 = vrot.slane %v1108_v55, %v11409_v29  ;;  %v1138_v7 = vcombine.high %v1122_v56, %v1122_v56  ;;  %v745_v8 = vrot.slane %v731_v57, %v11409_v29 }
 0x10c   : > { %1507 = vst.msk [vmem:[#allocation2 + $0x21] sm:$0x1] %vm893_vm2, %v1115_v46  ;;  %909 = vst.msk [vmem:[#allocation2 + $0x2e] sm:$0x1] %vm893_vm2, %v534_v3  ;;  %v415_v11 = vadd.f32 %v11407_v27, %v11455_v9  ;;  %v1139_v12 = vcombine.high %v1129_v62, %v1129_v62  ;;  %v746_v13 = vcombine.high %v738_v2, %v738_v2 }
 0x10d   : > { %1511 = vst.msk [vmem:[#allocation2 + $0x29] sm:$0x1] %vm893_vm2, %v1122_v56  ;;  %1508 = vst.msk [vmem:[#allocation2 + $0x23] sm:$0x1] %vm893_vm2, %v1129_v62  ;;  %v754_v4 = vrot.slane %v738_v2, %v11409_v29  ;;  %v1337_v14 = vcombine.high %v1029_v5, %v1029_v5  ;;  %v1140_v17 = vcombine.high %v1136_v6, %v1136_v6 }
 0x10e   : > { %1509 = vst.msk [vmem:[#allocation2 + $0x25] sm:$0x1] %vm893_vm2, %v1137_v63  ;;  %1512 = vst.msk [vmem:[#allocation2 + $0x2b] sm:$0x1] %vm893_vm2, %v1136_v6  ;;  %v747_v18 = vcombine.high %v745_v8, %v745_v8  ;;  %v761_v19 = vrot.slane %v745_v8, %v11409_v29  ;;  %v1344_v20 = vrot.slane %v1029_v5, %v11409_v29 }
 0x10f   : > { %1513 = vst.msk [vmem:[#allocation2 + $0x2d] sm:$0x1] %vm893_vm2, %v1138_v7  ;;  %1510 = vst.msk [vmem:[#allocation2 + $0x27] sm:$0x1] %vm893_vm2, %v1139_v12  ;;  %v768_v9 = vrot.slane %v746_v13, %v11409_v29  ;;  %v776_v23 = vcombine.high %v754_v4, %v754_v4  ;;  %v1351_v24 = vrot.slane %v1337_v14, %v11409_v29 }
 0x110   : > { %942 = vst.msk [vmem:[#allocation2 + $0xc0] sm:$0x1] %vm893_vm2, %v754_v4  ;;  %v633_v25 = vcombine.high %v415_v11, %v415_v11  ;;  %1514 = vst.msk [vmem:[#allocation2 + $0x2f] sm:$0x1] %vm893_vm2, %v1140_v17  ;;  %v775_v26 = vrot.slane %v747_v18, %v11409_v29  ;;  %v777_v28 = vcombine.high %v761_v19, %v761_v19 }
 0x111   : > { %946 = vst.msk [vmem:[#allocation2 + $0xc8] sm:$0x1] %vm893_vm2, %v761_v19  ;;  %v1352_v30 = vcombine.high %v1344_v20, %v1344_v20  ;;  %v1360_v31 = vrot.slane %v1344_v20, %v11409_v29  ;;  %v778_v34 = vcombine.high %v768_v9, %v768_v9  ;;  %943 = vst.msk [vmem:[#allocation2 + $0xc2] sm:$0x1] %vm893_vm2, %v768_v9 }
 0x112   : > { %944 = vst.msk [vmem:[#allocation2 + $0xc4] sm:$0x1] %vm893_vm2, %v776_v23  ;;  %v1353_v35 = vcombine.high %v1351_v24, %v1351_v24  ;;  %v1367_v36 = vrot.slane %v1351_v24, %v11409_v29  ;;  %v640_v37 = vrot.slane %v415_v11, %v11409_v29  ;;  %v779_v41 = vcombine.high %v775_v26, %v775_v26 }
 0x113   : > { %947 = vst.msk [vmem:[#allocation2 + $0xca] sm:$0x1] %vm893_vm2, %v775_v26  ;;  %948 = vst.msk [vmem:[#allocation2 + $0xcc] sm:$0x1] %vm893_vm2, %v777_v28  ;;  %v1374_v42 = vrot.slane %v1352_v30, %v11409_v29  ;;  %v1382_v38 = vcombine.high %v1360_v31, %v1360_v31  ;;  %v647_v44 = vrot.slane %v633_v25, %v11409_v29 }
 0x114   : > { %1547 = vst.msk [vmem:[#allocation2 + $0xc1] sm:$0x1] %vm893_vm2, %v1360_v31  ;;  %945 = vst.msk [vmem:[#allocation2 + $0xc6] sm:$0x1] %vm893_vm2, %v778_v34  ;;  %v1381_v43 = vrot.slane %v1353_v35, %v11409_v29  ;;  %v1383_v39 = vcombine.high %v1367_v36, %v1367_v36  ;;  %v648_v45 = vcombine.high %v640_v37, %v640_v37 }
 0x115   : > { %1551 = vst.msk [vmem:[#allocation2 + $0xc9] sm:$0x1] %vm893_vm2, %v1367_v36  ;;  %v656_v46 = vrot.slane %v640_v37, %v11409_v29  ;;  %949 = vst.msk [vmem:[#allocation2 + $0xce] sm:$0x1] %vm893_vm2, %v779_v41  ;;  %v1384_v3 = vcombine.high %v1374_v42, %v1374_v42  ;;  %v649_v55 = vcombine.high %v647_v44, %v647_v44 }
 0x116   : > { %1548 = vst.msk [vmem:[#allocation2 + $0xc3] sm:$0x1] %vm893_vm2, %v1374_v42  ;;  %1549 = vst.msk [vmem:[#allocation2 + $0xc5] sm:$0x1] %vm893_vm2, %v1382_v38  ;;  %v663_v56 = vrot.slane %v647_v44, %v11409_v29  ;;  %v1021_v57 = vadd.f32 %v11407_v27, %v11457_v10  ;;  %v1385_v62 = vcombine.high %v1381_v43, %v1381_v43 }
 0x117   : > { %1552 = vst.msk [vmem:[#allocation2 + $0xcb] sm:$0x1] %vm893_vm2, %v1381_v43  ;;  %1553 = vst.msk [vmem:[#allocation2 + $0xcd] sm:$0x1] %vm893_vm2, %v1383_v39  ;;  %v670_v63 = vrot.slane %v648_v45, %v11409_v29  ;;  %v678_v2 = vcombine.high %v656_v46, %v656_v46  ;;  %v426_v5 = vadd.f32 %v11464_v15, %v11407_v27 }
 0x118   : > { %926 = vst.msk [vmem:[#allocation2 + $0x80] sm:$0x1] %vm893_vm2, %v656_v46  ;;  %1550 = vst.msk [vmem:[#allocation2 + $0xc7] sm:$0x1] %vm893_vm2, %v1384_v3  ;;  %v677_v6 = vrot.slane %v649_v55, %v11409_v29  ;;  %v679_v7 = vcombine.high %v663_v56, %v663_v56  ;;  %v1239_v10 = vcombine.high %v1021_v57, %v1021_v57 }
 0x119   : > { %930 = vst.msk [vmem:[#allocation2 + $0x88] sm:$0x1] %vm893_vm2, %v663_v56  ;;  %v1246_v8 = vrot.slane %v1021_v57, %v11409_v29  ;;  %1554 = vst.msk [vmem:[#allocation2 + $0xcf] sm:$0x1] %vm893_vm2, %v1385_v62  ;;  %v680_v11 = vcombine.high %v670_v63, %v670_v63  ;;  %v780_v12 = vcombine.high %v426_v5, %v426_v5 }
 0x11a   : > { %927 = vst.msk [vmem:[#allocation2 + $0x82] sm:$0x1] %vm893_vm2, %v670_v63  ;;  %928 = vst.msk [vmem:[#allocation2 + $0x84] sm:$0x1] %vm893_vm2, %v678_v2  ;;  %v787_v15 = vrot.slane %v426_v5, %v11409_v29  ;;  %v1032_v13 = vadd.f32 %v11466_v16, %v11407_v27  ;;  %v681_v4 = vcombine.high %v677_v6, %v677_v6 }
 0x11b   : > { %931 = vst.msk [vmem:[#allocation2 + $0x8a] sm:$0x1] %vm893_vm2, %v677_v6  ;;  %932 = vst.msk [vmem:[#allocation2 + $0x8c] sm:$0x1] %vm893_vm2, %v679_v7  ;;  %v1253_v14 = vrot.slane %v1239_v10, %v11409_v29  ;;  %v1254_v17 = vcombine.high %v1246_v8, %v1246_v8  ;;  %v1262_v18 = vrot.slane %v1246_v8, %v11409_v29 }
 0x11c   : > { %929 = vst.msk [vmem:[#allocation2 + $0x86] sm:$0x1] %vm893_vm2, %v680_v11  ;;  %v794_v19 = vrot.slane %v780_v12, %v11409_v29  ;;  %v795_v20 = vcombine.high %v787_v15, %v787_v15  ;;  %v803_v9 = vrot.slane %v787_v15, %v11409_v29  ;;  %v1386_v23 = vcombine.high %v1032_v13, %v1032_v13 }
 0x11d   : > { %933 = vst.msk [vmem:[#allocation2 + $0x8e] sm:$0x1] %vm893_vm2, %v681_v4  ;;  %v1255_v16 = vcombine.high %v1253_v14, %v1253_v14  ;;  %v1269_v24 = vrot.slane %v1253_v14, %v11409_v29  ;;  %v1276_v25 = vrot.slane %v1254_v17, %v11409_v29  ;;  %v1284_v26 = vcombine.high %v1262_v18, %v1262_v18 }
 0x11e   : > { %1531 = vst.msk [vmem:[#allocation2 + $0x81] sm:$0x1] %vm893_vm2, %v1262_v18  ;;  %v796_v28 = vcombine.high %v794_v19, %v794_v19  ;;  %v810_v30 = vrot.slane %v794_v19, %v11409_v29  ;;  %v817_v31 = vrot.slane %v795_v20, %v11409_v29  ;;  %v825_v34 = vcombine.high %v803_v9, %v803_v9 }
 0x11f   : > { %950 = vst.msk [vmem:[#allocation2 + $0xe0] sm:$0x1] %vm893_vm2, %v803_v9  ;;  %v1283_v35 = vrot.slane %v1255_v16, %v11409_v29  ;;  %v1285_v36 = vcombine.high %v1269_v24, %v1269_v24  ;;  %v1286_v37 = vcombine.high %v1276_v25, %v1276_v25  ;;  %1532 = vst.msk [vmem:[#allocation2 + $0x83] sm:$0x1] %vm893_vm2, %v1276_v25 }
 0x120   : > { %1533 = vst.msk [vmem:[#allocation2 + $0x85] sm:$0x1] %vm893_vm2, %v1284_v26  ;;  %1535 = vst.msk [vmem:[#allocation2 + $0x89] sm:$0x1] %vm893_vm2, %v1269_v24  ;;  %v1393_v41 = vrot.slane %v1032_v13, %v11409_v29  ;;  %v824_v42 = vrot.slane %v796_v28, %v11409_v29  ;;  %v826_v38 = vcombine.high %v810_v30, %v810_v30 }
 0x121   : > { %v827_v44 = vcombine.high %v817_v31, %v817_v31  ;;  %951 = vst.msk [vmem:[#allocation2 + $0xe2] sm:$0x1] %vm893_vm2, %v817_v31  ;;  %952 = vst.msk [vmem:[#allocation2 + $0xe4] sm:$0x1] %vm893_vm2, %v825_v34  ;;  %v1400_v43 = vrot.slane %v1386_v23, %v11409_v29  ;;  %v1287_v39 = vcombine.high %v1283_v35, %v1283_v35 }
 0x122   : > { %954 = vst.msk [vmem:[#allocation2 + $0xe8] sm:$0x1] %vm893_vm2, %v810_v30  ;;  %1534 = vst.msk [vmem:[#allocation2 + $0x87] sm:$0x1] %vm893_vm2, %v1286_v37  ;;  %v1401_v45 = vcombine.high %v1393_v41, %v1393_v41  ;;  %v1409_v46 = vrot.slane %v1393_v41, %v11409_v29  ;;  %v418_v3 = vadd.f32 %v11407_v27, %v11474_v21 }
 0x123   : > { %1536 = vst.msk [vmem:[#allocation2 + $0x8b] sm:$0x1] %vm893_vm2, %v1283_v35  ;;  %1537 = vst.msk [vmem:[#allocation2 + $0x8d] sm:$0x1] %vm893_vm2, %v1285_v36  ;;  %v828_v55 = vcombine.high %v824_v42, %v824_v42  ;;  %v1402_v56 = vcombine.high %v1400_v43, %v1400_v43  ;;  %v1416_v57 = vrot.slane %v1400_v43, %v11409_v29 }
 0x124   : > { %953 = vst.msk [vmem:[#allocation2 + $0xe6] sm:$0x1] %vm893_vm2, %v827_v44  ;;  %955 = vst.msk [vmem:[#allocation2 + $0xea] sm:$0x1] %vm893_vm2, %v824_v42  ;;  %v1024_v62 = vadd.f32 %v11407_v27, %v11476_v22  ;;  %v1423_v63 = vrot.slane %v1401_v45, %v11409_v29  ;;  %v1431_v2 = vcombine.high %v1409_v46, %v1409_v46 }
 0x125   : > { %956 = vst.msk [vmem:[#allocation2 + $0xec] sm:$0x1] %vm893_vm2, %v826_v38  ;;  %1538 = vst.msk [vmem:[#allocation2 + $0x8f] sm:$0x1] %vm893_vm2, %v1287_v39  ;;  %v682_v21 = vcombine.high %v418_v3, %v418_v3  ;;  %v689_v5 = vrot.slane %v418_v3, %v11409_v29  ;;  %v1430_v6 = vrot.slane %v1402_v56, %v11409_v29 }
 0x126   : > { %1555 = vst.msk [vmem:[#allocation2 + $0xe1] sm:$0x1] %vm893_vm2, %v1409_v46  ;;  %957 = vst.msk [vmem:[#allocation2 + $0xee] sm:$0x1] %vm893_vm2, %v828_v55  ;;  %v1432_v7 = vcombine.high %v1416_v57, %v1416_v57  ;;  %v1288_v10 = vcombine.high %v1024_v62, %v1024_v62  ;;  %v1295_v22 = vrot.slane %v1024_v62, %v11409_v29 }
 0x127   : > { %1559 = vst.msk [vmem:[#allocation2 + $0xe9] sm:$0x1] %vm893_vm2, %v1416_v57  ;;  %v1433_v8 = vcombine.high %v1423_v63, %v1423_v63  ;;  %1556 = vst.msk [vmem:[#allocation2 + $0xe3] sm:$0x1] %vm893_vm2, %v1423_v63  ;;  %v696_v11 = vrot.slane %v682_v21, %v11409_v29  ;;  %v697_v12 = vcombine.high %v689_v5, %v689_v5 }
 0x128   : > { %1557 = vst.msk [vmem:[#allocation2 + $0xe5] sm:$0x1] %vm893_vm2, %v1431_v2  ;;  %v705_v15 = vrot.slane %v689_v5, %v11409_v29  ;;  %v1434_v13 = vcombine.high %v1430_v6, %v1430_v6  ;;  %1560 = vst.msk [vmem:[#allocation2 + $0xeb] sm:$0x1] %vm893_vm2, %v1430_v6  ;;  %v1302_v4 = vrot.slane %v1288_v10, %v11409_v29 }
 0x129   : > { %1561 = vst.msk [vmem:[#allocation2 + $0xed] sm:$0x1] %vm893_vm2, %v1432_v7  ;;  %v1303_v14 = vcombine.high %v1295_v22, %v1295_v22  ;;  %v1311_v17 = vrot.slane %v1295_v22, %v11409_v29  ;;  %1558 = vst.msk [vmem:[#allocation2 + $0xe7] sm:$0x1] %vm893_vm2, %v1433_v8  ;;  %v698_v18 = vcombine.high %v696_v11, %v696_v11 }
 0x12a   : > { %v712_v19 = vrot.slane %v696_v11, %v11409_v29  ;;  %v719_v20 = vrot.slane %v697_v12, %v11409_v29  ;;  %v727_v9 = vcombine.high %v705_v15, %v705_v15  ;;  %934 = vst.msk [vmem:[#allocation2 + $0xa0] sm:$0x1] %vm893_vm2, %v705_v15  ;;  %1562 = vst.msk [vmem:[#allocation2 + $0xef] sm:$0x1] %vm893_vm2, %v1434_v13 }
 0x12b   : > { %v1304_v23 = vcombine.high %v1302_v4, %v1302_v4  ;;  %v1318_v16 = vrot.slane %v1302_v4, %v11409_v29  ;;  %v1325_v24 = vrot.slane %v1303_v14, %v11409_v29  ;;  %v1333_v25 = vcombine.high %v1311_v17, %v1311_v17  ;;  %1539 = vst.msk [vmem:[#allocation2 + $0xa1] sm:$0x1] %vm893_vm2, %v1311_v17 }
 0x12c   : > { %v726_v26 = vrot.slane %v698_v18, %v11409_v29  ;;  %v728_v28 = vcombine.high %v712_v19, %v712_v19  ;;  %v729_v30 = vcombine.high %v719_v20, %v719_v20  ;;  %935 = vst.msk [vmem:[#allocation2 + $0xa2] sm:$0x1] %vm893_vm2, %v719_v20  ;;  %936 = vst.msk [vmem:[#allocation2 + $0xa4] sm:$0x1] %vm893_vm2, %v727_v9 }
 0x12d   : > { %938 = vst.msk [vmem:[#allocation2 + $0xa8] sm:$0x1] %vm893_vm2, %v712_v19  ;;  %v1618_v31 = vadd.f32 %v11512_v49, %v11407_v27  ;;  %v1332_v34 = vrot.slane %v1304_v23, %v11409_v29  ;;  %v1334_v35 = vcombine.high %v1318_v16, %v1318_v16  ;;  %v1335_v36 = vcombine.high %v1325_v24, %v1325_v24 }
 0x12e   : > { %1540 = vst.msk [vmem:[#allocation2 + $0xa3] sm:$0x1] %vm893_vm2, %v1325_v24  ;;  %1541 = vst.msk [vmem:[#allocation2 + $0xa5] sm:$0x1] %vm893_vm2, %v1333_v25  ;;  %v2224_v37 = vadd.f32 %v11514_v50, %v11407_v27  ;;  %v730_v41 = vcombine.high %v726_v26, %v726_v26  ;;  %v1610_v38 = vadd.f32 %v11407_v27, %v11519_v52 }
 0x12f   : > { %1543 = vst.msk [vmem:[#allocation2 + $0xa9] sm:$0x1] %vm893_vm2, %v1318_v16  ;;  %937 = vst.msk [vmem:[#allocation2 + $0xa6] sm:$0x1] %vm893_vm2, %v729_v30  ;;  %v1746_v49 = vcombine.high %v1618_v31, %v1618_v31  ;;  %v1753_v42 = vrot.slane %v1618_v31, %v11409_v29  ;;  %v1336_v44 = vcombine.high %v1332_v34, %v1332_v34 }
 0x130   : > { %939 = vst.msk [vmem:[#allocation2 + $0xaa] sm:$0x1] %vm893_vm2, %v726_v26  ;;  %940 = vst.msk [vmem:[#allocation2 + $0xac] sm:$0x1] %vm893_vm2, %v728_v28  ;;  %v2352_v50 = vcombine.high %v2224_v37, %v2224_v37  ;;  %v2359_v43 = vrot.slane %v2224_v37, %v11409_v29  ;;  %v2216_v39 = vadd.f32 %v11407_v27, %v11521_v53 }
 0x131   : > { %1542 = vst.msk [vmem:[#allocation2 + $0xa7] sm:$0x1] %vm893_vm2, %v1335_v36  ;;  %1544 = vst.msk [vmem:[#allocation2 + $0xab] sm:$0x1] %vm893_vm2, %v1332_v34  ;;  %v1760_v45 = vrot.slane %v1746_v49, %v11409_v29  ;;  %v1761_v46 = vcombine.high %v1753_v42, %v1753_v42  ;;  %v1769_v52 = vrot.slane %v1753_v42, %v11409_v29 }
 0x132   : > { %1545 = vst.msk [vmem:[#allocation2 + $0xad] sm:$0x1] %vm893_vm2, %v1334_v35  ;;  %941 = vst.msk [vmem:[#allocation2 + $0xae] sm:$0x1] %vm893_vm2, %v730_v41  ;;  %v1648_v3 = vcombine.high %v1610_v38, %v1610_v38  ;;  %v2366_v55 = vrot.slane %v2352_v50, %v11409_v29  ;;  %v2367_v56 = vcombine.high %v2359_v43, %v2359_v43 }
 0x133   : > { %1546 = vst.msk [vmem:[#allocation2 + $0xaf] sm:$0x1] %vm893_vm2, %v1336_v44  ;;  %v2375_v57 = vrot.slane %v2359_v43, %v11409_v29  ;;  %v1655_v62 = vrot.slane %v1610_v38, %v11409_v29  ;;  %v1762_v63 = vcombine.high %v1760_v45, %v1760_v45  ;;  %v1776_v53 = vrot.slane %v1760_v45, %v11409_v29 }
 0x134   : > { %v1783_v2 = vrot.slane %v1761_v46, %v11409_v29  ;;  %v1791_v21 = vcombine.high %v1769_v52, %v1769_v52  ;;  %2121 = vst.msk [vmem:[#allocation2 + $0x50] sm:$0x1] %vm893_vm2, %v1769_v52  ;;  %v2368_v5 = vcombine.high %v2366_v55, %v2366_v55  ;;  %v2382_v6 = vrot.slane %v2366_v55, %v11409_v29 }
 0x135   : > { %v2389_v7 = vrot.slane %v2367_v56, %v11409_v29  ;;  %v2397_v10 = vcombine.high %v2375_v57, %v2375_v57  ;;  %2726 = vst.msk [vmem:[#allocation2 + $0x51] sm:$0x1] %vm893_vm2, %v2375_v57  ;;  %v1790_v22 = vrot.slane %v1762_v63, %v11409_v29  ;;  %v1792_v8 = vcombine.high %v1776_v53, %v1776_v53 }
 0x136   : > { %v1793_v11 = vcombine.high %v1783_v2, %v1783_v2  ;;  %2122 = vst.msk [vmem:[#allocation2 + $0x52] sm:$0x1] %vm893_vm2, %v1783_v2  ;;  %2123 = vst.msk [vmem:[#allocation2 + $0x54] sm:$0x1] %vm893_vm2, %v1791_v21  ;;  %v1662_v12 = vrot.slane %v1648_v3, %v11409_v29  ;;  %v2396_v15 = vrot.slane %v2368_v5, %v11409_v29 }
 0x137   : > { %2125 = vst.msk [vmem:[#allocation2 + $0x58] sm:$0x1] %vm893_vm2, %v1776_v53  ;;  %v2398_v13 = vcombine.high %v2382_v6, %v2382_v6  ;;  %v2399_v4 = vcombine.high %v2389_v7, %v2389_v7  ;;  %2727 = vst.msk [vmem:[#allocation2 + $0x53] sm:$0x1] %vm893_vm2, %v2389_v7  ;;  %v1663_v14 = vcombine.high %v1655_v62, %v1655_v62 }
 0x138   : > { %2728 = vst.msk [vmem:[#allocation2 + $0x55] sm:$0x1] %vm893_vm2, %v2397_v10  ;;  %2730 = vst.msk [vmem:[#allocation2 + $0x59] sm:$0x1] %vm893_vm2, %v2382_v6  ;;  %v1794_v17 = vcombine.high %v1790_v22, %v1790_v22  ;;  %v1664_v18 = vcombine.high %v1662_v12, %v1662_v12  ;;  %v1671_v19 = vrot.slane %v1655_v62, %v11409_v29 }
 0x139   : > { %2124 = vst.msk [vmem:[#allocation2 + $0x56] sm:$0x1] %vm893_vm2, %v1793_v11  ;;  %2126 = vst.msk [vmem:[#allocation2 + $0x5a] sm:$0x1] %vm893_vm2, %v1790_v22  ;;  %v1678_v20 = vrot.slane %v1662_v12, %v11409_v29  ;;  %v2400_v9 = vcombine.high %v2396_v15, %v2396_v15  ;;  %v1685_v23 = vrot.slane %v1663_v14, %v11409_v29 }
 0x13a   : > { %2127 = vst.msk [vmem:[#allocation2 + $0x5c] sm:$0x1] %vm893_vm2, %v1792_v8  ;;  %2729 = vst.msk [vmem:[#allocation2 + $0x57] sm:$0x1] %vm893_vm2, %v2399_v4  ;;  %v2254_v16 = vcombine.high %v2216_v39, %v2216_v39  ;;  %v2261_v24 = vrot.slane %v2216_v39, %v11409_v29  ;;  %v1692_v25 = vrot.slane %v1664_v18, %v11409_v29  ;;  %v2775_v8 = vld [vmem:[#allocation2 + $0x2] sm:$0x3] }
 0x13b   : > { %2731 = vst.msk [vmem:[#allocation2 + $0x5b] sm:$0x1] %vm893_vm2, %v2396_v15  ;;  %2732 = vst.msk [vmem:[#allocation2 + $0x5d] sm:$0x1] %vm893_vm2, %v2398_v13  ;;  %v1693_v26 = vcombine.high %v1671_v19, %v1671_v19  ;;  %v1694_v28 = vcombine.high %v1678_v20, %v1678_v20  ;;  %v1621_v30 = vadd.f32 %v11530_v58, %v11407_v27  ;;  %v2774_v18 = vld [vmem:[#allocation2] sm:$0x3] }
 0x13c   : > { %2128 = vst.msk [vmem:[#allocation2 + $0x5e] sm:$0x1] %vm893_vm2, %v1794_v17  ;;  %2105 = vst.msk [vmem:[#allocation2 + $0x10] sm:$0x1] %vm893_vm2, %v1671_v19  ;;  %v1695_v31 = vcombine.high %v1685_v23, %v1685_v23  ;;  %v2268_v34 = vrot.slane %v2254_v16, %v11409_v29  ;;  %v2269_v35 = vcombine.high %v2261_v24, %v2261_v24  ;;  %v2777_v19 = vld [vmem:[#allocation2 + $0x6] sm:$0x3] }
 0x13d   : > { %2109 = vst.msk [vmem:[#allocation2 + $0x18] sm:$0x1] %vm893_vm2, %v1678_v20  ;;  %2733 = vst.msk [vmem:[#allocation2 + $0x5f] sm:$0x1] %vm893_vm2, %v2400_v9  ;;  %v2277_v36 = vrot.slane %v2261_v24, %v11409_v29  ;;  %v1696_v37 = vcombine.high %v1692_v25, %v1692_v25  ;;  %v1795_v41 = vcombine.high %v1621_v30, %v1621_v30 }
 0x13e   : > { %2106 = vst.msk [vmem:[#allocation2 + $0x12] sm:$0x1] %vm893_vm2, %v1685_v23  ;;  %2107 = vst.msk [vmem:[#allocation2 + $0x14] sm:$0x1] %vm893_vm2, %v1693_v26  ;;  %v1802_v58 = vrot.slane %v1621_v30, %v11409_v29  ;;  %v2227_v49 = vadd.f32 %v11532_v59, %v11407_v27  ;;  %v2270_v42 = vcombine.high %v2268_v34, %v2268_v34 }
 0x13f   : > { %2110 = vst.msk [vmem:[#allocation2 + $0x1a] sm:$0x1] %vm893_vm2, %v1692_v25  ;;  %2111 = vst.msk [vmem:[#allocation2 + $0x1c] sm:$0x1] %vm893_vm2, %v1694_v28  ;;  %v2284_v38 = vrot.slane %v2268_v34, %v11409_v29  ;;  %v2291_v44 = vrot.slane %v2269_v35, %v11409_v29  ;;  %v2299_v50 = vcombine.high %v2277_v36, %v2277_v36  ;;  %v2776_v28 = vld [vmem:[#allocation2 + $0x4] sm:$0x3] }
 0x140   : > { %2108 = vst.msk [vmem:[#allocation2 + $0x16] sm:$0x1] %vm893_vm2, %v1695_v31  ;;  %2710 = vst.msk [vmem:[#allocation2 + $0x11] sm:$0x1] %vm893_vm2, %v2277_v36  ;;  %v1809_v43 = vrot.slane %v1795_v41, %v11409_v29  ;;  %v1810_v39 = vcombine.high %v1802_v58, %v1802_v58  ;;  %v1818_v45 = vrot.slane %v1802_v58, %v11409_v29  ;;  %v2779_v36 = vld [vmem:[#allocation2 + $0xa] sm:$0x3] }
 0x141   : > { %2112 = vst.msk [vmem:[#allocation2 + $0x1e] sm:$0x1] %vm893_vm2, %v1696_v37  ;;  %v2401_v46 = vcombine.high %v2227_v49, %v2227_v49  ;;  %v2298_v59 = vrot.slane %v2270_v42, %v11409_v29  ;;  %v2300_v52 = vcombine.high %v2284_v38, %v2284_v38  ;;  %v2301_v3 = vcombine.high %v2291_v44, %v2291_v44 }
 0x142   : > { %2711 = vst.msk [vmem:[#allocation2 + $0x13] sm:$0x1] %vm893_vm2, %v2291_v44  ;;  %2712 = vst.msk [vmem:[#allocation2 + $0x15] sm:$0x1] %vm893_vm2, %v2299_v50  ;;  %v2408_v55 = vrot.slane %v2227_v49, %v11409_v29  ;;  %v1811_v56 = vcombine.high %v1809_v43, %v1809_v43  ;;  %v1825_v57 = vrot.slane %v1809_v43, %v11409_v29  ;;  %v2778_v43 = vld [vmem:[#allocation2 + $0x8] sm:$0x3] }
 0x143   : > { %2714 = vst.msk [vmem:[#allocation2 + $0x19] sm:$0x1] %vm893_vm2, %v2284_v38  ;;  %v1832_v62 = vrot.slane %v1810_v39, %v11409_v29  ;;  %v1840_v63 = vcombine.high %v1818_v45, %v1818_v45  ;;  %2129 = vst.msk [vmem:[#allocation2 + $0x70] sm:$0x1] %vm893_vm2, %v1818_v45  ;;  %v2302_v53 = vcombine.high %v2298_v59, %v2298_v59  ;;  %v2781_v39 = vld [vmem:[#allocation2 + $0xe] sm:$0x3] }
 0x144   : > { %2713 = vst.msk [vmem:[#allocation2 + $0x17] sm:$0x1] %vm893_vm2, %v2301_v3  ;;  %2715 = vst.msk [vmem:[#allocation2 + $0x1b] sm:$0x1] %vm893_vm2, %v2298_v59  ;;  %v2415_v2 = vrot.slane %v2401_v46, %v11409_v29  ;;  %v2416_v21 = vcombine.high %v2408_v55, %v2408_v55  ;;  %v2424_v5 = vrot.slane %v2408_v55, %v11409_v29  ;;  %v11855_v45 = vld [vmem:[%s13515_s4] sm:$0xf] }
 0x145   : > { %2716 = vst.msk [vmem:[#allocation2 + $0x1d] sm:$0x1] %vm893_vm2, %v2300_v52  ;;  %v1839_v6 = vrot.slane %v1811_v56, %v11409_v29  ;;  %v1841_v7 = vcombine.high %v1825_v57, %v1825_v57  ;;  %v1842_v10 = vcombine.high %v1832_v62, %v1832_v62  ;;  %2130 = vst.msk [vmem:[#allocation2 + $0x72] sm:$0x1] %vm893_vm2, %v1832_v62  ;;  %v2791_v55 = vld [vmem:[#allocation2 + $0x22] sm:$0x3]  ;;  %11266 = vmatprep.subr.msk.bf16.mxu0 %vm360_vm0, %v11855_v45 }
 0x146   : > { %2131 = vst.msk [vmem:[#allocation2 + $0x74] sm:$0x1] %vm893_vm2, %v1840_v63  ;;  %2133 = vst.msk [vmem:[#allocation2 + $0x78] sm:$0x1] %vm893_vm2, %v1825_v57  ;;  %v1613_v22 = vadd.f32 %v11407_v27, %v11536_v0  ;;  %v2417_v11 = vcombine.high %v2415_v2, %v2415_v2  ;;  %v2431_v12 = vrot.slane %v2415_v2, %v11409_v29  ;;  %v11829_v0 = vld [vmem:[%s13514_s3] ss:$0 sm:$0xff] }
 0x147   : > { %2717 = vst.msk [vmem:[#allocation2 + $0x1f] sm:$0x1] %vm893_vm2, %v2302_v53  ;;  %v2438_v15 = vrot.slane %v2416_v21, %v11409_v29  ;;  %v2446_v13 = vcombine.high %v2424_v5, %v2424_v5  ;;  %2734 = vst.msk [vmem:[#allocation2 + $0x71] sm:$0x1] %vm893_vm2, %v2424_v5  ;;  %v1843_v4 = vcombine.high %v1839_v6, %v1839_v6  ;;  %v2780_v53 = vld [vmem:[#allocation2 + $0xc] sm:$0x3] }
 0x148   : > { %2132 = vst.msk [vmem:[#allocation2 + $0x76] sm:$0x1] %vm893_vm2, %v1842_v10  ;;  %2134 = vst.msk [vmem:[#allocation2 + $0x7a] sm:$0x1] %vm893_vm2, %v1839_v6  ;;  %v1697_v14 = vcombine.high %v1613_v22, %v1613_v22  ;;  %v1704_v27 = vrot.slane %v1613_v22, %v11409_v29  ;;  %v2219_v17 = vadd.f32 %v11829_v0, %v11538_v1  ;;  %v2793_v2 = vld [vmem:[#allocation2 + $0x26] sm:$0x3] }
 0x149   : > { %2135 = vst.msk [vmem:[#allocation2 + $0x7c] sm:$0x1] %vm893_vm2, %v1841_v7  ;;  %v2445_v20 = vrot.slane %v2417_v11, %v11409_v29  ;;  %v2447_v9 = vcombine.high %v2431_v12, %v2431_v12  ;;  %v2448_v23 = vcombine.high %v2438_v15, %v2438_v15  ;;  %2735 = vst.msk [vmem:[#allocation2 + $0x73] sm:$0x1] %vm893_vm2, %v2438_v15  ;;  %v2790_v10 = vld [vmem:[#allocation2 + $0x20] sm:$0x3] }
 0x14a   : > { %2736 = vst.msk [vmem:[#allocation2 + $0x75] sm:$0x1] %vm893_vm2, %v2446_v13  ;;  %2738 = vst.msk [vmem:[#allocation2 + $0x79] sm:$0x1] %vm893_vm2, %v2431_v12  ;;  %v3141_v16 = vcombine.low %v2774_v18, %v2775_v8  ;;  %v1711_v24 = vrot.slane %v1697_v14, %v11409_v29  ;;  %v1712_v25 = vcombine.high %v1704_v27, %v1704_v27  ;;  %v2783_v22 = vld [vmem:[#allocation2 + $0x12] sm:$0x3] }
 0x14b   : > { %2136 = vst.msk [vmem:[#allocation2 + $0x7e] sm:$0x1] %vm893_vm2, %v1843_v4  ;;  %v1720_v1 = vrot.slane %v1704_v27, %v11409_v29  ;;  %v2303_v26 = vcombine.high %v2219_v17, %v2219_v17  ;;  %v2449_v30 = vcombine.high %v2445_v20, %v2445_v20  ;;  %2737 = vst.msk [vmem:[#allocation2 + $0x77] sm:$0x1] %vm893_vm2, %v2448_v23  ;;  %v2785_v8 = vld [vmem:[#allocation2 + $0x16] sm:$0x3] }
 0x14c   : > { %2739 = vst.msk [vmem:[#allocation2 + $0x7b] sm:$0x1] %vm893_vm2, %v2445_v20  ;;  %2740 = vst.msk [vmem:[#allocation2 + $0x7d] sm:$0x1] %vm893_vm2, %v2447_v9  ;;  %v2310_v31 = vrot.slane %v2219_v17, %v11409_v29  ;;  %v3142_v34 = vcombine.low %v2776_v28, %v2777_v19  ;;  %v3149_v35 = vrot.slane %v3141_v16, %v11421_v40  ;;  %v2792_v13 = vld [vmem:[#allocation2 + $0x24] sm:$0x3] }
 0x14d   : > { %v1713_v37 = vcombine.high %v1711_v24, %v1711_v24  ;;  %v1727_v41 = vrot.slane %v1711_v24, %v11409_v29  ;;  %v1734_v58 = vrot.slane %v1712_v25, %v11409_v29  ;;  %v1742_v49 = vcombine.high %v1720_v1, %v1720_v1  ;;  %2113 = vst.msk [vmem:[#allocation2 + $0x30] sm:$0x1] %vm893_vm2, %v1720_v1  ;;  %v2782_v19 = vld [vmem:[#allocation2 + $0x10] sm:$0x3]  ;;  %v2784_v20 = vld [vmem:[#allocation2 + $0x14] sm:$0x3] }
 0x14e   : > { %2741 = vst.msk [vmem:[#allocation2 + $0x7f] sm:$0x1] %vm893_vm2, %v2449_v30  ;;  %v2317_v42 = vrot.slane %v2303_v26, %v11409_v29  ;;  %v2318_v38 = vcombine.high %v2310_v31, %v2310_v31  ;;  %v2326_v44 = vrot.slane %v2310_v31, %v11409_v29  ;;  %v3156_v50 = vrot.slane %v3142_v34, %v11421_v40 }
 0x14f   : > { %v1741_v46 = vrot.slane %v1713_v37, %v11409_v29  ;;  %v1743_v59 = vcombine.high %v1727_v41, %v1727_v41  ;;  %v1744_v52 = vcombine.high %v1734_v58, %v1734_v58  ;;  %2114 = vst.msk [vmem:[#allocation2 + $0x32] sm:$0x1] %vm893_vm2, %v1734_v58  ;;  %2115 = vst.msk [vmem:[#allocation2 + $0x34] sm:$0x1] %vm893_vm2, %v1742_v49 }
 0x150   : > { %2117 = vst.msk [vmem:[#allocation2 + $0x38] sm:$0x1] %vm893_vm2, %v1727_v41  ;;  %v3158_v3 = vcombine.low %v2778_v43, %v2779_v36  ;;  %v2319_v56 = vcombine.high %v2317_v42, %v2317_v42  ;;  %v2333_v57 = vrot.slane %v2317_v42, %v11409_v29  ;;  %v2340_v62 = vrot.slane %v2318_v38, %v11409_v29 }
 0x151   : > { %v2348_v63 = vcombine.high %v2326_v44, %v2326_v44  ;;  %2718 = vst.msk [vmem:[#allocation2 + $0x31] sm:$0x1] %vm893_vm2, %v2326_v44  ;;  %v1745_v21 = vcombine.high %v1741_v46, %v1741_v46  ;;  %2116 = vst.msk [vmem:[#allocation2 + $0x36] sm:$0x1] %vm893_vm2, %v1744_v52  ;;  %v3157_v5 = vcombine.low %v3149_v35, %v3156_v50 }
 0x152   : > { %2118 = vst.msk [vmem:[#allocation2 + $0x3a] sm:$0x1] %vm893_vm2, %v1741_v46  ;;  %2119 = vst.msk [vmem:[#allocation2 + $0x3c] sm:$0x1] %vm893_vm2, %v1743_v59  ;;  %v3159_v6 = vcombine.low %v2780_v53, %v2781_v39  ;;  %v3166_v7 = vrot.slane %v3158_v3, %v11421_v40  ;;  %v2347_v11 = vrot.slane %v2319_v56, %v11409_v29 }
 0x153   : > { %v2349_v12 = vcombine.high %v2333_v57, %v2333_v57  ;;  %v2350_v15 = vcombine.high %v2340_v62, %v2340_v62  ;;  %2719 = vst.msk [vmem:[#allocation2 + $0x33] sm:$0x1] %vm893_vm2, %v2340_v62  ;;  %2720 = vst.msk [vmem:[#allocation2 + $0x35] sm:$0x1] %vm893_vm2, %v2348_v63  ;;  %v3209_v4 = vcombine.low %v2790_v10, %v2791_v55  ;;  %3685 = vrot.lane.b32.xlu0 %v3157_v5, %s11307_s25 }
 0x154   : > { %2722 = vst.msk [vmem:[#allocation2 + $0x39] sm:$0x1] %vm893_vm2, %v2333_v57  ;;  %2120 = vst.msk [vmem:[#allocation2 + $0x3e] sm:$0x1] %vm893_vm2, %v1745_v21  ;;  %v3173_v14 = vrot.slane %v3159_v6, %v11421_v40  ;;  %v3210_v27 = vcombine.low %v2792_v13, %v2793_v2  ;;  %v1634_v17 = vadd.f32 %v11829_v0, %v11560_v32 }
 0x155   : > { %v2240_v18 = vadd.f32 %v11829_v0, %v11562_v33  ;;  %v2351_v9 = vcombine.high %v2347_v11, %v2347_v11  ;;  %2721 = vst.msk [vmem:[#allocation2 + $0x37] sm:$0x1] %vm893_vm2, %v2350_v15  ;;  %2723 = vst.msk [vmem:[#allocation2 + $0x3b] sm:$0x1] %vm893_vm2, %v2347_v11  ;;  %v3217_v23 = vrot.slane %v3209_v4, %v11421_v40 }
 0x156   : > { %2724 = vst.msk [vmem:[#allocation2 + $0x3d] sm:$0x1] %vm893_vm2, %v2349_v12  ;;  %v3175_v16 = vcombine.low %v2782_v19, %v2783_v22  ;;  %v3176_v24 = vcombine.low %v2784_v20, %v2785_v8  ;;  %v3174_v25 = vcombine.low %v3166_v7, %v3173_v14  ;;  %v3224_v1 = vrot.slane %v3210_v27, %v11421_v40 }
 0x157   : > { %v1942_v32 = vcombine.high %v1634_v17, %v1634_v17  ;;  %v1949_v26 = vrot.slane %v1634_v17, %v11409_v29  ;;  %2725 = vst.msk [vmem:[#allocation2 + $0x3f] sm:$0x1] %vm893_vm2, %v2351_v9  ;;  %v2548_v33 = vcombine.high %v2240_v18, %v2240_v18  ;;  %v2555_v28 = vrot.slane %v2240_v18, %v11409_v29 }
 0x158   : > { %v3183_v30 = vrot.slane %v3175_v16, %v11421_v40  ;;  %v3190_v31 = vrot.slane %v3176_v24, %v11421_v40  ;;  %3687 = vrot.lane.b32.xlu0 %v3174_v25, %s11307_s25  ;;  %v3225_v34 = vcombine.low %v3217_v23, %v3224_v1  ;;  %v1626_v62 = vadd.f32 %v11829_v0, %v11578_v47  ;;  %v2798_v6 = vld [vmem:[#allocation2 + $0x30] sm:$0x3] }
 0x159   : > { %v1956_v35 = vrot.slane %v1942_v32, %v11409_v29  ;;  %v1957_v36 = vcombine.high %v1949_v26, %v1949_v26  ;;  %v1965_v37 = vrot.slane %v1949_v26, %v11409_v29  ;;  %v2562_v41 = vrot.slane %v2548_v33, %v11409_v29 }
 0x15a   : > { %v2563_v58 = vcombine.high %v2555_v28, %v2555_v28  ;;  %v2571_v49 = vrot.slane %v2555_v28, %v11409_v29  ;;  %v3191_v42 = vcombine.low %v3183_v30, %v3190_v31  ;;  %v2799_v3 = vld [vmem:[#allocation2 + $0x32] sm:$0x3]  ;;  %v2232_v5 = vadd.f32 %v11829_v0, %v11580_v48  ;;  %v2800_v22 = vld [vmem:[#allocation2 + $0x34] sm:$0x3] }
 0x15b   : > { %v1958_v38 = vcombine.high %v1956_v35, %v1956_v35  ;;  %v1972_v44 = vrot.slane %v1956_v35, %v11409_v29  ;;  %v1979_v50 = vrot.slane %v1957_v36, %v11409_v29  ;;  %v1987_v43 = vcombine.high %v1965_v37, %v1965_v37  ;;  %2153 = vst.msk [vmem:[#allocation2 + $0xd0] sm:$0x1] %vm893_vm2, %v1965_v37 }
 0x15c   : > { %v2564_v39 = vcombine.high %v2562_v41, %v2562_v41  ;;  %v2578_v46 = vrot.slane %v2562_v41, %v11409_v29  ;;  %v2585_v59 = vrot.slane %v2563_v58, %v11409_v29  ;;  %v2593_v52 = vcombine.high %v2571_v49, %v2571_v49  ;;  %2758 = vst.msk [vmem:[#allocation2 + $0xd1] sm:$0x1] %vm893_vm2, %v2571_v49  ;;  %v2801_v63 = vld [vmem:[#allocation2 + $0x36] sm:$0x3] }
 0x15d   : > { %3689 = vrot.lane.b32.xlu1 %v3191_v42, %s11307_s25  ;;  %3693 = vrot.lane.b32.xlu0 %v3225_v34, %s11307_s25  ;;  %v1986_v55 = vrot.slane %v1958_v38, %v11409_v29  ;;  %v1988_v56 = vcombine.high %v1972_v44, %v1972_v44  ;;  %v1989_v57 = vcombine.high %v1979_v50, %v1979_v50  ;;  %v11942_v34 = vld [vmem:[#allocation2 + $0x1a] sm:$0x3] }
 0x15e   : > { %2154 = vst.msk [vmem:[#allocation2 + $0xd2] sm:$0x1] %vm893_vm2, %v1979_v50  ;;  %2155 = vst.msk [vmem:[#allocation2 + $0xd4] sm:$0x1] %vm893_vm2, %v1987_v43  ;;  %v2592_v53 = vrot.slane %v2564_v39, %v11409_v29  ;;  %v2594_v2 = vcombine.high %v2578_v46, %v2578_v46  ;;  %v2595_v21 = vcombine.high %v2585_v59, %v2585_v59 }
 0x15f   : > { %2157 = vst.msk [vmem:[#allocation2 + $0xd8] sm:$0x1] %vm893_vm2, %v1972_v44  ;;  %2759 = vst.msk [vmem:[#allocation2 + $0xd3] sm:$0x1] %vm893_vm2, %v2585_v59  ;;  %v1990_v7 = vcombine.high %v1986_v55, %v1986_v55  ;;  %v1844_v47 = vcombine.high %v1626_v62, %v1626_v62  ;;  %v1851_v10 = vrot.slane %v1626_v62, %v11409_v29  ;;  %v11960_v44 = vld [vmem:[#allocation2 + $0x18] sm:$0x3] }
 0x160   : > { %2760 = vst.msk [vmem:[#allocation2 + $0xd5] sm:$0x1] %vm893_vm2, %v2593_v52  ;;  %2762 = vst.msk [vmem:[#allocation2 + $0xd9] sm:$0x1] %vm893_vm2, %v2578_v46  ;;  %v3243_v8 = vcombine.low %v2798_v6, %v2799_v3  ;;  %v2596_v11 = vcombine.high %v2592_v53, %v2592_v53  ;;  %v2450_v48 = vcombine.high %v2232_v5, %v2232_v5 }
 0x161   : > { %2156 = vst.msk [vmem:[#allocation2 + $0xd6] sm:$0x1] %vm893_vm2, %v1989_v57  ;;  %2158 = vst.msk [vmem:[#allocation2 + $0xda] sm:$0x1] %vm893_vm2, %v1986_v55  ;;  %v2457_v12 = vrot.slane %v2232_v5, %v11409_v29  ;;  %v3244_v15 = vcombine.low %v2800_v22, %v2801_v63  ;;  %v1858_v13 = vrot.slane %v1844_v47, %v11409_v29 }
 0x162   : > { %2159 = vst.msk [vmem:[#allocation2 + $0xdc] sm:$0x1] %vm893_vm2, %v1988_v56  ;;  %2761 = vst.msk [vmem:[#allocation2 + $0xd7] sm:$0x1] %vm893_vm2, %v2595_v21  ;;  %v1859_v4 = vcombine.high %v1851_v10, %v1851_v10  ;;  %v1867_v14 = vrot.slane %v1851_v10, %v11409_v29  ;;  %v3251_v27 = vrot.slane %v3243_v8, %v11421_v40 }
 0x163   : > { %2763 = vst.msk [vmem:[#allocation2 + $0xdb] sm:$0x1] %vm893_vm2, %v2592_v53  ;;  %2764 = vst.msk [vmem:[#allocation2 + $0xdd] sm:$0x1] %vm893_vm2, %v2594_v2  ;;  %v2464_v17 = vrot.slane %v2450_v48, %v11409_v29  ;;  %v2465_v18 = vcombine.high %v2457_v12, %v2457_v12  ;;  %v2473_v19 = vrot.slane %v2457_v12, %v11409_v29 }
 0x164   : > { %2160 = vst.msk [vmem:[#allocation2 + $0xde] sm:$0x1] %vm893_vm2, %v1990_v7  ;;  %2765 = vst.msk [vmem:[#allocation2 + $0xdf] sm:$0x1] %vm893_vm2, %v2596_v11  ;;  %v3258_v20 = vrot.slane %v3244_v15, %v11421_v40  ;;  %v1860_v9 = vcombine.high %v1858_v13, %v1858_v13  ;;  %v1874_v23 = vrot.slane %v1858_v13, %v11409_v29 }
 0x165   : > { %v1881_v16 = vrot.slane %v1859_v4, %v11409_v29  ;;  %v1889_v24 = vcombine.high %v1867_v14, %v1867_v14  ;;  %2137 = vst.msk [vmem:[#allocation2 + $0x90] sm:$0x1] %vm893_vm2, %v1867_v14  ;;  %v2466_v25 = vcombine.high %v2464_v17, %v2464_v17  ;;  %v2480_v1 = vrot.slane %v2464_v17, %v11409_v29  ;;  %v2789_v4 = vld [vmem:[#allocation2 + $0x1e] sm:$0x3] }
 0x166   : > { %v2487_v32 = vrot.slane %v2465_v18, %v11409_v29  ;;  %v2495_v26 = vcombine.high %v2473_v19, %v2473_v19  ;;  %2742 = vst.msk [vmem:[#allocation2 + $0x91] sm:$0x1] %vm893_vm2, %v2473_v19  ;;  %v1888_v33 = vrot.slane %v1860_v9, %v11409_v29  ;;  %v1890_v28 = vcombine.high %v1874_v23, %v1874_v23 }
 0x167   : > { %v1891_v30 = vcombine.high %v1881_v16, %v1881_v16  ;;  %2138 = vst.msk [vmem:[#allocation2 + $0x92] sm:$0x1] %vm893_vm2, %v1881_v16  ;;  %2139 = vst.msk [vmem:[#allocation2 + $0x94] sm:$0x1] %vm893_vm2, %v1889_v24  ;;  %v3259_v31 = vcombine.low %v3251_v27, %v3258_v20  ;;  %v2494_v35 = vrot.slane %v2466_v25, %v11409_v29  ;;  %v2788_v16 = vld [vmem:[#allocation2 + $0x1c] sm:$0x3] }
 0x168   : > { %2141 = vst.msk [vmem:[#allocation2 + $0x98] sm:$0x1] %vm893_vm2, %v1874_v23  ;;  %v2496_v36 = vcombine.high %v2480_v1, %v2480_v1  ;;  %v2497_v37 = vcombine.high %v2487_v32, %v2487_v32  ;;  %2743 = vst.msk [vmem:[#allocation2 + $0x93] sm:$0x1] %vm893_vm2, %v2487_v32  ;;  %v1637_v41 = vadd.f32 %v11829_v0, %v11586_v51  ;;  %v2807_v24 = vld [vmem:[#allocation2 + $0x42] sm:$0x3] }
 0x169   : > { %2744 = vst.msk [vmem:[#allocation2 + $0x95] sm:$0x1] %vm893_vm2, %v2495_v26  ;;  %2746 = vst.msk [vmem:[#allocation2 + $0x99] sm:$0x1] %vm893_vm2, %v2480_v1  ;;  %v1892_v58 = vcombine.high %v1888_v33, %v1888_v33  ;;  %3697 = vrot.lane.b32.xlu0 %v3259_v31, %s11307_s25  ;;  %v2243_v49 = vadd.f32 %v11829_v0, %v11588_v54  ;;  %v1629_v42 = vadd.f32 %v11829_v0, %v11593_v60 }
 0x16a   : > { %2140 = vst.msk [vmem:[#allocation2 + $0x96] sm:$0x1] %vm893_vm2, %v1891_v30  ;;  %2142 = vst.msk [vmem:[#allocation2 + $0x9a] sm:$0x1] %vm893_vm2, %v1888_v33  ;;  %v2235_v38 = vadd.f32 %v11829_v0, %v11595_v61  ;;  %v2498_v51 = vcombine.high %v2494_v35, %v2494_v35  ;;  %v1991_v50 = vcombine.high %v1637_v41, %v1637_v41  ;;  %v2809_v33 = vld [vmem:[#allocation2 + $0x46] sm:$0x3] }
 0x16b   : > { %2143 = vst.msk [vmem:[#allocation2 + $0x9c] sm:$0x1] %vm893_vm2, %v1890_v28  ;;  %2745 = vst.msk [vmem:[#allocation2 + $0x97] sm:$0x1] %vm893_vm2, %v2497_v37  ;;  %v1998_v43 = vrot.slane %v1637_v41, %v11409_v29  ;;  %v3192_v54 = vcombine.low %v11960_v44, %v11942_v34  ;;  %v2597_v60 = vcombine.high %v2243_v49, %v2243_v49  ;;  %v2795_v37 = vld [vmem:[#allocation2 + $0x2a] sm:$0x3] }
 0x16c   : > { %2747 = vst.msk [vmem:[#allocation2 + $0x9b] sm:$0x1] %vm893_vm2, %v2494_v35  ;;  %2748 = vst.msk [vmem:[#allocation2 + $0x9d] sm:$0x1] %vm893_vm2, %v2496_v36  ;;  %v2604_v61 = vrot.slane %v2243_v49, %v11409_v29  ;;  %v1893_v0 = vcombine.high %v1629_v42, %v1629_v42  ;;  %v1900_v39 = vrot.slane %v1629_v42, %v11409_v29  ;;  %v2806_v36 = vld [vmem:[#allocation2 + $0x40] sm:$0x3] }
 0x16d   : > { %2144 = vst.msk [vmem:[#allocation2 + $0x9e] sm:$0x1] %vm893_vm2, %v1892_v58  ;;  %2749 = vst.msk [vmem:[#allocation2 + $0x9f] sm:$0x1] %vm893_vm2, %v2498_v51  ;;  %v2005_v46 = vrot.slane %v1991_v50, %v11409_v29  ;;  %v2006_v59 = vcombine.high %v1998_v43, %v1998_v43  ;;  %v2014_v52 = vrot.slane %v1998_v43, %v11409_v29  ;;  %v2808_v42 = vld [vmem:[#allocation2 + $0x44] sm:$0x3] }
 0x16e   : > { %v2499_v3 = vcombine.high %v2235_v38, %v2235_v38  ;;  %v2611_v55 = vrot.slane %v2597_v60, %v11409_v29  ;;  %v2612_v56 = vcombine.high %v2604_v61, %v2604_v61  ;;  %v2620_v57 = vrot.slane %v2604_v61, %v11409_v29  ;;  %v2797_v51 = vld [vmem:[#allocation2 + $0x2e] sm:$0x3] }
 0x16f   : > { %v1907_v62 = vrot.slane %v1893_v0, %v11409_v29  ;;  %v2007_v63 = vcombine.high %v2005_v46, %v2005_v46  ;;  %v2021_v53 = vrot.slane %v2005_v46, %v11409_v29  ;;  %v2028_v2 = vrot.slane %v2006_v59, %v11409_v29  ;;  %2161 = vst.msk [vmem:[#allocation2 + $0xf0] sm:$0x1] %vm893_vm2, %v2014_v52  ;;  %v2794_v0 = vld [vmem:[#allocation2 + $0x28] sm:$0x3]  ;;  %v2817_v46 = vld [vmem:[#allocation2 + $0x56] sm:$0x3] }
 0x170   : > { %v2036_v21 = vcombine.high %v2014_v52, %v2014_v52  ;;  %v2613_v5 = vcombine.high %v2611_v55, %v2611_v55  ;;  %v2627_v6 = vrot.slane %v2611_v55, %v11409_v29  ;;  %v2634_v7 = vrot.slane %v2612_v56, %v11409_v29  ;;  %2766 = vst.msk [vmem:[#allocation2 + $0xf1] sm:$0x1] %vm893_vm2, %v2620_v57  ;;  %v2796_v59 = vld [vmem:[#allocation2 + $0x2c] sm:$0x3]  ;;  %v2805_v55 = vld [vmem:[#allocation2 + $0x3e] sm:$0x3] }
 0x171   : > { %v2642_v47 = vcombine.high %v2620_v57, %v2620_v57  ;;  %v2035_v10 = vrot.slane %v2007_v63, %v11409_v29  ;;  %v2037_v22 = vcombine.high %v2021_v53, %v2021_v53  ;;  %v2038_v8 = vcombine.high %v2028_v2, %v2028_v2  ;;  %2162 = vst.msk [vmem:[#allocation2 + $0xf2] sm:$0x1] %vm893_vm2, %v2028_v2  ;;  %v2814_v63 = vld [vmem:[#allocation2 + $0x50] sm:$0x3]  ;;  %v2825_v2 = vld [vmem:[#allocation2 + $0x66] sm:$0x3] }
 0x172   : > { %2163 = vst.msk [vmem:[#allocation2 + $0xf4] sm:$0x1] %vm893_vm2, %v2036_v21  ;;  %2165 = vst.msk [vmem:[#allocation2 + $0xf8] sm:$0x1] %vm893_vm2, %v2021_v53  ;;  %v1908_v11 = vcombine.high %v1900_v39, %v1900_v39  ;;  %v2641_v48 = vrot.slane %v2613_v5, %v11409_v29  ;;  %v2643_v12 = vcombine.high %v2627_v6, %v2627_v6  ;;  %v2816_v53 = vld [vmem:[#allocation2 + $0x54] sm:$0x3] }
 0x173   : > { %v2644_v15 = vcombine.high %v2634_v7, %v2634_v7  ;;  %2767 = vst.msk [vmem:[#allocation2 + $0xf3] sm:$0x1] %vm893_vm2, %v2634_v7  ;;  %2768 = vst.msk [vmem:[#allocation2 + $0xf5] sm:$0x1] %vm893_vm2, %v2642_v47  ;;  %v1909_v13 = vcombine.high %v1907_v62, %v1907_v62  ;;  %v2039_v14 = vcombine.high %v2035_v10, %v2035_v10  ;;  %v2802_v7 = vld [vmem:[#allocation2 + $0x38] sm:$0x3] }
 0x174   : > { %2770 = vst.msk [vmem:[#allocation2 + $0xf9] sm:$0x1] %vm893_vm2, %v2627_v6  ;;  %2164 = vst.msk [vmem:[#allocation2 + $0xf6] sm:$0x1] %vm893_vm2, %v2038_v8  ;;  %v1916_v27 = vrot.slane %v1900_v39, %v11409_v29  ;;  %v1923_v17 = vrot.slane %v1907_v62, %v11409_v29  ;;  %v1930_v18 = vrot.slane %v1908_v11, %v11409_v29  ;;  %v2815_v39 = vld [vmem:[#allocation2 + $0x52] sm:$0x3] }
 0x175   : > { %2166 = vst.msk [vmem:[#allocation2 + $0xfa] sm:$0x1] %vm893_vm2, %v2035_v10  ;;  %2167 = vst.msk [vmem:[#allocation2 + $0xfc] sm:$0x1] %vm893_vm2, %v2037_v22  ;;  %v2645_v19 = vcombine.high %v2641_v48, %v2641_v48  ;;  %v1937_v20 = vrot.slane %v1909_v13, %v11409_v29  ;;  %v2506_v9 = vrot.slane %v2235_v38, %v11409_v29  ;;  %v2804_v47 = vld [vmem:[#allocation2 + $0x3c] sm:$0x3] }
 0x176   : > { %2769 = vst.msk [vmem:[#allocation2 + $0xf7] sm:$0x1] %vm893_vm2, %v2644_v15  ;;  %2771 = vst.msk [vmem:[#allocation2 + $0xfb] sm:$0x1] %vm893_vm2, %v2641_v48  ;;  %v2513_v23 = vrot.slane %v2499_v3, %v11409_v29  ;;  %v1938_v25 = vcombine.high %v1916_v27, %v1916_v27  ;;  %v1939_v1 = vcombine.high %v1923_v17, %v1923_v17  ;;  %v2803_v3 = vld [vmem:[#allocation2 + $0x3a] sm:$0x3] }
 0x177   : > { %2772 = vst.msk [vmem:[#allocation2 + $0xfd] sm:$0x1] %vm893_vm2, %v2643_v12  ;;  %2168 = vst.msk [vmem:[#allocation2 + $0xfe] sm:$0x1] %vm893_vm2, %v2039_v14  ;;  %v1940_v32 = vcombine.high %v1930_v18, %v1930_v18  ;;  %v3193_v26 = vcombine.low %v2788_v16, %v2789_v4  ;;  %v1941_v28 = vcombine.high %v1937_v20, %v1937_v20  ;;  %v2823_v10 = vld [vmem:[#allocation2 + $0x62] sm:$0x3] }
 0x178   : > { %2145 = vst.msk [vmem:[#allocation2 + $0xb0] sm:$0x1] %vm893_vm2, %v1916_v27  ;;  %2146 = vst.msk [vmem:[#allocation2 + $0xb2] sm:$0x1] %vm893_vm2, %v1930_v18  ;;  %v2514_v30 = vcombine.high %v2506_v9, %v2506_v9  ;;  %v2515_v31 = vcombine.high %v2513_v23, %v2513_v23  ;;  %v2522_v35 = vrot.slane %v2506_v9, %v11409_v29  ;;  %v2824_v12 = vld [vmem:[#allocation2 + $0x64] sm:$0x3] }
 0x179   : > { %2149 = vst.msk [vmem:[#allocation2 + $0xb8] sm:$0x1] %vm893_vm2, %v1923_v17  ;;  %2773 = vst.msk [vmem:[#allocation2 + $0xff] sm:$0x1] %vm893_vm2, %v2645_v19  ;;  %v2529_v41 = vrot.slane %v2513_v23, %v11409_v29  ;;  %v3200_v58 = vrot.slane %v3192_v54, %v11421_v40  ;;  %v3207_v49 = vrot.slane %v3193_v26, %v11421_v40  ;;  %v2811_v15 = vld [vmem:[#allocation2 + $0x4a] sm:$0x3] }
 0x17a   : > { %2150 = vst.msk [vmem:[#allocation2 + $0xba] sm:$0x1] %vm893_vm2, %v1937_v20  ;;  %2147 = vst.msk [vmem:[#allocation2 + $0xb4] sm:$0x1] %vm893_vm2, %v1938_v25  ;;  %v3277_v38 = vcombine.low %v2806_v36, %v2807_v24  ;;  %v2536_v50 = vrot.slane %v2514_v30, %v11409_v29  ;;  %v2543_v43 = vrot.slane %v2515_v31, %v11409_v29  ;;  %v2813_v13 = vld [vmem:[#allocation2 + $0x4e] sm:$0x3] }
 0x17b   : > { %2148 = vst.msk [vmem:[#allocation2 + $0xb6] sm:$0x1] %vm893_vm2, %v1940_v32  ;;  %2151 = vst.msk [vmem:[#allocation2 + $0xbc] sm:$0x1] %vm893_vm2, %v1939_v1  ;;  %v2544_v60 = vcombine.high %v2522_v35, %v2522_v35  ;;  %v3278_v61 = vcombine.low %v2808_v42, %v2809_v33  ;;  %v2545_v34 = vcombine.high %v2529_v41, %v2529_v41  ;;  %v2822_v14 = vld [vmem:[#allocation2 + $0x60] sm:$0x3] }
 0x17c   : > { %2152 = vst.msk [vmem:[#allocation2 + $0xbe] sm:$0x1] %vm893_vm2, %v1941_v28  ;;  %2750 = vst.msk [vmem:[#allocation2 + $0xb1] sm:$0x1] %vm893_vm2, %v2522_v35  ;;  %v3208_v44 = vcombine.low %v3200_v58, %v3207_v49  ;;  %v3285_v54 = vrot.slane %v3277_v38, %v11421_v40  ;;  %v3226_v52 = vcombine.low %v2794_v0, %v2795_v37  ;;  %v2833_v17 = vld [vmem:[#allocation2 + $0x76] sm:$0x3] }
 0x17d   : > { %2754 = vst.msk [vmem:[#allocation2 + $0xb9] sm:$0x1] %vm893_vm2, %v2529_v41  ;;  %v2546_v56 = vcombine.high %v2536_v50, %v2536_v50  ;;  %v2547_v57 = vcombine.high %v2543_v43, %v2543_v43  ;;  %2751 = vst.msk [vmem:[#allocation2 + $0xb3] sm:$0x1] %vm893_vm2, %v2536_v50  ;;  %v3292_v29 = vrot.slane %v3278_v61, %v11421_v40  ;;  %v2810_v23 = vld [vmem:[#allocation2 + $0x48] sm:$0x3] }
 0x17e   : > { %2752 = vst.msk [vmem:[#allocation2 + $0xb5] sm:$0x1] %vm893_vm2, %v2544_v60  ;;  %2755 = vst.msk [vmem:[#allocation2 + $0xbb] sm:$0x1] %vm893_vm2, %v2543_v43  ;;  %v3227_v62 = vcombine.low %v2796_v59, %v2797_v51  ;;  %3691 = vrot.lane.b32.xlu1 %v3208_v44, %s11307_s25  ;;  %v3234_v21 = vrot.slane %v3226_v52, %v11421_v40  ;;  %v3311_v5 = vcombine.low %v2814_v63, %v2815_v39  ;;  %v2812_v16 = vld [vmem:[#allocation2 + $0x4c] sm:$0x3] }
 0x17f   : > { %2756 = vst.msk [vmem:[#allocation2 + $0xbd] sm:$0x1] %vm893_vm2, %v2545_v34  ;;  %v3312_v6 = vcombine.low %v2816_v53, %v2817_v46  ;;  %2753 = vst.msk [vmem:[#allocation2 + $0xb7] sm:$0x1] %vm893_vm2, %v2546_v56  ;;  %v3293_v22 = vcombine.low %v3285_v54, %v3292_v29  ;;  %v3260_v11 = vcombine.low %v2802_v7, %v2803_v3  ;;  %v2831_v24 = vld [vmem:[#allocation2 + $0x72] sm:$0x3] }
 0x180   : > { %2757 = vst.msk [vmem:[#allocation2 + $0xbf] sm:$0x1] %vm893_vm2, %v2547_v57  ;;  %v3241_v8 = vrot.slane %v3227_v62, %v11421_v40  ;;  %v3261_v48 = vcombine.low %v2804_v47, %v2805_v55  ;;  %v3346_v27 = vcombine.low %v2824_v12, %v2825_v2  ;;  %v3319_v19 = vrot.slane %v3311_v5, %v11421_v40  ;;  %v2832_v32 = vld [vmem:[#allocation2 + $0x74] sm:$0x3]  ;;  %v2821_v26 = vld [vmem:[#allocation2 + $0x5e] sm:$0x3] }
 0x181   : > { %v3326_v4 = vrot.slane %v3312_v6, %v11421_v40  ;;  %3701 = vrot.lane.b32.xlu0 %v3293_v22, %s11307_s25  ;;  %v3345_v9 = vcombine.low %v2822_v14, %v2823_v10  ;;  %v3294_v25 = vcombine.low %v2810_v23, %v2811_v15  ;;  %v3295_v1 = vcombine.low %v2812_v16, %v2813_v13  ;;  %v2830_v31 = vld [vmem:[#allocation2 + $0x70] sm:$0x3]  ;;  %v2839_v36 = vld [vmem:[#allocation2 + $0x82] sm:$0x3]  ;;  %v2829_v37 = vld [vmem:[#allocation2 + $0x6e] sm:$0x3] }
 0x182   : > { %v3242_v18 = vcombine.low %v3234_v21, %v3241_v8  ;;  %v3275_v20 = vrot.slane %v3261_v48, %v11421_v40  ;;  %v3268_v28 = vrot.slane %v3260_v11, %v11421_v40  ;;  %v3360_v30 = vrot.slane %v3346_v27, %v11421_v40  ;;  %v2819_v58 = vld [vmem:[#allocation2 + $0x5a] sm:$0x3]  ;;  %v2820_v49 = vld [vmem:[#allocation2 + $0x5c] sm:$0x3]  ;;  %v2841_v42 = vld [vmem:[#allocation2 + $0x86] sm:$0x3] }
 0x183   : > { %v3327_v33 = vcombine.low %v3319_v19, %v3326_v4  ;;  %v3380_v35 = vcombine.low %v2832_v32, %v2833_v17  ;;  %v3379_v41 = vcombine.low %v2830_v31, %v2831_v24  ;;  %v3353_v51 = vrot.slane %v3345_v9, %v11421_v40  ;;  %v2818_v43 = vld [vmem:[#allocation2 + $0x58] sm:$0x3]  ;;  %v2840_v61 = vld [vmem:[#allocation2 + $0x84] sm:$0x3]  ;;  %v2846_v0 = vld [vmem:[#allocation2 + $0x90] sm:$0x3] }
 0x184   : > { %3695 = vrot.lane.b32.xlu1 %v3242_v18, %s11307_s25  ;;  %v3276_v38 = vcombine.low %v3268_v28, %v3275_v20  ;;  %v3309_v50 = vrot.slane %v3295_v1, %v11421_v40  ;;  %v3329_v60 = vcombine.low %v2820_v49, %v2821_v26  ;;  %v3302_v39 = vrot.slane %v3294_v25, %v11421_v40  ;;  %v2847_v46 = vld [vmem:[#allocation2 + $0x92] sm:$0x3]  ;;  %v2848_v34 = vld [vmem:[#allocation2 + $0x94] sm:$0x3]  ;;  %v2849_v44 = vld [vmem:[#allocation2 + $0x96] sm:$0x3] }
 0x185   : > { %3705 = vrot.lane.b32.xlu0 %v3327_v33, %s11307_s25  ;;  %v3361_v54 = vcombine.low %v3353_v51, %v3360_v30  ;;  %v3394_v59 = vrot.slane %v3380_v35, %v11421_v40  ;;  %v3328_v52 = vcombine.low %v2818_v43, %v2819_v58  ;;  %v2838_v3 = vld [vmem:[#allocation2 + $0x80] sm:$0x3]  ;;  %v3414_v55 = vcombine.low %v2840_v61, %v2841_v42  ;;  %v2827_v56 = vld [vmem:[#allocation2 + $0x6a] sm:$0x3]  ;;  %v2828_v57 = vld [vmem:[#allocation2 + $0x6c] sm:$0x3] }
 0x186   : > { %v3387_v29 = vrot.slane %v3379_v41, %v11421_v40  ;;  %v3413_v62 = vcombine.low %v2838_v3, %v2839_v36  ;;  %v3363_v63 = vcombine.low %v2828_v57, %v2829_v37  ;;  %v3310_v53 = vcombine.low %v3302_v39, %v3309_v50  ;;  %v2826_v21 = vld [vmem:[#allocation2 + $0x68] sm:$0x3]  ;;  %v2837_v47 = vld [vmem:[#allocation2 + $0x7e] sm:$0x3]  ;;  %v2835_v11 = vld [vmem:[#allocation2 + $0x7a] sm:$0x3] }
 0x187   : > { %v3343_v2 = vrot.slane %v3329_v60, %v11421_v40  ;;  %v3447_v5 = vcombine.low %v2846_v0, %v2847_v46  ;;  %v3448_v6 = vcombine.low %v2848_v34, %v2849_v44  ;;  %v3362_v7 = vcombine.low %v2826_v21, %v2827_v56  ;;  %v2836_v15 = vld [vmem:[#allocation2 + $0x7c] sm:$0x3]  ;;  %v2857_v13 = vld [vmem:[#allocation2 + $0xa6] sm:$0x3]  ;;  %v2834_v17 = vld [vmem:[#allocation2 + $0x78] sm:$0x3] }
 0x188   : > { %3699 = vrot.lane.b32.xlu1 %v3276_v38, %s11307_s25  ;;  %v3395_v10 = vcombine.low %v3387_v29, %v3394_v59  ;;  %v3336_v22 = vrot.slane %v3328_v52, %v11421_v40  ;;  %v3428_v8 = vrot.slane %v3414_v55, %v11421_v40  ;;  %v3421_v48 = vrot.slane %v3413_v62, %v11421_v40  ;;  %v2855_v9 = vld [vmem:[#allocation2 + $0xa2] sm:$0x3]  ;;  %v2856_v23 = vld [vmem:[#allocation2 + $0xa4] sm:$0x3]  ;;  %v2843_v16 = vld [vmem:[#allocation2 + $0x8a] sm:$0x3] }
 0x189   : > { %3709 = vrot.lane.b32.xlu0 %v3361_v54, %s11307_s25  ;;  %v3377_v12 = vrot.slane %v3363_v63, %v11421_v40  ;;  %v3455_v14 = vrot.slane %v3447_v5, %v11421_v40  ;;  %v3462_v27 = vrot.slane %v3448_v6, %v11421_v40  ;;  %v3397_v18 = vcombine.low %v2836_v15, %v2837_v47  ;;  %v2844_v24 = vld [vmem:[#allocation2 + $0x8c] sm:$0x3]  ;;  %v2845_v25 = vld [vmem:[#allocation2 + $0x8e] sm:$0x3]  ;;  %v2854_v32 = vld [vmem:[#allocation2 + $0xa0] sm:$0x3] }
 0x18a   : > { %v3344_v4 = vcombine.low %v3336_v22, %v3343_v2  ;;  %v3370_v19 = vrot.slane %v3362_v7, %v11421_v40  ;;  %v3396_v20 = vcombine.low %v2834_v17, %v2835_v11  ;;  %v3429_v1 = vcombine.low %v3421_v48, %v3428_v8  ;;  %v2862_v33 = vld [vmem:[#allocation2 + $0xb0] sm:$0x3]  ;;  %v12062_v28 = vld [vmem:[#allocation2 + $0x98] sm:$0x3]  ;;  %v2863_v31 = vld [vmem:[#allocation2 + $0xb2] sm:$0x3] }
 0x18b   : > { %v3482_v26 = vcombine.low %v2856_v23, %v2857_v13  ;;  %v2864_v35 = vld [vmem:[#allocation2 + $0xb4] sm:$0x3]  ;;  %v2865_v36 = vld [vmem:[#allocation2 + $0xb6] sm:$0x3]  ;;  %v3463_v37 = vcombine.low %v3455_v14, %v3462_v27  ;;  %v3411_v41 = vrot.slane %v3397_v18, %v11421_v40  ;;  %v3481_v58 = vcombine.low %v2854_v32, %v2855_v9  ;;  %v2851_v42 = vld [vmem:[#allocation2 + $0x9a] sm:$0x3] }
 0x18c   : > { %3703 = vrot.lane.b32.xlu1 %v3310_v53, %s11307_s25  ;;  %v3378_v30 = vcombine.low %v3370_v19, %v3377_v12  ;;  %v3431_v49 = vcombine.low %v2844_v24, %v2845_v25  ;;  %v2852_v38 = vld [vmem:[#allocation2 + $0x9c] sm:$0x3]  ;;  %v2853_v51 = vld [vmem:[#allocation2 + $0x9e] sm:$0x3]  ;;  %v3404_v50 = vrot.slane %v3396_v20, %v11421_v40  ;;  %v2842_v43 = vld [vmem:[#allocation2 + $0x88] sm:$0x3]  ;;  %v3515_v0 = vcombine.low %v2862_v33, %v2863_v31 }
 0x18d   : > { %3713 = vrot.lane.b32.xlu0 %v3395_v10, %s11307_s25  ;;  %v3496_v60 = vrot.slane %v3482_v26, %v11421_v40  ;;  %v3430_v61 = vcombine.low %v2842_v43, %v2843_v16  ;;  %v3516_v39 = vcombine.low %v2864_v35, %v2865_v36  ;;  %v2873_v46 = vld [vmem:[#allocation2 + $0xc6] sm:$0x3]  ;;  %v3464_v34 = vcombine.low %v12062_v28, %v2851_v42  ;;  %v12077_v54 = vld [vmem:[#allocation2 + $0xc2] sm:$0x3]  ;;  %v2872_v59 = vld [vmem:[#allocation2 + $0xc4] sm:$0x3] }
 0x18e   : > { %v3465_v44 = vcombine.low %v2852_v38, %v2853_v51  ;;  %v3412_v52 = vcombine.low %v3404_v50, %v3411_v41  ;;  %v3489_v3 = vrot.slane %v3481_v58, %v11421_v40  ;;  %v3445_v55 = vrot.slane %v3431_v49, %v11421_v40  ;;  %v2870_v56 = vld [vmem:[#allocation2 + $0xc0] sm:$0x3]  ;;  %v12082_v57 = vld [vmem:[#allocation2 + $0xaa] sm:$0x3]  ;;  %v2860_v29 = vld [vmem:[#allocation2 + $0xac] sm:$0x3] }
 0x18f   : > { %v2861_v62 = vld [vmem:[#allocation2 + $0xae] sm:$0x3]  ;;  %v3550_v63 = vcombine.low %v2872_v59, %v2873_v46  ;;  %v12084_v53 = vld [vmem:[#allocation2 + $0xd0] sm:$0x3]  ;;  %v12086_v2 = vld [vmem:[#allocation2 + $0xd2] sm:$0x3]  ;;  %v3438_v7 = vrot.slane %v3430_v61, %v11421_v40  ;;  %v12095_v47 = vrot.slane %v3515_v0, %v11421_v40  ;;  %v12098_v10 = vrot.slane %v3516_v39, %v11421_v40 }
 0x190   : > { %3707 = vrot.lane.b32.xlu1 %v3344_v4, %s11307_s25  ;;  %v12088_v21 = vld [vmem:[#allocation2 + $0xd4] sm:$0x3]  ;;  %v12090_v5 = vld [vmem:[#allocation2 + $0xd6] sm:$0x3]  ;;  %v3497_v6 = vcombine.low %v3489_v3, %v3496_v60  ;;  %v12100_v22 = vld [vmem:[#allocation2 + $0xa8] sm:$0x3]  ;;  %v12127_v28 = vrot.slane %v3464_v34, %v11421_v40  ;;  %v3549_v31 = vcombine.low %v2870_v56, %v12077_v54  ;;  %v3499_v35 = vcombine.low %v2860_v29, %v2861_v62 }
 0x191   : > { %3717 = vrot.lane.b32.xlu0 %v3429_v1, %s11307_s25  ;;  %v12102_v8 = vld [vmem:[#allocation2 + $0xb8] sm:$0x3]  ;;  %v12104_v11 = vld [vmem:[#allocation2 + $0xba] sm:$0x3]  ;;  %v2947_v48 = vld [vmem:[%s12074_s9] sm:$0xff]  ;;  %v3446_v58 = vcombine.low %v3438_v7, %v3445_v55  ;;  %v12141_v51 = vrot.slane %v3550_v63, %v11421_v40  ;;  %v3498_v50 = vcombine.low %v12100_v22, %v12082_v57  ;;  %v3531_v61 = vcombine.low %v12095_v47, %v12098_v10 }
 0x192   : > { %v2948_v12 = vld [vmem:[%s12074_s9 + $0x8] sm:$0xff]  ;;  %v2951_v15 = vld [vmem:[%s12074_s9 + $0x20] sm:$0xff]  ;;  %v2949_v13 = vld [vmem:[%s12074_s9 + $0x10] sm:$0xff]  ;;  %v3583_v0 = vcombine.low %v12084_v53, %v12086_v2  ;;  %v3584_v39 = vcombine.low %v12088_v21, %v12090_v5  ;;  %v12163_v54 = vrot.slane %v3499_v35, %v11421_v40  ;;  %v3532_v59 = vcombine.low %v12102_v8, %v12104_v11  ;;  %2981 = vst.msk [vmem:[#allocation3 + $0x19] sm:$0xff] %vm2980_vm3, %v2947_v48 }
 0x193   : > { %v2953_v4 = vld [vmem:[%s12074_s9 + $0x30] sm:$0xff]  ;;  %v2950_v14 = vld [vmem:[%s12074_s9 + $0x18] sm:$0xff]  ;;  %v2955_v27 = vld [vmem:[%s12074_s9 + $0x40] sm:$0xff]  ;;  %2982 = vst.msk [vmem:[#allocation3 + $0x21] sm:$0xff] %vm2980_vm3, %v2948_v12  ;;  %v3920_v29 = vsel %vm360_vm0, %v11855_v45, 0  ;;  %v11308_v22 = vmov 0.0  }
 0x194   : > { %3711 = vrot.lane.b32.xlu1 %v3378_v30, %s11307_s25  ;;  %v2952_v17 = vld [vmem:[%s12074_s9 + $0x28] sm:$0xff]  ;;  %v2957_v18 = vld [vmem:[%s12074_s9 + $0x50] sm:$0xff]  ;;  %v2954_v19 = vld [vmem:[%s12074_s9 + $0x38] sm:$0xff]  ;;  %v12130_v30 = vrot.slane %v3465_v44, %v11421_v40  ;;  %v12160_v44 = vrot.slane %v3549_v31, %v11421_v40  ;;  %2985 = vst.msk [vmem:[#allocation3 + $0x49] sm:$0xff] %vm2980_vm3, %v2951_v15  ;;  %10075 = vmatpush3.bf16.msra.mxu0 %v3920_v29 }
 0x195   : > { %3721 = vrot.lane.b32.xlu0 %v3463_v37, %s11307_s25  ;;  %v2959_v20 = vld [vmem:[%s12074_s9 + $0x60] sm:$0xff]  ;;  %v2956_v9 = vld [vmem:[%s12074_s9 + $0x48] sm:$0xff]  ;;  %v2961_v23 = vld [vmem:[%s12074_s9 + $0x70] sm:$0xff]  ;;  %2983 = vst.msk [vmem:[#allocation3 + $0x31] sm:$0xff] %vm2980_vm3, %v2949_v13  ;;  %v3591_v45 = vrot.slane %v3583_v0, %v11421_v40  ;;  %v3598_v48 = vrot.slane %v3584_v39, %v11421_v40 }
 0x196   : > { %v2958_v16 = vld [vmem:[%s12074_s9 + $0x58] sm:$0xff]  ;;  %v2963_v24 = vld [vmem:[%s12074_s9 + $0x80] sm:$0xff]  ;;  %v2960_v25 = vld [vmem:[%s12074_s9 + $0x68] sm:$0xff]  ;;  %v3480_v34 = vcombine.low %v12127_v28, %v12130_v30  ;;  %2987 = vst.msk [vmem:[#allocation3 + $0x61] sm:$0xff] %vm2980_vm3, %v2953_v4  ;;  %v3565_v63 = vcombine.low %v12160_v44, %v12141_v51 }
 0x197   : > { %v2965_v1 = vld [vmem:[%s12074_s9 + $0x90] sm:$0xff]  ;;  %v2962_v32 = vld [vmem:[%s12074_s9 + $0x78] sm:$0xff]  ;;  %v2967_v26 = vld [vmem:[%s12074_s9 + $0xa0] sm:$0xff]  ;;  %2984 = vst.msk [vmem:[#allocation3 + $0x39] sm:$0xff] %vm2980_vm3, %v2950_v14  ;;  %v3599_v8 = vcombine.low %v3591_v45, %v3598_v48 }
 0x198   : > { %3715 = vrot.lane.b32.xlu1 %v3412_v52, %s11307_s25  ;;  %v2964_v33 = vld [vmem:[%s12074_s9 + $0x88] sm:$0xff]  ;;  %v2969_v36 = vld [vmem:[%s12074_s9 + $0xb0] sm:$0xff]  ;;  %v2966_v37 = vld [vmem:[%s12074_s9 + $0x98] sm:$0xff]  ;;  %2989 = vst.msk [vmem:[#allocation3 + $0x79] sm:$0xff] %vm2980_vm3, %v2955_v27  ;;  %v3540_v27 = vrot.slane %v3532_v59, %v11421_v40 }
 0x199   : > { %v2971_v41 = vld [vmem:[%s12074_s9 + $0xc0] sm:$0xff]  ;;  %3725 = vrot.lane.b32.xlu0 %v3497_v6, %s11307_s25  ;;  %v2968_v49 = vld [vmem:[%s12074_s9 + $0xa8] sm:$0xff]  ;;  %v2973_v42 = vld [vmem:[%s12074_s9 + $0xd0] sm:$0xff]  ;;  %2986 = vst.msk [vmem:[#allocation3 + $0x51] sm:$0xff] %vm2980_vm3, %v2952_v17  ;;  %v12216_v6 = vrot.slane %v3498_v50, %v11421_v40 }
 0x19a   : > { %v2970_v38 = vld [vmem:[%s12074_s9 + $0xb8] sm:$0xff]  ;;  %v2975_v46 = vld [vmem:[%s12074_s9 + $0xe0] sm:$0xff]  ;;  %2991 = vst.msk [vmem:[#allocation3 + $0x91] sm:$0xff] %vm2980_vm3, %v2957_v18  ;;  %2988 = vst.msk [vmem:[#allocation3 + $0x69] sm:$0xff] %vm2980_vm3, %v2954_v19 }
 0x19b   : > { %v12145_v43 = vld [vmem:[#allocation2 + $0xbc] sm:$0x3]  ;;  %v12147_v60 = vld [vmem:[#allocation2 + $0xbe] sm:$0x3]  ;;  %v12167_v52 = vld [vmem:[#allocation2 + $0xe6] sm:$0x3]  ;;  %v3514_v14 = vcombine.low %v12216_v6, %v12163_v54 }
 0x19c   : > { %3719 = vrot.lane.b32.xlu1 %v3446_v58, %s11307_s25  ;;  %v12180_v3 = vld [vmem:[%s13515_s4 + $0x4] sm:$0xf]  ;;  %2993 = vst.msk [vmem:[#allocation3 + $0xa9] sm:$0xff] %vm2980_vm3, %v2959_v20  ;;  %2990 = vst.msk [vmem:[#allocation3 + $0x81] sm:$0xff] %vm2980_vm3, %v2956_v9  ;;  %v3533_v55 = vcombine.low %v12145_v43, %v12147_v60  ;;  %v12204_v56 = vld [vmem:[#allocation2 + $0xca] sm:$0x3] }
 0x19d   : > { %2995 = vst.msk [vmem:[#allocation3 + $0xc1] sm:$0xff] %vm2980_vm3, %v2961_v23  ;;  %2992 = vst.msk [vmem:[#allocation3 + $0x99] sm:$0xff] %vm2980_vm3, %v2958_v16  ;;  %3729 = vrot.lane.b32.xlu0 %v3531_v61, %s11307_s25  ;;  %v12206_v57 = vld [vmem:[#allocation2 + $0xce] sm:$0x3]  ;;  %v12218_v7 = vld [vmem:[#allocation2 + $0xe2] sm:$0x3]  ;;  %11267 = vmatprep.subr.msk.bf16.mxu0 %vm360_vm0, %v12180_v3 }
 0x19e   : > { %2997 = vst.msk [vmem:[#allocation3 + $0xd9] sm:$0xff] %vm2980_vm3, %v2963_v24  ;;  %2994 = vst.msk [vmem:[#allocation3 + $0xb1] sm:$0xff] %vm2980_vm3, %v2960_v25  ;;  %v12211_v62 = vld [vmem:[%s12074_s9 + $0xc8] sm:$0xff]  ;;  %v12220_v47 = vld [vmem:[#allocation2 + $0xe4] sm:$0x3]  ;;  %v3547_v17 = vrot.slane %v3533_v55, %v11421_v40 }
 0x19f   : > { %2999 = vst.msk [vmem:[#allocation3 + $0xf1] sm:$0xff] %vm2980_vm3, %v2965_v1  ;;  %2996 = vst.msk [vmem:[#allocation3 + $0xc9] sm:$0xff] %vm2980_vm3, %v2962_v32  ;;  %v12222_v10 = vld [vmem:[#allocation2 + $0xcc] sm:$0x3]  ;;  %v2886_v12 = vld [vmem:[#allocation2 + $0xe0] sm:$0x3]  ;;  %v3618_v15 = vcombine.low %v12220_v47, %v12167_v52 }
 0x1a0   : > { %3001 = vst.msk [vmem:[#allocation3 + $0x109] sm:$0xff] %vm2980_vm3, %v2967_v26  ;;  %2998 = vst.msk [vmem:[#allocation3 + $0xe1] sm:$0xff] %vm2980_vm3, %v2964_v33  ;;  %3723 = vrot.lane.b32.xlu1 %v3480_v34, %s11307_s25  ;;  %v2894_v13 = vld [vmem:[#allocation2 + $0xf0] sm:$0x3]  ;;  %v3567_v2 = vcombine.low %v12222_v10, %v12206_v57  ;;  %v2895_v21 = vld [vmem:[#allocation2 + $0xf2] sm:$0x3]  ;;  %v3617_v18 = vcombine.low %v2886_v12, %v12218_v7  ;;  %v3548_v33 = vcombine.low %v3540_v27, %v3547_v17 }
 0x1a1   : > { %3003 = vst.msk [vmem:[#allocation3 + $0x121] sm:$0xff] %vm2980_vm3, %v2969_v36  ;;  %3000 = vst.msk [vmem:[#allocation3 + $0xf9] sm:$0xff] %vm2980_vm3, %v2966_v37  ;;  %v2977_v53 = vld [vmem:[%s12074_s9 + $0xf0] sm:$0xff]  ;;  %3733 = vrot.lane.b32.xlu0 %v3565_v63, %s11307_s25  ;;  %v2874_v19 = vld [vmem:[#allocation2 + $0xc8] sm:$0x3]  ;;  %v3632_v11 = vrot.slane %v3618_v15, %v11421_v40  ;;  %v3651_v1 = vcombine.low %v2894_v13, %v2895_v21  ;;  %v4214_v21 = vsel %vm360_vm0, %v12180_v3, 0 }
 0x1a2   : > { %3005 = vst.msk [vmem:[#allocation3 + $0x139] sm:$0xff] %vm2980_vm3, %v2971_v41  ;;  %3002 = vst.msk [vmem:[#allocation3 + $0x111] sm:$0xff] %vm2980_vm3, %v2968_v49  ;;  %v2896_v5 = vld [vmem:[#allocation2 + $0xf4] sm:$0x3]  ;;  %v2897_v4 = vld [vmem:[#allocation2 + $0xf6] sm:$0x3]  ;;  %v3566_v23 = vcombine.low %v2874_v19, %v12204_v56  ;;  %v3581_v26 = vrot.slane %v3567_v2, %v11421_v40  ;;  %v3625_v28 = vrot.slane %v3617_v18, %v11421_v40 }
 0x1a3   : > { %3007 = vst.msk [vmem:[#allocation3 + $0x151] sm:$0xff] %vm2980_vm3, %v2973_v42  ;;  %3004 = vst.msk [vmem:[#allocation3 + $0x129] sm:$0xff] %vm2980_vm3, %v2970_v38  ;;  %v2882_v20 = vld [vmem:[#allocation2 + $0xd8] sm:$0x3]  ;;  %v2883_v16 = vld [vmem:[#allocation2 + $0xda] sm:$0x3]  ;;  %v3652_v32 = vcombine.low %v2896_v5, %v2897_v4  ;;  %v3659_v42 = vrot.slane %v3651_v1, %v11421_v40 }
 0x1a4   : > { %3009 = vst.msk [vmem:[#allocation3 + $0x169] sm:$0xff] %vm2980_vm3, %v2975_v46  ;;  %6500 = vst.msk [vmem:[#allocation4] sm:$0xff] %vm2980_vm3, %v11308_v22  ;;  %v2974_v9 = vld [vmem:[%s12074_s9 + $0xd8] sm:$0xff]  ;;  %3727 = vrot.lane.b32.xlu1 %v3514_v14, %s11307_s25  ;;  %v3600_v30 = vcombine.low %v2882_v20, %v2883_v16  ;;  %v2976_v36 = vld [vmem:[%s12074_s9 + $0xe8] sm:$0xff]  ;;  %v3574_v37 = vrot.slane %v3566_v23, %v11421_v40  ;;  %v3633_v49 = vcombine.low %v3625_v28, %v3632_v11 }
 0x1a5   : > { %2902 = vst.msk [vmem:[#allocation3] sm:$0xff] %vm347_vm1, %v11308_v22  ;;  %2903 = vst.msk [vmem:[#allocation3 + $0x8] sm:$0xff] %vm347_vm1, %v11308_v22  ;;  %v2884_v24 = vld [vmem:[#allocation2 + $0xdc] sm:$0x3]  ;;  %v2885_v25 = vld [vmem:[#allocation2 + $0xde] sm:$0x3]  ;;  %3737 = vrot.lane.b32.xlu0 %v3599_v8, %s11307_s25  ;;  %v3666_v38 = vrot.slane %v3652_v32, %v11421_v40 }
 0x1a6   : > { %2907 = vst.msk [vmem:[#allocation3 + $0x198] sm:$0xff] %vm347_vm1, %v11308_v22  ;;  %2908 = vst.msk [vmem:[#allocation3 + $0x1a0] sm:$0xff] %vm347_vm1, %v11308_v22  ;;  %v3601_v31 = vcombine.low %v2884_v24, %v2885_v25  ;;  %v2893_v41 = vld [vmem:[#allocation2 + $0xee] sm:$0x3]  ;;  %v3582_v50 = vcombine.low %v3574_v37, %v3581_v26  ;;  %v2891_v43 = vld [vmem:[#allocation2 + $0xea] sm:$0x3]  ;;  %v3608_v61 = vrot.slane %v3600_v30, %v11421_v40 }
 0x1a7   : > { %2912 = vst.msk [vmem:[#allocation3 + $0x18] sm:$0x1] %vm2910_vm4, %v11308_v22  ;;  %2913 = vst.msk [vmem:[#allocation3 + $0x30] sm:$0x1] %vm2910_vm4, %v11308_v22  ;;  %v2892_v60 = vld [vmem:[#allocation2 + $0xec] sm:$0x3]  ;;  %v3667_v55 = vcombine.low %v3659_v42, %v3666_v38 }
 0x1a8   : > { %2914 = vst.msk [vmem:[#allocation3 + $0x48] sm:$0x1] %vm2910_vm4, %v11308_v22  ;;  %2915 = vst.msk [vmem:[#allocation3 + $0x60] sm:$0x1] %vm2910_vm4, %v11308_v22  ;;  %3731 = vrot.lane.b32.xlu1 %v3548_v33, %s11307_s25  ;;  %v3615_v0 = vrot.slane %v3601_v31, %v11421_v40  ;;  %v2890_v39 = vld [vmem:[#allocation2 + $0xe8] sm:$0x3]  ;;  %v3635_v46 = vcombine.low %v2892_v60, %v2893_v41 }
 0x1a9   : > { %2916 = vst.msk [vmem:[#allocation3 + $0x78] sm:$0x1] %vm2910_vm4, %v11308_v22  ;;  %2917 = vst.msk [vmem:[#allocation3 + $0x90] sm:$0x1] %vm2910_vm4, %v11308_v22  ;;  %3741 = vrot.lane.b32.xlu0 %v3633_v49, %s11307_s25  ;;  %v2898_v34 = vld [vmem:[#allocation2 + $0xf8] sm:$0x3]  ;;  %v3634_v56 = vcombine.low %v2890_v39, %v2891_v43 }
 0x1aa   : > { %2918 = vst.msk [vmem:[#allocation3 + $0xa8] sm:$0x1] %vm2910_vm4, %v11308_v22  ;;  %2919 = vst.msk [vmem:[#allocation3 + $0xc0] sm:$0x1] %vm2910_vm4, %v11308_v22  ;;  %v2978_v44 = vld [vmem:[%s12074_s9 + $0xf8] sm:$0xff]  ;;  %v3616_v57 = vcombine.low %v3608_v61, %v3615_v0  ;;  %v3649_v29 = vrot.slane %v3635_v46, %v11421_v40 }
 0x1ab   : > { %2920 = vst.msk [vmem:[#allocation3 + $0xd8] sm:$0x1] %vm2910_vm4, %v11308_v22  ;;  %2921 = vst.msk [vmem:[#allocation3 + $0xf0] sm:$0x1] %vm2910_vm4, %v11308_v22  ;;  %v2899_v54 = vld [vmem:[#allocation2 + $0xfa] sm:$0x3]  ;;  %v3642_v6 = vrot.slane %v3634_v56, %v11421_v40 }
 0x1ac   : > { %2922 = vst.msk [vmem:[#allocation3 + $0x108] sm:$0x1] %vm2910_vm4, %v11308_v22  ;;  %2923 = vst.msk [vmem:[#allocation3 + $0x120] sm:$0x1] %vm2910_vm4, %v11308_v22  ;;  %v3823_v35 = vld [vmem:[#allocation3 + $0x8] sm:$0xff]  ;;  %3735 = vrot.lane.b32.xlu1 %v3582_v50, %s11307_s25 }
 0x1ad   : > { %2924 = vst.msk [vmem:[#allocation3 + $0x138] sm:$0x1] %vm2910_vm4, %v11308_v22  ;;  %2925 = vst.msk [vmem:[#allocation3 + $0x150] sm:$0x1] %vm2910_vm4, %v11308_v22  ;;  %v2900_v59 = vld [vmem:[#allocation2 + $0xfc] sm:$0x3]  ;;  %3745 = vrot.lane.b32.xlu0 %v3667_v55, %s11307_s25  ;;  %v3650_v7 = vcombine.low %v3642_v6, %v3649_v29 }
 0x1ae   : > { %2926 = vst.msk [vmem:[#allocation3 + $0x168] sm:$0x1] %vm2910_vm4, %v11308_v22  ;;  %2927 = vst.msk [vmem:[#allocation3 + $0x180] sm:$0x1] %vm2910_vm4, %v11308_v22  ;;  %v2901_v52 = vld [vmem:[#allocation2 + $0xfe] sm:$0x3] }
 0x1af   : > { %2930 = vst.msk [vmem:[#allocation3 + $0x29] sm:$0x1] %vm2910_vm4, %v11308_v22  ;;  %2931 = vst.msk [vmem:[#allocation3 + $0x41] sm:$0x1] %vm2910_vm4, %v11308_v22  ;;  %v3669_v63 = vcombine.low %v2900_v59, %v2901_v52  ;;  %v12459_v5 = vld [vmem:[%s13515_s4 + $0x8] sm:$0xf] }
 0x1b0   : > { %2932 = vst.msk [vmem:[#allocation3 + $0x59] sm:$0x1] %vm2910_vm4, %v11308_v22  ;;  %2933 = vst.msk [vmem:[#allocation3 + $0x71] sm:$0x1] %vm2910_vm4, %v11308_v22  ;;  %3739 = vrot.lane.b32.xlu1 %v3616_v57, %s11307_s25 }
 0x1b1   : > { %2934 = vst.msk [vmem:[#allocation3 + $0x89] sm:$0x1] %vm2910_vm4, %v11308_v22  ;;  %2935 = vst.msk [vmem:[#allocation3 + $0xa1] sm:$0x1] %vm2910_vm4, %v11308_v22  ;;  %v3683_v10 = vrot.slane %v3669_v63, %v11421_v40 }
 0x1b2   : > { %2936 = vst.msk [vmem:[#allocation3 + $0xb9] sm:$0x1] %vm2910_vm4, %v11308_v22  ;;  %2937 = vst.msk [vmem:[#allocation3 + $0xd1] sm:$0x1] %vm2910_vm4, %v11308_v22 }
 0x1b3   : > { %2938 = vst.msk [vmem:[#allocation3 + $0xe9] sm:$0x1] %vm2910_vm4, %v11308_v22  ;;  %2939 = vst.msk [vmem:[#allocation3 + $0x101] sm:$0x1] %vm2910_vm4, %v11308_v22 }
 0x1b4   : > { %2940 = vst.msk [vmem:[#allocation3 + $0x119] sm:$0x1] %vm2910_vm4, %v11308_v22  ;;  %2941 = vst.msk [vmem:[#allocation3 + $0x131] sm:$0x1] %vm2910_vm4, %v11308_v22  ;;  %3743 = vrot.lane.b32.xlu1 %v3650_v7, %s11307_s25 }
 0x1b5   : > { %2942 = vst.msk [vmem:[#allocation3 + $0x149] sm:$0x1] %vm2910_vm4, %v11308_v22  ;;  %2943 = vst.msk [vmem:[#allocation3 + $0x161] sm:$0x1] %vm2910_vm4, %v11308_v22 }
 0x1b6   : > { %2944 = vst.msk [vmem:[#allocation3 + $0x179] sm:$0x1] %vm2910_vm4, %v11308_v22  ;;  %2945 = vst.msk [vmem:[#allocation3 + $0x191] sm:$0x1] %vm2910_vm4, %v11308_v22 }
 0x1b7   : > { %6501 = vst.msk [vmem:[#allocation4 + $0x8] sm:$0xff] %vm2980_vm3, %v11308_v22  ;;  %6505 = vst.msk [vmem:[#allocation4 + $0x198] sm:$0xff] %vm2980_vm3, %v11308_v22 }
 0x1b8   : > { %6506 = vst.msk [vmem:[#allocation4 + $0x1a0] sm:$0xff] %vm2980_vm3, %v11308_v22  ;;  %3006 = vst.msk [vmem:[#allocation3 + $0x141] sm:$0xff] %vm2980_vm3, %v12211_v62  ;;  %v3668_v62 = vcombine.low %v2898_v34, %v2899_v54 }
 0x1b9   : > { %6509 = vst.msk [vmem:[#allocation4 + $0x18] sm:$0x1] %vm893_vm2, %v11308_v22  ;;  %6510 = vst.msk [vmem:[#allocation4 + $0x30] sm:$0x1] %vm893_vm2, %v11308_v22 }
 0x1ba   : > { %6511 = vst.msk [vmem:[#allocation4 + $0x48] sm:$0x1] %vm893_vm2, %v11308_v22  ;;  %6512 = vst.msk [vmem:[#allocation4 + $0x60] sm:$0x1] %vm893_vm2, %v11308_v22  ;;  %v3676_v47 = vrot.slane %v3668_v62, %v11421_v40 }
 0x1bb   : > { %6513 = vst.msk [vmem:[#allocation4 + $0x78] sm:$0x1] %vm893_vm2, %v11308_v22  ;;  %6514 = vst.msk [vmem:[#allocation4 + $0x90] sm:$0x1] %vm893_vm2, %v11308_v22 }
 0x1bc   : > { %6515 = vst.msk [vmem:[#allocation4 + $0xa8] sm:$0x1] %vm893_vm2, %v11308_v22  ;;  %6516 = vst.msk [vmem:[#allocation4 + $0xc0] sm:$0x1] %vm893_vm2, %v11308_v22  ;;  %v3684_v45 = vcombine.low %v3676_v47, %v3683_v10 }
 0x1bd   : > { %6517 = vst.msk [vmem:[#allocation4 + $0xd8] sm:$0x1] %vm893_vm2, %v11308_v22  ;;  %6518 = vst.msk [vmem:[#allocation4 + $0xf0] sm:$0x1] %vm893_vm2, %v11308_v22 }
 0x1be   : > { %6519 = vst.msk [vmem:[#allocation4 + $0x108] sm:$0x1] %vm893_vm2, %v11308_v22  ;;  %6520 = vst.msk [vmem:[#allocation4 + $0x120] sm:$0x1] %vm893_vm2, %v11308_v22  ;;  %3747 = vrot.lane.b32.xlu1 %v3684_v45, %s11307_s25 }
 0x1bf   : > { %6521 = vst.msk [vmem:[#allocation4 + $0x138] sm:$0x1] %vm893_vm2, %v11308_v22  ;;  %6522 = vst.msk [vmem:[#allocation4 + $0x150] sm:$0x1] %vm893_vm2, %v11308_v22 }
 0x1c0   : > { %6523 = vst.msk [vmem:[#allocation4 + $0x168] sm:$0x1] %vm893_vm2, %v11308_v22  ;;  %6524 = vst.msk [vmem:[#allocation4 + $0x180] sm:$0x1] %vm893_vm2, %v11308_v22 }
 0x1c1   : > { %6527 = vst.msk [vmem:[#allocation4 + $0x29] sm:$0x1] %vm893_vm2, %v11308_v22  ;;  %6528 = vst.msk [vmem:[#allocation4 + $0x41] sm:$0x1] %vm893_vm2, %v11308_v22 }
 0x1c2   : > { %6529 = vst.msk [vmem:[#allocation4 + $0x59] sm:$0x1] %vm893_vm2, %v11308_v22  ;;  %6530 = vst.msk [vmem:[#allocation4 + $0x71] sm:$0x1] %vm893_vm2, %v11308_v22 }
 0x1c3   : > { %6531 = vst.msk [vmem:[#allocation4 + $0x89] sm:$0x1] %vm893_vm2, %v11308_v22  ;;  %6532 = vst.msk [vmem:[#allocation4 + $0xa1] sm:$0x1] %vm893_vm2, %v11308_v22 }
 0x1c4   : > { %6533 = vst.msk [vmem:[#allocation4 + $0xb9] sm:$0x1] %vm893_vm2, %v11308_v22  ;;  %6534 = vst.msk [vmem:[#allocation4 + $0xd1] sm:$0x1] %vm893_vm2, %v11308_v22 }
 0x1c5   : > { %6535 = vst.msk [vmem:[#allocation4 + $0xe9] sm:$0x1] %vm893_vm2, %v11308_v22  ;;  %6536 = vst.msk [vmem:[#allocation4 + $0x101] sm:$0x1] %vm893_vm2, %v11308_v22  ;;  %v3686_v48 = vpop.permute.xlu0 %3685 }
 0x1c6   : > { %6537 = vst.msk [vmem:[#allocation4 + $0x119] sm:$0x1] %vm893_vm2, %v11308_v22  ;;  %6538 = vst.msk [vmem:[#allocation4 + $0x131] sm:$0x1] %vm893_vm2, %v11308_v22 }
 0x1c7   : > { %6539 = vst.msk [vmem:[#allocation4 + $0x149] sm:$0x1] %vm893_vm2, %v11308_v22  ;;  %6540 = vst.msk [vmem:[#allocation4 + $0x161] sm:$0x1] %vm893_vm2, %v11308_v22 }
 0x1c8   : > { %6541 = vst.msk [vmem:[#allocation4 + $0x179] sm:$0x1] %vm893_vm2, %v11308_v22  ;;  %6542 = vst.msk [vmem:[#allocation4 + $0x191] sm:$0x1] %vm893_vm2, %v11308_v22 }
 0x1c9   : > { %2911 = vst.msk [vmem:[#allocation3] sm:$0x1] %vm2910_vm4, %v11308_v22  ;;  %2928 = vst.msk [vmem:[#allocation3 + $0x198] sm:$0x1] %vm2910_vm4, %v11308_v22 }
 0x1ca   : > { %6508 = vst.msk [vmem:[#allocation4] sm:$0x1] %vm893_vm2, %v11308_v22  ;;  %6525 = vst.msk [vmem:[#allocation4 + $0x198] sm:$0x1] %vm893_vm2, %v11308_v22  ;;  %v3688_v40 = vpop.permute.xlu0 %3687 }
 0x1cb   : > { %3011 = vst.msk [vmem:[#allocation3 + $0x181] sm:$0xff] %vm2980_vm3, %v2977_v53  ;;  %3008 = vst.msk [vmem:[#allocation3 + $0x159] sm:$0xff] %vm2980_vm3, %v2974_v9 }
 0x1cc   : > { %3010 = vst.msk [vmem:[#allocation3 + $0x171] sm:$0xff] %vm2980_vm3, %v2976_v36  ;;  %3012 = vst.msk [vmem:[#allocation3 + $0x189] sm:$0xff] %vm2980_vm3, %v2978_v44 }
 0x1cd   : > { %2905 = vst.msk [vmem:[#allocation3 + $0x10] sm:$0x3] %vm2904_vm5, %v11308_v22  ;;  %2909 = vst.msk [vmem:[#allocation3 + $0x1a8] sm:$0x3] %vm2904_vm5, %v11308_v22 }
 0x1ce   : > { %2929 = vst.msk [vmem:[#allocation3 + $0x11] sm:$0x1] %vm2910_vm4, %v11308_v22  ;;  %2946 = vst.msk [vmem:[#allocation3 + $0x1a9] sm:$0x1] %vm2910_vm4, %v11308_v22 }
 0x1cf   : > { %3782 = vst.msk [vmem:[#allocation3 + $0x19] sm:$0xff] %vm3781_vm6, %v3686_v48  ;;  %3783 = vst.msk [vmem:[#allocation3 + $0x21] sm:$0xff] %vm3781_vm6, %v3688_v40  ;;  %v3690_v12 = vpop.permute.xlu1 %3689  ;;  %v3694_v15 = vpop.permute.xlu0 %3693 }
 0x1d0   : > { %v3822_v58 = vld [vmem:[#allocation3] sm:$0xff]  ;;  %3784 = vst.msk [vmem:[#allocation3 + $0x31] sm:$0xff] %vm3781_vm6, %v3690_v12  ;;  %3786 = vst.msk [vmem:[#allocation3 + $0x49] sm:$0xff] %vm3781_vm6, %v3694_v15 }
 0x1d1   : > { %v3854_v51 = vpack.c.bf16 %v3823_v35, %v3822_v58  ;;  %6503 = vst.msk [vmem:[#allocation4 + $0x10] sm:$0x3] %vm6502_vm8, %v11308_v22  ;;  %6507 = vst.msk [vmem:[#allocation4 + $0x1a8] sm:$0x3] %vm6502_vm8, %v11308_v22 }
 0x1d2   : > { %6526 = vst.msk [vmem:[#allocation4 + $0x11] sm:$0x1] %vm893_vm2, %v11308_v22  ;;  %6543 = vst.msk [vmem:[#allocation4 + $0x1a9] sm:$0x1] %vm893_vm2, %v11308_v22 }
 0x1d3   : > { %10076 = vmatprep.mubr.msk.bf16.mxu0 %vm347_vm1, %v3854_v51 }
 0x1d6   : > { %v3824_v13 = vld [vmem:[#allocation3 + $0x18] sm:$0xff]  ;;  %v3825_v53 = vld [vmem:[#allocation3 + $0x20] sm:$0xff] }
 0x1d7   : > { %v12452_v2 = vpack.c.bf16 %v3825_v53, %v3824_v13  ;;  %v3826_v18 = vld [vmem:[#allocation3 + $0x30] sm:$0xff]  ;;  %v3828_v24 = vld [vmem:[#allocation3 + $0x48] sm:$0xff] }
 0x1d9   : > { %10077 = vmatmul.mubr.msk.bf16.vlgmr.msra.gmra.mrb[16].mxu0 %vm347_vm1, %v12452_v2 }
 0x1da   : > { %10109 = vmatpush3.bf16.msra.mxu0 %v4214_v21 }
 0x1db   : > { %11268 = vmatprep.subr.msk.bf16.mxu0 %vm360_vm0, %v12459_v5  ;;  %v3698_v4 = vpop.permute.xlu0 %3697 }
 0x1dc   : > { %3788 = vst.msk [vmem:[#allocation3 + $0x61] sm:$0xff] %vm3781_vm6, %v3698_v4 }
 0x1e3   : > { %v3830_v32 = vld [vmem:[#allocation3 + $0x60] sm:$0xff] }
 0x1f0   : > { %v3692_v14 = vpop.permute.xlu1 %3691 }
 0x1f1   : > { %3785 = vst.msk [vmem:[#allocation3 + $0x39] sm:$0xff] %vm3781_vm6, %v3692_v14 }
 0x1f3   : > { %v3702_v27 = vpop.permute.xlu0 %3701 }
 0x1f4   : > { %3790 = vst.msk [vmem:[#allocation3 + $0x79] sm:$0xff] %vm3781_vm6, %v3702_v27 }
 0x1f6   : > { %v3696_v3 = vpop.permute.xlu1 %3695 }
 0x1f7   : > { %3787 = vst.msk [vmem:[#allocation3 + $0x51] sm:$0xff] %vm3781_vm6, %v3696_v3  ;;  %v3706_v17 = vpop.permute.xlu0 %3705 }
 0x1f8   : > { %3792 = vst.msk [vmem:[#allocation3 + $0x91] sm:$0xff] %vm3781_vm6, %v3706_v17  ;;  %v3827_v19 = vld [vmem:[#allocation3 + $0x38] sm:$0xff] }
 0x1f9   : > { %v12470_v9 = vpack.c.bf16 %v3827_v19, %v3826_v18  ;;  %v4115_v19 = vld [vmem:[#allocation3 + $0x1] sm:$0xff] }
 0x1fa   : > { %v3700_v20 = vpop.permute.xlu1 %3699 }
 0x1fb   : > { %3789 = vst.msk [vmem:[#allocation3 + $0x69] sm:$0xff] %vm3781_vm6, %v3700_v20  ;;  %v3710_v23 = vpop.permute.xlu0 %3709  ;;  %10080 = vmatprep.mubr.msk.bf16.mxu0 %vm347_vm1, %v12470_v9  ;;  %v3832_v31 = vld [vmem:[#allocation3 + $0x78] sm:$0xff]  ;;  %v4116_v20 = vld [vmem:[#allocation3 + $0x9] sm:$0xff] }
 0x1fc   : > { %3794 = vst.msk [vmem:[#allocation3 + $0xa9] sm:$0xff] %vm3781_vm6, %v3710_v23 }
 0x1fe   : > { %v3704_v16 = vpop.permute.xlu1 %3703  ;;  %v3829_v25 = vld [vmem:[#allocation3 + $0x50] sm:$0xff] }
 0x1ff   : > { %3791 = vst.msk [vmem:[#allocation3 + $0x81] sm:$0xff] %vm3781_vm6, %v3704_v16  ;;  %v12477_v8 = vpack.c.bf16 %v3829_v25, %v3828_v24  ;;  %v3714_v11 = vpop.permute.xlu0 %3713  ;;  %v3834_v58 = vld [vmem:[#allocation3 + $0x90] sm:$0xff]  ;;  %v4147_v24 = vpack.c.bf16 %v4116_v20, %v4115_v19  ;;  %v4409_v20 = vld [vmem:[#allocation3 + $0x2] sm:$0xff] }
 0x200   : > { %3796 = vst.msk [vmem:[#allocation3 + $0xc1] sm:$0xff] %vm3781_vm6, %v3714_v11  ;;  %v4118_v11 = vld [vmem:[#allocation3 + $0x21] sm:$0xff] }
 0x201   : > { %10081 = vmatmul.mubr.msk.bf16.gmra.mrb[20].mxu0 %vm347_vm1, %v12477_v8 }
 0x202   : > { %v3708_v1 = vpop.permute.xlu1 %3707  ;;  %v3831_v26 = vld [vmem:[#allocation3 + $0x68] sm:$0xff] }
 0x203   : > { %3793 = vst.msk [vmem:[#allocation3 + $0x99] sm:$0xff] %vm3781_vm6, %v3708_v1  ;;  %v12483_v33 = vpack.c.bf16 %v3831_v26, %v3830_v32  ;;  %v3718_v28 = vpop.permute.xlu0 %3717  ;;  %v3836_v50 = vld [vmem:[#allocation3 + $0xa8] sm:$0xff]  ;;  %v4120_v1 = vld [vmem:[#allocation3 + $0x39] sm:$0xff] }
 0x204   : > { %3798 = vst.msk [vmem:[#allocation3 + $0xd9] sm:$0xff] %vm3781_vm6, %v3718_v28  ;;  %v4117_v32 = vld [vmem:[#allocation3 + $0x19] sm:$0xff]  ;;  %v4508_v28 = vsel %vm360_vm0, %v12459_v5, 0  ;;  %v4124_v5 = vld [vmem:[#allocation3 + $0x69] sm:$0xff] }
 0x205   : > { %10084 = vmatprep.mubr.msk.bf16.mxu0 %vm347_vm1, %v12483_v33  ;;  %v12550_v26 = vpack.c.bf16 %v4118_v11, %v4117_v32  ;;  %v4411_v32 = vld [vmem:[#allocation3 + $0x1a] sm:$0xff] }
 0x206   : > { %v3712_v30 = vpop.permute.xlu1 %3711  ;;  %v3833_v35 = vld [vmem:[#allocation3 + $0x80] sm:$0xff] }
 0x207   : > { %3795 = vst.msk [vmem:[#allocation3 + $0xb1] sm:$0xff] %vm3781_vm6, %v3712_v30  ;;  %v12489_v36 = vpack.c.bf16 %v3833_v35, %v3832_v31  ;;  %v3722_v37 = vpop.permute.xlu0 %3721  ;;  %v3838_v39 = vld [vmem:[#allocation3 + $0xc0] sm:$0xff]  ;;  %v4119_v30 = vld [vmem:[#allocation3 + $0x31] sm:$0xff]  ;;  %v12559_v35 = vld [vmem:[%s13515_s4 + $0xc] sm:$0xf] }
 0x208   : > { %3800 = vst.msk [vmem:[#allocation3 + $0xf1] sm:$0xff] %vm3781_vm6, %v3722_v37  ;;  %v12554_v31 = vpack.c.bf16 %v4120_v1, %v4119_v30  ;;  %v4122_v37 = vld [vmem:[#allocation3 + $0x51] sm:$0xff] }
 0x209   : > { %10085 = vmatmul.mubr.msk.bf16.gmra.mrb[24].mxu0 %vm347_vm1, %v12489_v36  ;;  %v4413_v30 = vld [vmem:[#allocation3 + $0x32] sm:$0xff] }
 0x20a   : > { %v3716_v41 = vpop.permute.xlu1 %3715  ;;  %v3835_v49 = vld [vmem:[#allocation3 + $0x98] sm:$0xff] }
 0x20b   : > { %3797 = vst.msk [vmem:[#allocation3 + $0xc9] sm:$0xff] %vm3781_vm6, %v3716_v41  ;;  %v12495_v42 = vpack.c.bf16 %v3835_v49, %v3834_v58  ;;  %v3726_v38 = vpop.permute.xlu0 %3725  ;;  %v3840_v59 = vld [vmem:[#allocation3 + $0xd8] sm:$0xff]  ;;  %v4121_v41 = vld [vmem:[#allocation3 + $0x49] sm:$0xff]  ;;  %v4123_v49 = vld [vmem:[#allocation3 + $0x61] sm:$0xff] }
 0x20c   : > { %3802 = vst.msk [vmem:[#allocation3 + $0x109] sm:$0xff] %vm3781_vm6, %v3726_v38  ;;  %v12567_v58 = vpack.c.bf16 %v4122_v37, %v4121_v41  ;;  %v12569_v38 = vpack.c.bf16 %v4124_v5, %v4123_v49  ;;  %v4414_v37 = vld [vmem:[#allocation3 + $0x3a] sm:$0xff]  ;;  %v4802_v41 = vsel %vm360_vm0, %v12559_v35, 0 }
 0x20d   : > { %10088 = vmatprep.mubr.msk.bf16.mxu0 %vm347_vm1, %v12495_v42  ;;  %v12624_v49 = vpack.c.bf16 %v4414_v37, %v4413_v30 }
 0x20e   : > { %v3720_v51 = vpop.permute.xlu1 %3719  ;;  %v3837_v43 = vld [vmem:[#allocation3 + $0xb0] sm:$0xff] }
 0x20f   : > { %3799 = vst.msk [vmem:[#allocation3 + $0xe1] sm:$0xff] %vm3781_vm6, %v3720_v51  ;;  %v12501_v60 = vpack.c.bf16 %v3837_v43, %v3836_v50  ;;  %v3730_v61 = vpop.permute.xlu0 %3729  ;;  %v3842_v29 = vld [vmem:[#allocation3 + $0xf0] sm:$0xff]  ;;  %v4126_v51 = vld [vmem:[#allocation3 + $0x81] sm:$0xff]  ;;  %v4128_v50 = vld [vmem:[#allocation3 + $0x99] sm:$0xff] }
 0x210   : > { %3804 = vst.msk [vmem:[#allocation3 + $0x121] sm:$0xff] %vm3781_vm6, %v3730_v61  ;;  %v4125_v43 = vld [vmem:[#allocation3 + $0x79] sm:$0xff] }
 0x211   : > { %10089 = vmatmul.mubr.msk.bf16.gmra.mrb[28].mxu0 %vm347_vm1, %v12501_v60  ;;  %v12575_v61 = vpack.c.bf16 %v4126_v51, %v4125_v43  ;;  %v9465_v51 = vld [vmem:[%s13515_s4 + $0x10] sm:$0xf] }
 0x212   : > { %v3724_v0 = vpop.permute.xlu1 %3723  ;;  %v3839_v46 = vld [vmem:[#allocation3 + $0xc8] sm:$0xff]  ;;  %v4416_v43 = vld [vmem:[#allocation3 + $0x52] sm:$0xff] }
 0x213   : > { %3801 = vst.msk [vmem:[#allocation3 + $0xf9] sm:$0xff] %vm3781_vm6, %v3724_v0  ;;  %v12507_v34 = vpack.c.bf16 %v3839_v46, %v3838_v39  ;;  %v3734_v44 = vpop.permute.xlu0 %3733  ;;  %v3844_v47 = vld [vmem:[#allocation3 + $0x108] sm:$0xff]  ;;  %v4127_v0 = vld [vmem:[#allocation3 + $0x91] sm:$0xff] }
 0x214   : > { %3806 = vst.msk [vmem:[#allocation3 + $0x139] sm:$0xff] %vm3781_vm6, %v3734_v44  ;;  %v12577_v39 = vpack.c.bf16 %v4128_v50, %v4127_v0  ;;  %v4130_v46 = vld [vmem:[#allocation3 + $0xb1] sm:$0xff]  ;;  %v4132_v44 = vld [vmem:[#allocation3 + $0xc9] sm:$0xff] }
 0x215   : > { %10092 = vmatprep.mubr.msk.bf16.mxu0 %vm347_vm1, %v12507_v34  ;;  %v4415_v50 = vld [vmem:[#allocation3 + $0x4a] sm:$0xff]  ;;  %v4417_v0 = vld [vmem:[#allocation3 + $0x62] sm:$0xff] }
 0x216   : > { %v3728_v54 = vpop.permute.xlu1 %3727  ;;  %v3841_v52 = vld [vmem:[#allocation3 + $0xe0] sm:$0xff] }
 0x217   : > { %3803 = vst.msk [vmem:[#allocation3 + $0x111] sm:$0xff] %vm3781_vm6, %v3728_v54  ;;  %v12513_v55 = vpack.c.bf16 %v3841_v52, %v3840_v59  ;;  %v3738_v56 = vpop.permute.xlu0 %3737  ;;  %v3846_v12 = vld [vmem:[#allocation3 + $0x120] sm:$0xff]  ;;  %v4129_v54 = vld [vmem:[#allocation3 + $0xa9] sm:$0xff] }
 0x218   : > { %3808 = vst.msk [vmem:[#allocation3 + $0x151] sm:$0xff] %vm3781_vm6, %v3738_v56  ;;  %v12583_v59 = vpack.c.bf16 %v4130_v46, %v4129_v54  ;;  %v4131_v52 = vld [vmem:[#allocation3 + $0xc1] sm:$0xff]  ;;  %v4418_v46 = vld [vmem:[#allocation3 + $0x6a] sm:$0xff] }
 0x219   : > { %10093 = vmatmul.mubr.msk.bf16.gmra.mrb[32].mxu0 %vm347_vm1, %v12513_v55  ;;  %v12585_v56 = vpack.c.bf16 %v4132_v44, %v4131_v52  ;;  %v12636_v44 = vpack.c.bf16 %v4418_v46, %v4417_v0  ;;  %v4419_v54 = vld [vmem:[#allocation3 + $0x7a] sm:$0xff]  ;;  %v4420_v52 = vld [vmem:[#allocation3 + $0x82] sm:$0xff] }
 0x21a   : > { %v3732_v57 = vpop.permute.xlu1 %3731  ;;  %v3843_v62 = vld [vmem:[#allocation3 + $0xf8] sm:$0xff] }
 0x21b   : > { %3805 = vst.msk [vmem:[#allocation3 + $0x129] sm:$0xff] %vm3781_vm6, %v3732_v57  ;;  %v12519_v63 = vpack.c.bf16 %v3843_v62, %v3842_v29  ;;  %v3742_v6 = vpop.permute.xlu0 %3741  ;;  %v3848_v21 = vld [vmem:[#allocation3 + $0x138] sm:$0xff]  ;;  %v4134_v57 = vld [vmem:[#allocation3 + $0xe1] sm:$0xff] }
 0x21c   : > { %3810 = vst.msk [vmem:[#allocation3 + $0x169] sm:$0xff] %vm3781_vm6, %v3742_v6  ;;  %v4136_v29 = vld [vmem:[#allocation3 + $0xf9] sm:$0xff] }
 0x21d   : > { %10096 = vmatprep.mubr.msk.bf16.mxu0 %vm347_vm1, %v12519_v63  ;;  %v4133_v62 = vld [vmem:[#allocation3 + $0xd9] sm:$0xff] }
 0x21e   : > { %v3736_v7 = vpop.permute.xlu1 %3735  ;;  %v3845_v10 = vld [vmem:[#allocation3 + $0x110] sm:$0xff]  ;;  %v12591_v6 = vpack.c.bf16 %v4134_v57, %v4133_v62  ;;  %v12642_v62 = vpack.c.bf16 %v4420_v52, %v4419_v54 }
 0x21f   : > { %3807 = vst.msk [vmem:[#allocation3 + $0x141] sm:$0xff] %vm3781_vm6, %v3736_v7  ;;  %v12525_v45 = vpack.c.bf16 %v3845_v10, %v3844_v47  ;;  %v3746_v48 = vpop.permute.xlu0 %3745  ;;  %v3850_v3 = vld [vmem:[#allocation3 + $0x150] sm:$0xff] }
 0x220   : > { %3812 = vst.msk [vmem:[#allocation3 + $0x181] sm:$0xff] %vm3781_vm6, %v3746_v48  ;;  %v4135_v7 = vld [vmem:[#allocation3 + $0xf1] sm:$0xff] }
 0x221   : > { %10097 = vmatmul.mubr.msk.bf16.gmra.mrb[36].mxu0 %vm347_vm1, %v12525_v45  ;;  %v12593_v47 = vpack.c.bf16 %v4136_v29, %v4135_v7  ;;  %v4138_v10 = vld [vmem:[#allocation3 + $0x111] sm:$0xff]  ;;  %v4422_v29 = vld [vmem:[#allocation3 + $0x9a] sm:$0xff] }
 0x222   : > { %v3740_v40 = vpop.permute.xlu1 %3739  ;;  %v3847_v15 = vld [vmem:[#allocation3 + $0x128] sm:$0xff]  ;;  %v4421_v57 = vld [vmem:[#allocation3 + $0x92] sm:$0xff] }
 0x223   : > { %3809 = vst.msk [vmem:[#allocation3 + $0x159] sm:$0xff] %vm3781_vm6, %v3740_v40  ;;  %v12531_v13 = vpack.c.bf16 %v3847_v15, %v3846_v12  ;;  %v3852_v23 = vld [vmem:[#allocation3 + $0x168] sm:$0xff]  ;;  %v12644_v7 = vpack.c.bf16 %v4422_v29, %v4421_v57 }
 0x224   : > { %v4140_v48 = vld [vmem:[#allocation3 + $0x129] sm:$0xff]  ;;  %v4139_v15 = vld [vmem:[#allocation3 + $0x121] sm:$0xff] }
 0x225   : > { %10100 = vmatprep.mubr.msk.bf16.mxu0 %vm347_vm1, %v12531_v13  ;;  %v4137_v40 = vld [vmem:[#allocation3 + $0x109] sm:$0xff] }
 0x226   : > { %v3744_v53 = vpop.permute.xlu1 %3743  ;;  %v3849_v4 = vld [vmem:[#allocation3 + $0x140] sm:$0xff]  ;;  %v12599_v12 = vpack.c.bf16 %v4138_v10, %v4137_v40  ;;  %v4423_v10 = vld [vmem:[#allocation3 + $0xaa] sm:$0xff] }
 0x227   : > { %3811 = vst.msk [vmem:[#allocation3 + $0x171] sm:$0xff] %vm3781_vm6, %v3744_v53  ;;  %v12536_v14 = vpack.c.bf16 %v3849_v4, %v3848_v21  ;;  %v12601_v53 = vpack.c.bf16 %v4140_v48, %v4139_v15  ;;  %v4142_v21 = vld [vmem:[#allocation3 + $0x141] sm:$0xff]  ;;  %v4424_v48 = vld [vmem:[#allocation3 + $0xb2] sm:$0xff]  ;;  %v4426_v15 = vld [vmem:[#allocation3 + $0xca] sm:$0xff] }
 0x228   : > { %v4425_v40 = vld [vmem:[#allocation3 + $0xc2] sm:$0xff]  ;;  %v4434_v30 = vld [vmem:[#allocation3 + $0x12a] sm:$0xff] }
 0x229   : > { %10101 = vmatmul.mubr.msk.bf16.gmra.mrb[40].mxu0 %vm347_vm1, %v12536_v14 }
 0x22a   : > { %v3851_v17 = vld [vmem:[#allocation3 + $0x158] sm:$0xff] }
 0x22b   : > { %v12541_v18 = vpack.c.bf16 %v3851_v17, %v3850_v3  ;;  %v4144_v4 = vld [vmem:[#allocation3 + $0x159] sm:$0xff]  ;;  %v4143_v17 = vld [vmem:[#allocation3 + $0x151] sm:$0xff] }
 0x22c   : > { %v12609_v19 = vpack.c.bf16 %v4144_v4, %v4143_v17  ;;  %v12652_v4 = vpack.c.bf16 %v4426_v15, %v4425_v40  ;;  %v4428_v17 = vld [vmem:[#allocation3 + $0xe2] sm:$0xff]  ;;  %v4437_v0 = vld [vmem:[#allocation3 + $0x152] sm:$0xff]  ;;  %v4438_v46 = vld [vmem:[#allocation3 + $0x15a] sm:$0xff] }
 0x22d   : > { %10104 = vmatprep.mubr.msk.bf16.mxu0 %vm347_vm1, %v12541_v18  ;;  %v12676_v52 = vpack.c.bf16 %v4438_v46, %v4437_v0  ;;  %v9482_v40 = vld [vmem:[%s13515_s4 + $0x14] sm:$0xf] }
 0x22e   : > { %v3853_v16 = vld [vmem:[#allocation3 + $0x170] sm:$0xff] }
 0x22f   : > { %v12545_v25 = vpack.c.bf16 %v3853_v16, %v3852_v23  ;;  %v4410_v23 = vld [vmem:[#allocation3 + $0xa] sm:$0xff]  ;;  %v4440_v29 = vld [vmem:[#allocation3 + $0x172] sm:$0xff] }
 0x230   : > { %v3748_v27 = vpop.permute.xlu1 %3747  ;;  %v4146_v16 = vld [vmem:[#allocation3 + $0x171] sm:$0xff]  ;;  %v4441_v11 = vpack.c.bf16 %v4410_v23, %v4409_v20  ;;  %v4430_v23 = vld [vmem:[#allocation3 + $0xfa] sm:$0xff] }
 0x231   : > { %3813 = vst.msk [vmem:[#allocation3 + $0x189] sm:$0xff] %vm3781_vm6, %v3748_v27  ;;  %10105 = vmatmul.mubr.msk.bf16.gmra.mrb[44].mxu0 %vm347_vm1, %v12545_v25  ;;  %v4141_v27 = vld [vmem:[#allocation3 + $0x139] sm:$0xff]  ;;  %v4439_v57 = vld [vmem:[#allocation3 + $0x16a] sm:$0xff] }
 0x232   : > { %10110 = vmatprep.mubr.msk.bf16.mxu0 %vm347_vm1, %v4147_v24  ;;  %v12607_v3 = vpack.c.bf16 %v4142_v21, %v4141_v27  ;;  %v4145_v24 = vld [vmem:[#allocation3 + $0x169] sm:$0xff]  ;;  %v12650_v21 = vpack.c.bf16 %v4424_v48, %v4423_v10  ;;  %v4427_v27 = vld [vmem:[#allocation3 + $0xda] sm:$0xff]  ;;  %v4429_v20 = vld [vmem:[#allocation3 + $0xf2] sm:$0xff]  ;;  %v12682_v10 = vpack.c.bf16 %v4440_v29, %v4439_v57  ;;  %v5096_v48 = vsel %vm360_vm0, %v9465_v51, 0 }
 0x233   : > { %v12615_v1 = vpack.c.bf16 %v4146_v16, %v4145_v24  ;;  %v12658_v16 = vpack.c.bf16 %v4428_v17, %v4427_v27  ;;  %v12660_v24 = vpack.c.bf16 %v4430_v23, %v4429_v20  ;;  %v5390_v27 = vsel %vm360_vm0, %v9482_v40, 0  ;;  %v9499_v17 = vld [vmem:[%s13515_s4 + $0x18] sm:$0xf]  ;;  %v5027_v20 = vld [vmem:[#allocation3 + $0x181] sm:$0xff] }
 0x239   : > { %10111 = vmatmul.mubr.msk.bf16.vlgmr.msra.gmra.mrb[16].mxu0 %vm347_vm1, %v12550_v26 }
 0x23a   : > { %10143 = vmatpush3.bf16.msra.mxu0 %v4508_v28  ;;  %10114 = vmatprep.mubr.msk.bf16.mxu0 %vm347_vm1, %v12554_v31  ;;  %v4412_v28 = vld [vmem:[#allocation3 + $0x22] sm:$0xff] }
 0x23b   : > { %11269 = vmatprep.subr.msk.bf16.mxu0 %vm360_vm0, %v12559_v35  ;;  %v12620_v5 = vpack.c.bf16 %v4412_v28, %v4411_v32  ;;  %v12634_v35 = vpack.c.bf16 %v4416_v43, %v4415_v50  ;;  %v4432_v32 = vld [vmem:[#allocation3 + $0x112] sm:$0xff]  ;;  %v4433_v28 = vld [vmem:[#allocation3 + $0x122] sm:$0xff]  ;;  %v4435_v50 = vld [vmem:[#allocation3 + $0x13a] sm:$0xff] }
 0x23c   : > { %v4436_v43 = vld [vmem:[#allocation3 + $0x142] sm:$0xff] }
 0x23d   : > { %v12674_v54 = vpack.c.bf16 %v4436_v43, %v4435_v50  ;;  %v9533_v43 = vld [vmem:[%s13515_s4 + $0x20] sm:$0xf] }
 0x241   : > { %10115 = vmatmul.mubr.msk.bf16.gmra.mrb[20].mxu0 %vm347_vm1, %v12567_v58 }
 0x242   : > { %10118 = vmatprep.mubr.msk.bf16.mxu0 %vm347_vm1, %v12569_v38 }
 0x249   : > { %10119 = vmatmul.mubr.msk.bf16.gmra.mrb[24].mxu0 %vm347_vm1, %v12575_v61 }
 0x24a   : > { %10122 = vmatprep.mubr.msk.bf16.mxu0 %vm347_vm1, %v12577_v39 }
 0x251   : > { %10123 = vmatmul.mubr.msk.bf16.gmra.mrb[28].mxu0 %vm347_vm1, %v12583_v59 }
 0x252   : > { %10126 = vmatprep.mubr.msk.bf16.mxu0 %vm347_vm1, %v12585_v56 }
 0x259   : > { %10127 = vmatmul.mubr.msk.bf16.gmra.mrb[32].mxu0 %vm347_vm1, %v12591_v6 }
 0x25a   : > { %10130 = vmatprep.mubr.msk.bf16.mxu0 %vm347_vm1, %v12593_v47 }
 0x261   : > { %10131 = vmatmul.mubr.msk.bf16.gmra.mrb[36].mxu0 %vm347_vm1, %v12599_v12 }
 0x262   : > { %10134 = vmatprep.mubr.msk.bf16.mxu0 %vm347_vm1, %v12601_v53 }
 0x269   : > { %10135 = vmatmul.mubr.msk.bf16.gmra.mrb[40].mxu0 %vm347_vm1, %v12607_v3 }
 0x26a   : > { %10138 = vmatprep.mubr.msk.bf16.mxu0 %vm347_vm1, %v12609_v19 }
 0x271   : > { %10139 = vmatmul.mubr.msk.bf16.gmra.mrb[44].mxu0 %vm347_vm1, %v12615_v1 }
 0x272   : > { %10144 = vmatprep.mubr.msk.bf16.mxu0 %vm347_vm1, %v4441_v11  ;;  %v4431_v11 = vld [vmem:[#allocation3 + $0x10a] sm:$0xff] }
 0x273   : > { %v12666_v37 = vpack.c.bf16 %v4432_v32, %v4431_v11  ;;  %v5685_v11 = vsel %vm360_vm0, %v9499_v17, 0  ;;  %v9516_v32 = vld [vmem:[%s13515_s4 + $0x1c] sm:$0xf] }
 0x274   : > { %v5979_v50 = vsel %vm360_vm0, %v9516_v32, 0 }
 0x279   : > { %10145 = vmatmul.mubr.msk.bf16.vlgmr.msra.gmra.mrb[16].mxu0 %vm347_vm1, %v12620_v5 }
 0x27a   : > { %10177 = vmatpush3.bf16.msra.mxu0 %v4802_v41  ;;  %10148 = vmatprep.mubr.msk.bf16.mxu0 %vm347_vm1, %v12624_v49  ;;  %v12668_v41 = vpack.c.bf16 %v4434_v30, %v4433_v28  ;;  %v5322_v28 = vld [vmem:[#allocation3 + $0x18a] sm:$0xff] }
 0x27b   : > { %11270 = vmatprep.subr.msk.bf16.mxu0 %vm360_vm0, %v9465_v51  ;;  %v4733_v51 = vld [vmem:[#allocation3 + $0x180] sm:$0xff] }
 0x281   : > { %10149 = vmatmul.mubr.msk.bf16.gmra.mrb[20].mxu0 %vm347_vm1, %v12634_v35 }
 0x282   : > { %10152 = vmatprep.mubr.msk.bf16.mxu0 %vm347_vm1, %v12636_v44 }
 0x289   : > { %10153 = vmatmul.mubr.msk.bf16.gmra.mrb[24].mxu0 %vm347_vm1, %v12642_v62 }
 0x28a   : > { %10156 = vmatprep.mubr.msk.bf16.mxu0 %vm347_vm1, %v12644_v7 }
 0x291   : > { %10157 = vmatmul.mubr.msk.bf16.gmra.mrb[28].mxu0 %vm347_vm1, %v12650_v21 }
 0x292   : > { %10160 = vmatprep.mubr.msk.bf16.mxu0 %vm347_vm1, %v12652_v4 }
 0x299   : > { %10161 = vmatmul.mubr.msk.bf16.gmra.mrb[32].mxu0 %vm347_vm1, %v12658_v16 }
 0x29a   : > { %10164 = vmatprep.mubr.msk.bf16.mxu0 %vm347_vm1, %v12660_v24 }
 0x2a1   : > { %10165 = vmatmul.mubr.msk.bf16.gmra.mrb[36].mxu0 %vm347_vm1, %v12666_v37 }
 0x2a2   : > { %10168 = vmatprep.mubr.msk.bf16.mxu0 %vm347_vm1, %v12668_v41 }
 0x2a9   : > { %10169 = vmatmul.mubr.msk.bf16.gmra.mrb[40].mxu0 %vm347_vm1, %v12674_v54 }
 0x2aa   : > { %10172 = vmatprep.mubr.msk.bf16.mxu0 %vm347_vm1, %v12676_v52 }
 0x2b1   : > { %10173 = vmatmul.mubr.msk.bf16.gmra.mrb[44].mxu0 %vm347_vm1, %v12682_v10 }
 0x2b2   : > { %10178 = vmatprep.mubr.msk.bf16.mxu0 %vm347_vm1, %v12452_v2  ;;  %v4734_v2 = vld [vmem:[#allocation3 + $0x188] sm:$0xff] }
 0x2b3   : > { %v12721_v15 = vpack.c.bf16 %v4734_v2, %v4733_v51 }
 0x2b9   : > { %10179 = vmatmul.mubr.msk.bf16.vlgmr.msra.gmra.mrb[16].mxu0 %vm347_vm1, %v12470_v9 }
 0x2ba   : > { %10211 = vmatpush3.bf16.msra.mxu0 %v5096_v48  ;;  %10182 = vmatprep.mubr.msk.bf16.mxu0 %vm347_vm1, %v12477_v8 }
 0x2bb   : > { %11271 = vmatprep.subr.msk.bf16.mxu0 %vm360_vm0, %v9482_v40 }
 0x2c1   : > { %10183 = vmatmul.mubr.msk.bf16.gmra.mrb[20].mxu0 %vm347_vm1, %v12483_v33 }
 0x2c2   : > { %10186 = vmatprep.mubr.msk.bf16.mxu0 %vm347_vm1, %v12489_v36 }
 0x2c9   : > { %10187 = vmatmul.mubr.msk.bf16.gmra.mrb[24].mxu0 %vm347_vm1, %v12495_v42 }
 0x2ca   : > { %10190 = vmatprep.mubr.msk.bf16.mxu0 %vm347_vm1, %v12501_v60 }
 0x2d1   : > { %10191 = vmatmul.mubr.msk.bf16.gmra.mrb[28].mxu0 %vm347_vm1, %v12507_v34 }
 0x2d2   : > { %10194 = vmatprep.mubr.msk.bf16.mxu0 %vm347_vm1, %v12513_v55 }
 0x2d9   : > { %10195 = vmatmul.mubr.msk.bf16.gmra.mrb[32].mxu0 %vm347_vm1, %v12519_v63 }
 0x2da   : > { %10198 = vmatprep.mubr.msk.bf16.mxu0 %vm347_vm1, %v12525_v45 }
 0x2e1   : > { %10199 = vmatmul.mubr.msk.bf16.gmra.mrb[36].mxu0 %vm347_vm1, %v12531_v13 }
 0x2e2   : > { %10202 = vmatprep.mubr.msk.bf16.mxu0 %vm347_vm1, %v12536_v14 }
 0x2e9   : > { %10203 = vmatmul.mubr.msk.bf16.gmra.mrb[40].mxu0 %vm347_vm1, %v12541_v18 }
 0x2ea   : > { %10206 = vmatprep.mubr.msk.bf16.mxu0 %vm347_vm1, %v12545_v25 }
 0x2f1   : > { %10207 = vmatmul.mubr.msk.bf16.gmra.mrb[44].mxu0 %vm347_vm1, %v12721_v15 }
 0x2f2   : > { %10212 = vmatprep.mubr.msk.bf16.mxu0 %vm347_vm1, %v12550_v26  ;;  %v5028_v26 = vld [vmem:[#allocation3 + $0x189] sm:$0xff] }
 0x2f3   : > { %v12760_v23 = vpack.c.bf16 %v5028_v26, %v5027_v20 }
 0x2f9   : > { %10213 = vmatmul.mubr.msk.bf16.vlgmr.msra.gmra.mrb[16].mxu0 %vm347_vm1, %v12554_v31 }
 0x2fa   : > { %10245 = vmatpush3.bf16.msra.mxu0 %v5390_v27  ;;  %10216 = vmatprep.mubr.msk.bf16.mxu0 %vm347_vm1, %v12567_v58 }
 0x2fb   : > { %11272 = vmatprep.subr.msk.bf16.mxu0 %vm360_vm0, %v9499_v17 }
 0x301   : > { %10217 = vmatmul.mubr.msk.bf16.gmra.mrb[20].mxu0 %vm347_vm1, %v12569_v38 }
 0x302   : > { %10220 = vmatprep.mubr.msk.bf16.mxu0 %vm347_vm1, %v12575_v61 }
 0x309   : > { %10221 = vmatmul.mubr.msk.bf16.gmra.mrb[24].mxu0 %vm347_vm1, %v12577_v39 }
 0x30a   : > { %10224 = vmatprep.mubr.msk.bf16.mxu0 %vm347_vm1, %v12583_v59 }
 0x311   : > { %10225 = vmatmul.mubr.msk.bf16.gmra.mrb[28].mxu0 %vm347_vm1, %v12585_v56 }
 0x312   : > { %10228 = vmatprep.mubr.msk.bf16.mxu0 %vm347_vm1, %v12591_v6 }
 0x319   : > { %10229 = vmatmul.mubr.msk.bf16.gmra.mrb[32].mxu0 %vm347_vm1, %v12593_v47 }
 0x31a   : > { %10232 = vmatprep.mubr.msk.bf16.mxu0 %vm347_vm1, %v12599_v12 }
 0x321   : > { %10233 = vmatmul.mubr.msk.bf16.gmra.mrb[36].mxu0 %vm347_vm1, %v12601_v53 }
 0x322   : > { %10236 = vmatprep.mubr.msk.bf16.mxu0 %vm347_vm1, %v12607_v3 }
 0x329   : > { %10237 = vmatmul.mubr.msk.bf16.gmra.mrb[40].mxu0 %vm347_vm1, %v12609_v19 }
 0x32a   : > { %10240 = vmatprep.mubr.msk.bf16.mxu0 %vm347_vm1, %v12615_v1 }
 0x331   : > { %10241 = vmatmul.mubr.msk.bf16.gmra.mrb[44].mxu0 %vm347_vm1, %v12760_v23 }
 0x332   : > { %10246 = vmatprep.mubr.msk.bf16.mxu0 %vm347_vm1, %v12620_v5  ;;  %v5321_v5 = vld [vmem:[#allocation3 + $0x182] sm:$0xff] }
 0x333   : > { %v5338_v30 = vpack.c.bf16 %v5322_v28, %v5321_v5 }
 0x339   : > { %10247 = vmatmul.mubr.msk.bf16.vlgmr.msra.gmra.mrb[16].mxu0 %vm347_vm1, %v12624_v49 }
 0x33a   : > { %10279 = vmatpush3.bf16.msra.mxu0 %v5685_v11  ;;  %10250 = vmatprep.mubr.msk.bf16.mxu0 %vm347_vm1, %v12634_v35 }
 0x33b   : > { %11273 = vmatprep.subr.msk.bf16.mxu0 %vm360_vm0, %v9516_v32 }
 0x341   : > { %10251 = vmatmul.mubr.msk.bf16.gmra.mrb[20].mxu0 %vm347_vm1, %v12636_v44 }
 0x342   : > { %10254 = vmatprep.mubr.msk.bf16.mxu0 %vm347_vm1, %v12642_v62 }
 0x349   : > { %10255 = vmatmul.mubr.msk.bf16.gmra.mrb[24].mxu0 %vm347_vm1, %v12644_v7 }
 0x34a   : > { %10258 = vmatprep.mubr.msk.bf16.mxu0 %vm347_vm1, %v12650_v21 }
 0x351   : > { %10259 = vmatmul.mubr.msk.bf16.gmra.mrb[28].mxu0 %vm347_vm1, %v12652_v4 }
 0x352   : > { %10262 = vmatprep.mubr.msk.bf16.mxu0 %vm347_vm1, %v12658_v16 }
 0x359   : > { %10263 = vmatmul.mubr.msk.bf16.gmra.mrb[32].mxu0 %vm347_vm1, %v12660_v24 }
 0x35a   : > { %10266 = vmatprep.mubr.msk.bf16.mxu0 %vm347_vm1, %v12666_v37 }
 0x361   : > { %10267 = vmatmul.mubr.msk.bf16.gmra.mrb[36].mxu0 %vm347_vm1, %v12668_v41 }
 0x362   : > { %10270 = vmatprep.mubr.msk.bf16.mxu0 %vm347_vm1, %v12674_v54 }
 0x369   : > { %10271 = vmatmul.mubr.msk.bf16.gmra.mrb[40].mxu0 %vm347_vm1, %v12676_v52 }
 0x36a   : > { %10274 = vmatprep.mubr.msk.bf16.mxu0 %vm347_vm1, %v12682_v10 }
 0x371   : > { %10275 = vmatmul.mubr.msk.bf16.gmra.mrb[44].mxu0 %vm347_vm1, %v5338_v30 }
 0x372   : > { %10280 = vmatprep.mubr.msk.bf16.mxu0 %vm347_vm1, %v12470_v9  ;;  %v5616_v9 = vld [vmem:[#allocation3 + $0x198] sm:$0xff] }
 0x379   : > { %10281 = vmatmul.mubr.msk.bf16.vlgmr.msra.gmra.mrb[16].mxu0 %vm347_vm1, %v12477_v8  ;;  %v5617_v8 = vld [vmem:[#allocation3 + $0x1a0] sm:$0xff] }
 0x37a   : > { %10313 = vmatpush3.bf16.msra.mxu0 %v5979_v50  ;;  %10284 = vmatprep.mubr.msk.bf16.mxu0 %vm347_vm1, %v12483_v33  ;;  %v5633_v33 = vpack.c.bf16 %v5617_v8, %v5616_v9 }
 0x37b   : > { %11274 = vmatprep.subr.msk.bf16.mxu0 %vm360_vm0, %v9533_v43 }
 0x381   : > { %10285 = vmatmul.mubr.msk.bf16.gmra.mrb[20].mxu0 %vm347_vm1, %v12489_v36  ;;  %v6273_v36 = vsel %vm360_vm0, %v9533_v43, 0 }
 0x382   : > { %10288 = vmatprep.mubr.msk.bf16.mxu0 %vm347_vm1, %v12495_v42  ;;  %v5910_v42 = vld [vmem:[#allocation3 + $0x199] sm:$0xff] }
 0x389   : > { %10289 = vmatmul.mubr.msk.bf16.gmra.mrb[24].mxu0 %vm347_vm1, %v12501_v60  ;;  %v5911_v60 = vld [vmem:[#allocation3 + $0x1a1] sm:$0xff] }
 0x38a   : > { %10292 = vmatprep.mubr.msk.bf16.mxu0 %vm347_vm1, %v12507_v34  ;;  %v5927_v34 = vpack.c.bf16 %v5911_v60, %v5910_v42 }
 0x391   : > { %10293 = vmatmul.mubr.msk.bf16.gmra.mrb[28].mxu0 %vm347_vm1, %v12513_v55  ;;  %v6204_v55 = vld [vmem:[#allocation3 + $0x19a] sm:$0xff] }
 0x392   : > { %10296 = vmatprep.mubr.msk.bf16.mxu0 %vm347_vm1, %v12519_v63  ;;  %v6205_v63 = vld [vmem:[#allocation3 + $0x1a2] sm:$0xff] }
 0x399   : > { %10297 = vmatmul.mubr.msk.bf16.gmra.mrb[32].mxu0 %vm347_vm1, %v12525_v45  ;;  %v6221_v45 = vpack.c.bf16 %v6205_v63, %v6204_v55 }
 0x39a   : > { %10300 = vmatprep.mubr.msk.bf16.mxu0 %vm347_vm1, %v12531_v13  ;;  %v6633_v13 = vld [vmem:[%s13517_s6] sm:$0x3] }
 0x39b   : > { %11275 = vmatprep.subr.msk.bf16.mxu1 %vm6682_vm7, %v6633_v13 }
 0x3a1   : > { %10301 = vmatmul.mubr.msk.bf16.gmra.mrb[36].mxu0 %vm347_vm1, %v12536_v14  ;;  %v6684_v14 = vsel %vm6682_vm7, %v6633_v13, 0 }
 0x3a2   : > { %10304 = vmatprep.mubr.msk.bf16.mxu0 %vm347_vm1, %v12541_v18  ;;  %10381 = vmatpush3.bf16.msra.mxu1 %v6684_v14  ;;  %v6585_v18 = vld [vmem:[#allocation4] sm:$0xff] }
 0x3a9   : > { %10305 = vmatmul.mubr.msk.bf16.gmra.mrb[40].mxu0 %vm347_vm1, %v12545_v25  ;;  %v6586_v25 = vld [vmem:[#allocation4 + $0x8] sm:$0xff] }
 0x3aa   : > { %10308 = vmatprep.mubr.msk.bf16.mxu0 %vm347_vm1, %v12721_v15  ;;  %v12944_v15 = vld [vmem:[%s13517_s6 + $0x4] sm:$0x3] }
 0x3b1   : > { %10309 = vmatmul.mubr.msk.bf16.gmra.mrb[44].mxu0 %vm347_vm1, %v5633_v33 }
 0x3b2   : > { %10314 = vmatprep.mubr.msk.bf16.mxu0 %vm347_vm1, %v12554_v31  ;;  %v9567_v31 = vld [vmem:[%s13517_s6 + $0x2] sm:$0x3] }
 0x3b3   : > { %11276 = vmatprep.subr.msk.bf16.mxu1 %vm6682_vm7, %v9567_v31 }
 0x3b9   : > { %10315 = vmatmul.mubr.msk.bf16.vlgmr.msra.gmra.mrb[16].mxu0 %vm347_vm1, %v12567_v58  ;;  %v6617_v58 = vpack.c.bf16 %v6586_v25, %v6585_v18 }
 0x3ba   : > { %10347 = vmatpush3.bf16.msra.mxu0 %v6273_v36  ;;  %10318 = vmatprep.mubr.msk.bf16.mxu0 %vm347_vm1, %v12569_v38  ;;  %v12917_v38 = vld [vmem:[%s13516_s5] ss:$0 sm:$0xff] }
 0x3bb   : > { %10382 = vmatprep.mubr.msk.bf16.mxu1 %vm2980_vm3, %v6617_v58 }
 0x3c1   : > { %10319 = vmatmul.mubr.msk.bf16.gmra.mrb[20].mxu0 %vm347_vm1, %v12575_v61 }
 0x3c2   : > { %10322 = vmatprep.mubr.msk.bf16.mxu0 %vm347_vm1, %v12577_v39 }
 0x3c9   : > { %10323 = vmatmul.mubr.msk.bf16.gmra.mrb[24].mxu0 %vm347_vm1, %v12583_v59 }
 0x3ca   : > { %10326 = vmatprep.mubr.msk.bf16.mxu0 %vm347_vm1, %v12585_v56 }
 0x3d1   : > { %10327 = vmatmul.mubr.msk.bf16.gmra.mrb[28].mxu0 %vm347_vm1, %v12591_v6 }
 0x3d2   : > { %10330 = vmatprep.mubr.msk.bf16.mxu0 %vm347_vm1, %v12593_v47 }
 0x3d9   : > { %10331 = vmatmul.mubr.msk.bf16.gmra.mrb[32].mxu0 %vm347_vm1, %v12599_v12 }
 0x3da   : > { %10334 = vmatprep.mubr.msk.bf16.mxu0 %vm347_vm1, %v12601_v53 }
 0x3e1   : > { %10335 = vmatmul.mubr.msk.bf16.gmra.mrb[36].mxu0 %vm347_vm1, %v12607_v3 }
 0x3e2   : > { %10338 = vmatprep.mubr.msk.bf16.mxu0 %vm347_vm1, %v12609_v19 }
 0x3e9   : > { %10339 = vmatmul.mubr.msk.bf16.gmra.mrb[40].mxu0 %vm347_vm1, %v12615_v1 }
 0x3ea   : > { %10342 = vmatprep.mubr.msk.bf16.mxu0 %vm347_vm1, %v12760_v23 }
 0x3f1   : > { %10343 = vmatmul.mubr.msk.bf16.gmra.mrb[44].mxu0 %vm347_vm1, %v5927_v34 }
 0x3f2   : > { %10348 = vmatprep.mubr.msk.bf16.mxu0 %vm347_vm1, %v12624_v49 }
 0x3f9   : > { %10349 = vmatmul.mubr.msk.bf16.vlgmr.msra.gmra.mrb[16].mxu0 %vm347_vm1, %v12634_v35 }
 0x3fa   : > { %10352 = vmatprep.mubr.msk.bf16.mxu0 %vm347_vm1, %v12636_v44 }
 0x401   : > { %10353 = vmatmul.mubr.msk.bf16.gmra.mrb[20].mxu0 %vm347_vm1, %v12642_v62 }
 0x402   : > { %10356 = vmatprep.mubr.msk.bf16.mxu0 %vm347_vm1, %v12644_v7 }
 0x409   : > { %10357 = vmatmul.mubr.msk.bf16.gmra.mrb[24].mxu0 %vm347_vm1, %v12650_v21 }
 0x40a   : > { %10360 = vmatprep.mubr.msk.bf16.mxu0 %vm347_vm1, %v12652_v4 }
 0x411   : > { %10361 = vmatmul.mubr.msk.bf16.gmra.mrb[28].mxu0 %vm347_vm1, %v12658_v16 }
 0x412   : > { %10364 = vmatprep.mubr.msk.bf16.mxu0 %vm347_vm1, %v12660_v24 }
 0x419   : > { %10365 = vmatmul.mubr.msk.bf16.gmra.mrb[32].mxu0 %vm347_vm1, %v12666_v37 }
 0x41a   : > { %10368 = vmatprep.mubr.msk.bf16.mxu0 %vm347_vm1, %v12668_v41 }
 0x421   : > { %10369 = vmatmul.mubr.msk.bf16.gmra.mrb[36].mxu0 %vm347_vm1, %v12674_v54 }
 0x422   : > { %10372 = vmatprep.mubr.msk.bf16.mxu0 %vm347_vm1, %v12676_v52 }
 0x429   : > { %10373 = vmatmul.mubr.msk.bf16.gmra.mrb[40].mxu0 %vm347_vm1, %v12682_v10  ;;  %v6978_v10 = vsel %vm6682_vm7, %v9567_v31, 0 }
 0x42a   : > { %10376 = vmatprep.mubr.msk.bf16.mxu0 %vm347_vm1, %v5338_v30 }
 0x431   : > { %10377 = vmatmul.mubr.msk.bf16.gmra.mrb[44].mxu0 %vm347_vm1, %v6221_v45 }
 0x4cc   : > { %v10350_v61 = vpop.f32.mrb[16].mxu0 }
 0x4cd   : > { %v10686_v39 = vadd.f32 %v10350_v61, %v12917_v38  ;;  %v6309_v59 = vpop.f32.mrb[17].mxu0 }
 0x4ce   : > { %v10687_v56 = vadd.f32 %v12917_v38, %v6309_v59  ;;  %v10351_v6 = vpop.f32.mrb[18].mxu0 }
 0x4cf   : > { %v6470_v47 = vmax.f32 %v10686_v39, 0.0  ;;  %v10688_v12 = vadd.f32 %v10351_v6, %v12917_v38  ;;  %v6312_v53 = vpop.f32.mrb[19].mxu0 }
 0x4d0   : > { %v6468_v3 = vmax.f32 %v10687_v56, 0.0  ;;  %v10689_v19 = vadd.f32 %v12917_v38, %v6312_v53 }
 0x4d1   : > { %6547 = vst.msk [vmem:[#allocation4 + $0x31] sm:$0xff] %vm2980_vm3, %v6470_v47  ;;  %v6471_v22 = vmax.f32 %v10688_v12, 0.0 }
 0x4d2   : > { %6545 = vst.msk [vmem:[#allocation4 + $0x19] sm:$0xff] %vm2980_vm3, %v6468_v3  ;;  %v6469_v1 = vmax.f32 %v10689_v19, 0.0 }
 0x4d3   : > { %6548 = vst.msk [vmem:[#allocation4 + $0x39] sm:$0xff] %vm2980_vm3, %v6471_v22 }
 0x4d4   : > { %6546 = vst.msk [vmem:[#allocation4 + $0x21] sm:$0xff] %vm2980_vm3, %v6469_v1  ;;  %v10354_v49 = vpop.f32.mrb[20].mxu0 }
 0x4d5   : > { %v10690_v35 = vadd.f32 %v10354_v49, %v12917_v38  ;;  %v6325_v44 = vpop.f32.mrb[21].mxu0 }
 0x4d6   : > { %v10691_v62 = vadd.f32 %v12917_v38, %v6325_v44  ;;  %v10355_v7 = vpop.f32.mrb[22].mxu0 }
 0x4d7   : > { %v6474_v21 = vmax.f32 %v10690_v35, 0.0  ;;  %v10692_v4 = vadd.f32 %v10355_v7, %v12917_v38  ;;  %v6328_v16 = vpop.f32.mrb[23].mxu0 }
 0x4d8   : > { %v6472_v24 = vmax.f32 %v10691_v62, 0.0  ;;  %v10693_v37 = vadd.f32 %v12917_v38, %v6328_v16  ;;  %v6589_v48 = vld [vmem:[#allocation4 + $0x30] sm:$0xff] }
 0x4d9   : > { %6551 = vst.msk [vmem:[#allocation4 + $0x61] sm:$0xff] %vm2980_vm3, %v6474_v21  ;;  %v6475_v41 = vmax.f32 %v10692_v4, 0.0  ;;  %v6587_v54 = vld [vmem:[#allocation4 + $0x18] sm:$0xff] }
 0x4da   : > { %6549 = vst.msk [vmem:[#allocation4 + $0x49] sm:$0xff] %vm2980_vm3, %v6472_v24  ;;  %v6473_v0 = vmax.f32 %v10693_v37, 0.0  ;;  %v6590_v46 = vld [vmem:[#allocation4 + $0x38] sm:$0xff] }
 0x4db   : > { %6552 = vst.msk [vmem:[#allocation4 + $0x69] sm:$0xff] %vm2980_vm3, %v6475_v41  ;;  %v6588_v52 = vld [vmem:[#allocation4 + $0x20] sm:$0xff]  ;;  %v12939_v51 = vpack.c.bf16 %v6590_v46, %v6589_v48 }
 0x4dc   : > { %6550 = vst.msk [vmem:[#allocation4 + $0x51] sm:$0xff] %vm2980_vm3, %v6473_v0  ;;  %v10358_v57 = vpop.f32.mrb[24].mxu0  ;;  %v12935_v29 = vpack.c.bf16 %v6588_v52, %v6587_v54 }
 0x4dd   : > { %v10694_v40 = vadd.f32 %v10358_v57, %v12917_v38  ;;  %v6341_v2 = vpop.f32.mrb[25].mxu0 }
 0x4de   : > { %v10695_v27 = vadd.f32 %v12917_v38, %v6341_v2  ;;  %v10359_v17 = vpop.f32.mrb[26].mxu0  ;;  %10383 = vmatmul.mubr.msk.bf16.vlgmr.msra.gmra.mrb[16].mxu1 %vm2980_vm3, %v12935_v29 }
 0x4df   : > { %v6478_v26 = vmax.f32 %v10694_v40, 0.0  ;;  %v10696_v20 = vadd.f32 %v10359_v17, %v12917_v38  ;;  %10415 = vmatpush3.bf16.msra.mxu1 %v6978_v10  ;;  %v6344_v23 = vpop.f32.mrb[27].mxu0  ;;  %10386 = vmatprep.mubr.msk.bf16.mxu1 %vm2980_vm3, %v12939_v51 }
 0x4e0   : > { %v6476_v11 = vmax.f32 %v10695_v27, 0.0  ;;  %v10697_v32 = vadd.f32 %v12917_v38, %v6344_v23  ;;  %11277 = vmatprep.subr.msk.bf16.mxu1 %vm6682_vm7, %v12944_v15  ;;  %v6593_v33 = vld [vmem:[#allocation4 + $0x60] sm:$0xff] }
 0x4e1   : > { %6555 = vst.msk [vmem:[#allocation4 + $0x91] sm:$0xff] %vm2980_vm3, %v6478_v26  ;;  %v6479_v5 = vmax.f32 %v10696_v20, 0.0  ;;  %v6591_v50 = vld [vmem:[#allocation4 + $0x48] sm:$0xff] }
 0x4e2   : > { %6553 = vst.msk [vmem:[#allocation4 + $0x79] sm:$0xff] %vm2980_vm3, %v6476_v11  ;;  %v6477_v28 = vmax.f32 %v10697_v32, 0.0  ;;  %v6594_v30 = vld [vmem:[#allocation4 + $0x68] sm:$0xff] }
 0x4e3   : > { %6556 = vst.msk [vmem:[#allocation4 + $0x99] sm:$0xff] %vm2980_vm3, %v6479_v5  ;;  %v6592_v43 = vld [vmem:[#allocation4 + $0x50] sm:$0xff]  ;;  %v12962_v60 = vpack.c.bf16 %v6594_v30, %v6593_v33 }
 0x4e4   : > { %6554 = vst.msk [vmem:[#allocation4 + $0x81] sm:$0xff] %vm2980_vm3, %v6477_v28  ;;  %v10362_v9 = vpop.f32.mrb[28].mxu0  ;;  %v12959_v8 = vpack.c.bf16 %v6592_v43, %v6591_v50 }
 0x4e5   : > { %v10698_v36 = vadd.f32 %v10362_v9, %v12917_v38  ;;  %v6357_v42 = vpop.f32.mrb[29].mxu0 }
 0x4e6   : > { %v10699_v34 = vadd.f32 %v12917_v38, %v6357_v42  ;;  %v10363_v55 = vpop.f32.mrb[30].mxu0  ;;  %10387 = vmatmul.mubr.msk.bf16.gmra.mrb[20].mxu1 %vm2980_vm3, %v12959_v8 }
 0x4e7   : > { %v6482_v63 = vmax.f32 %v10698_v36, 0.0  ;;  %v10700_v45 = vadd.f32 %v10363_v55, %v12917_v38  ;;  %v6360_v13 = vpop.f32.mrb[31].mxu0  ;;  %10390 = vmatprep.mubr.msk.bf16.mxu1 %vm2980_vm3, %v12962_v60 }
 0x4e8   : > { %v6480_v14 = vmax.f32 %v10699_v34, 0.0  ;;  %v10701_v18 = vadd.f32 %v12917_v38, %v6360_v13  ;;  %v6597_v6 = vld [vmem:[#allocation4 + $0x90] sm:$0xff] }
 0x4e9   : > { %6559 = vst.msk [vmem:[#allocation4 + $0xc1] sm:$0xff] %vm2980_vm3, %v6482_v63  ;;  %v6483_v25 = vmax.f32 %v10700_v45, 0.0  ;;  %v6595_v61 = vld [vmem:[#allocation4 + $0x78] sm:$0xff] }
 0x4ea   : > { %6557 = vst.msk [vmem:[#allocation4 + $0xa9] sm:$0xff] %vm2980_vm3, %v6480_v14  ;;  %v6481_v31 = vmax.f32 %v10701_v18, 0.0  ;;  %v6598_v58 = vld [vmem:[#allocation4 + $0x98] sm:$0xff] }
 0x4eb   : > { %6560 = vst.msk [vmem:[#allocation4 + $0xc9] sm:$0xff] %vm2980_vm3, %v6483_v25  ;;  %v6596_v39 = vld [vmem:[#allocation4 + $0x80] sm:$0xff]  ;;  %v12978_v53 = vpack.c.bf16 %v6598_v58, %v6597_v6 }
 0x4ec   : > { %6558 = vst.msk [vmem:[#allocation4 + $0xb1] sm:$0xff] %vm2980_vm3, %v6481_v31  ;;  %v10366_v59 = vpop.f32.mrb[32].mxu0  ;;  %v12975_v56 = vpack.c.bf16 %v6596_v39, %v6595_v61 }
 0x4ed   : > { %v10702_v47 = vadd.f32 %v10366_v59, %v12917_v38  ;;  %v6373_v12 = vpop.f32.mrb[33].mxu0 }
 0x4ee   : > { %v10703_v3 = vadd.f32 %v12917_v38, %v6373_v12  ;;  %v10367_v19 = vpop.f32.mrb[34].mxu0  ;;  %10391 = vmatmul.mubr.msk.bf16.gmra.mrb[24].mxu1 %vm2980_vm3, %v12975_v56 }
 0x4ef   : > { %v6486_v22 = vmax.f32 %v10702_v47, 0.0  ;;  %v10704_v1 = vadd.f32 %v10367_v19, %v12917_v38  ;;  %v6376_v49 = vpop.f32.mrb[35].mxu0  ;;  %10394 = vmatprep.mubr.msk.bf16.mxu1 %vm2980_vm3, %v12978_v53 }
 0x4f0   : > { %v6484_v35 = vmax.f32 %v10703_v3, 0.0  ;;  %v10705_v44 = vadd.f32 %v12917_v38, %v6376_v49  ;;  %v6601_v41 = vld [vmem:[#allocation4 + $0xc0] sm:$0xff] }
 0x4f1   : > { %6563 = vst.msk [vmem:[#allocation4 + $0xf1] sm:$0xff] %vm2980_vm3, %v6486_v22  ;;  %v6487_v62 = vmax.f32 %v10704_v1, 0.0  ;;  %v6599_v4 = vld [vmem:[#allocation4 + $0xa8] sm:$0xff] }
 0x4f2   : > { %6561 = vst.msk [vmem:[#allocation4 + $0xd9] sm:$0xff] %vm2980_vm3, %v6484_v35  ;;  %v6485_v7 = vmax.f32 %v10705_v44, 0.0  ;;  %v6602_v21 = vld [vmem:[#allocation4 + $0xc8] sm:$0xff] }
 0x4f3   : > { %6564 = vst.msk [vmem:[#allocation4 + $0xf9] sm:$0xff] %vm2980_vm3, %v6487_v62  ;;  %v6600_v16 = vld [vmem:[#allocation4 + $0xb0] sm:$0xff]  ;;  %v12994_v54 = vpack.c.bf16 %v6602_v21, %v6601_v41 }
 0x4f4   : > { %6562 = vst.msk [vmem:[#allocation4 + $0xe1] sm:$0xff] %vm2980_vm3, %v6485_v7  ;;  %v10370_v24 = vpop.f32.mrb[36].mxu0  ;;  %v12991_v37 = vpack.c.bf16 %v6600_v16, %v6599_v4  ;;  %v6880_v41 = vld [vmem:[#allocation4 + $0x9] sm:$0xff] }
 0x4f5   : > { %v10706_v0 = vadd.f32 %v10370_v24, %v12917_v38  ;;  %v6389_v46 = vpop.f32.mrb[37].mxu0 }
 0x4f6   : > { %v10707_v52 = vadd.f32 %v12917_v38, %v6389_v46  ;;  %v10371_v57 = vpop.f32.mrb[38].mxu0  ;;  %10395 = vmatmul.mubr.msk.bf16.gmra.mrb[28].mxu1 %vm2980_vm3, %v12991_v37 }
 0x4f7   : > { %v6490_v10 = vmax.f32 %v10706_v0, 0.0  ;;  %v10708_v48 = vadd.f32 %v10371_v57, %v12917_v38  ;;  %v6392_v40 = vpop.f32.mrb[39].mxu0  ;;  %10398 = vmatprep.mubr.msk.bf16.mxu1 %vm2980_vm3, %v12994_v54 }
 0x4f8   : > { %v6488_v2 = vmax.f32 %v10707_v52, 0.0  ;;  %v10709_v27 = vadd.f32 %v12917_v38, %v6392_v40  ;;  %v6605_v28 = vld [vmem:[#allocation4 + $0xf0] sm:$0xff]  ;;  %v6881_v40 = vld [vmem:[#allocation4 + $0x19] sm:$0xff] }
 0x4f9   : > { %6567 = vst.msk [vmem:[#allocation4 + $0x121] sm:$0xff] %vm2980_vm3, %v6490_v10  ;;  %v6491_v17 = vmax.f32 %v10708_v48, 0.0  ;;  %v6603_v23 = vld [vmem:[#allocation4 + $0xd8] sm:$0xff]  ;;  %v6882_v10 = vld [vmem:[#allocation4 + $0x21] sm:$0xff] }
 0x4fa   : > { %6565 = vst.msk [vmem:[#allocation4 + $0x109] sm:$0xff] %vm2980_vm3, %v6488_v2  ;;  %v6489_v26 = vmax.f32 %v10709_v27, 0.0  ;;  %v6606_v20 = vld [vmem:[#allocation4 + $0xf8] sm:$0xff]  ;;  %v13052_v2 = vpack.c.bf16 %v6882_v10, %v6881_v40  ;;  %v7272_v27 = vsel %vm6682_vm7, %v12944_v15, 0  ;;  %v6888_v15 = vld [vmem:[#allocation4 + $0x69] sm:$0xff] }
 0x4fb   : > { %6568 = vst.msk [vmem:[#allocation4 + $0x129] sm:$0xff] %vm2980_vm3, %v6491_v17  ;;  %v6604_v11 = vld [vmem:[#allocation4 + $0xe0] sm:$0xff]  ;;  %v13010_v43 = vpack.c.bf16 %v6606_v20, %v6605_v28  ;;  %v6883_v17 = vld [vmem:[#allocation4 + $0x31] sm:$0xff] }
 0x4fc   : > { %6566 = vst.msk [vmem:[#allocation4 + $0x111] sm:$0xff] %vm2980_vm3, %v6489_v26  ;;  %v10374_v32 = vpop.f32.mrb[40].mxu0  ;;  %v13007_v5 = vpack.c.bf16 %v6604_v11, %v6603_v23  ;;  %v6884_v48 = vld [vmem:[#allocation4 + $0x39] sm:$0xff]  ;;  %v13061_v20 = vld [vmem:[%s13517_s6 + $0x6] sm:$0x3]  ;;  %v6885_v11 = vld [vmem:[#allocation4 + $0x49] sm:$0xff] }
 0x4fd   : > { %v10710_v30 = vadd.f32 %v10374_v32, %v12917_v38  ;;  %v6405_v50 = vpop.f32.mrb[41].mxu0  ;;  %v13056_v26 = vpack.c.bf16 %v6884_v48, %v6883_v17  ;;  %v6886_v23 = vld [vmem:[#allocation4 + $0x51] sm:$0xff]  ;;  %v6887_v28 = vld [vmem:[#allocation4 + $0x61] sm:$0xff] }
 0x4fe   : > { %v10711_v9 = vadd.f32 %v12917_v38, %v6405_v50  ;;  %v10375_v33 = vpop.f32.mrb[42].mxu0  ;;  %10399 = vmatmul.mubr.msk.bf16.gmra.mrb[32].mxu1 %vm2980_vm3, %v13007_v5  ;;  %v13069_v32 = vpack.c.bf16 %v6886_v23, %v6885_v11  ;;  %v6890_v50 = vld [vmem:[#allocation4 + $0x81] sm:$0xff] }
 0x4ff   : > { %v6494_v36 = vmax.f32 %v10710_v30, 0.0  ;;  %v10712_v42 = vadd.f32 %v10375_v33, %v12917_v38  ;;  %v6408_v34 = vpop.f32.mrb[43].mxu0  ;;  %10402 = vmatprep.mubr.msk.bf16.mxu1 %vm2980_vm3, %v13010_v43  ;;  %v13071_v30 = vpack.c.bf16 %v6888_v15, %v6887_v28  ;;  %v6889_v33 = vld [vmem:[#allocation4 + $0x79] sm:$0xff]  ;;  %v7176_v40 = vld [vmem:[#allocation4 + $0x22] sm:$0xff]  ;;  %v7566_v15 = vsel %vm6682_vm7, %v13061_v20, 0 }
 0x500   : > { %v6492_v55 = vmax.f32 %v10711_v9, 0.0  ;;  %v10713_v63 = vadd.f32 %v12917_v38, %v6408_v34  ;;  %v6609_v61 = vld [vmem:[#allocation4 + $0x120] sm:$0xff]  ;;  %v9618_v28 = vld [vmem:[%s13517_s6 + $0x8] sm:$0x3] }
 0x501   : > { %6571 = vst.msk [vmem:[#allocation4 + $0x151] sm:$0xff] %vm2980_vm3, %v6494_v36  ;;  %v6495_v45 = vmax.f32 %v10712_v42, 0.0  ;;  %v6607_v18 = vld [vmem:[#allocation4 + $0x108] sm:$0xff]  ;;  %v6892_v9 = vld [vmem:[#allocation4 + $0x99] sm:$0xff]  ;;  %v13077_v36 = vpack.c.bf16 %v6890_v50, %v6889_v33  ;;  %v6891_v42 = vld [vmem:[#allocation4 + $0x91] sm:$0xff] }
 0x502   : > { %6569 = vst.msk [vmem:[#allocation4 + $0x139] sm:$0xff] %vm2980_vm3, %v6492_v55  ;;  %v6493_v13 = vmax.f32 %v10713_v63, 0.0  ;;  %v6610_v14 = vld [vmem:[#allocation4 + $0x128] sm:$0xff]  ;;  %v13079_v34 = vpack.c.bf16 %v6892_v9, %v6891_v42  ;;  %v6894_v55 = vld [vmem:[#allocation4 + $0xb1] sm:$0xff]  ;;  %v7175_v48 = vld [vmem:[#allocation4 + $0x1a] sm:$0xff] }
 0x503   : > { %6572 = vst.msk [vmem:[#allocation4 + $0x159] sm:$0xff] %vm2980_vm3, %v6495_v45  ;;  %v6608_v25 = vld [vmem:[#allocation4 + $0x110] sm:$0xff]  ;;  %v13026_v6 = vpack.c.bf16 %v6610_v14, %v6609_v61  ;;  %v6895_v14 = vld [vmem:[#allocation4 + $0xc1] sm:$0xff]  ;;  %v6897_v61 = vld [vmem:[#allocation4 + $0xd9] sm:$0xff]  ;;  %v13122_v23 = vpack.c.bf16 %v7176_v40, %v7175_v48 }
 0x504   : > { %6570 = vst.msk [vmem:[#allocation4 + $0x141] sm:$0xff] %vm2980_vm3, %v6493_v13  ;;  %v10378_v31 = vpop.f32.mrb[44].mxu0  ;;  %v13023_v58 = vpack.c.bf16 %v6608_v25, %v6607_v18  ;;  %v6896_v63 = vld [vmem:[#allocation4 + $0xc9] sm:$0xff]  ;;  %v6898_v25 = vld [vmem:[#allocation4 + $0xe1] sm:$0xff]  ;;  %v7180_v9 = vld [vmem:[#allocation4 + $0x52] sm:$0xff] }
 0x505   : > { %v10714_v39 = vadd.f32 %v10378_v31, %v12917_v38  ;;  %v6421_v59 = vpop.f32.mrb[45].mxu0  ;;  %v6893_v45 = vld [vmem:[#allocation4 + $0xa9] sm:$0xff]  ;;  %v13087_v18 = vpack.c.bf16 %v6896_v63, %v6895_v14  ;;  %v6900_v31 = vld [vmem:[#allocation4 + $0xf9] sm:$0xff] }
 0x506   : > { %v10715_v47 = vadd.f32 %v12917_v38, %v6421_v59  ;;  %v10379_v12 = vpop.f32.mrb[46].mxu0  ;;  %10403 = vmatmul.mubr.msk.bf16.gmra.mrb[36].mxu1 %vm2980_vm3, %v13023_v58  ;;  %v13085_v13 = vpack.c.bf16 %v6894_v55, %v6893_v45  ;;  %v6899_v59 = vld [vmem:[#allocation4 + $0xf1] sm:$0xff]  ;;  %v7178_v17 = vld [vmem:[#allocation4 + $0x3a] sm:$0xff]  ;;  %v7181_v33 = vld [vmem:[#allocation4 + $0x62] sm:$0xff] }
 0x507   : > { %v6498_v3 = vmax.f32 %v10714_v39, 0.0  ;;  %v10716_v19 = vadd.f32 %v10379_v12, %v12917_v38  ;;  %v6424_v22 = vpop.f32.mrb[47].mxu0  ;;  %10406 = vmatprep.mubr.msk.bf16.mxu1 %vm2980_vm3, %v13026_v6  ;;  %v13093_v39 = vpack.c.bf16 %v6898_v25, %v6897_v61  ;;  %v6902_v12 = vld [vmem:[#allocation4 + $0x111] sm:$0xff]  ;;  %v7183_v63 = vld [vmem:[#allocation4 + $0x7a] sm:$0xff]  ;;  %v7184_v45 = vld [vmem:[#allocation4 + $0x82] sm:$0xff] }
 0x508   : > { %v6496_v1 = vmax.f32 %v10715_v47, 0.0  ;;  %v10717_v49 = vadd.f32 %v12917_v38, %v6424_v22  ;;  %v6613_v16 = vld [vmem:[#allocation4 + $0x150] sm:$0xff]  ;;  %v6879_v38 = vld [vmem:[#allocation4 + $0x1] sm:$0xff]  ;;  %v13095_v47 = vpack.c.bf16 %v6900_v31, %v6899_v59  ;;  %v13144_v31 = vpack.c.bf16 %v7184_v45, %v7183_v63 }
 0x509   : > { %6575 = vst.msk [vmem:[#allocation4 + $0x181] sm:$0xff] %vm2980_vm3, %v6498_v3  ;;  %v6499_v35 = vmax.f32 %v10716_v19, 0.0  ;;  %v6611_v7 = vld [vmem:[#allocation4 + $0x138] sm:$0xff]  ;;  %v6911_v52 = vpack.c.bf16 %v6880_v41, %v6879_v38  ;;  %v6904_v3 = vld [vmem:[#allocation4 + $0x129] sm:$0xff] }
 0x50a   : > { %6573 = vst.msk [vmem:[#allocation4 + $0x169] sm:$0xff] %vm2980_vm3, %v6496_v1  ;;  %v6497_v44 = vmax.f32 %v10717_v49, 0.0  ;;  %v6614_v62 = vld [vmem:[#allocation4 + $0x158] sm:$0xff]  ;;  %v6901_v19 = vld [vmem:[#allocation4 + $0x109] sm:$0xff]  ;;  %v6903_v1 = vld [vmem:[#allocation4 + $0x121] sm:$0xff] }
 0x50b   : > { %6576 = vst.msk [vmem:[#allocation4 + $0x189] sm:$0xff] %vm2980_vm3, %v6499_v35  ;;  %v6612_v21 = vld [vmem:[#allocation4 + $0x140] sm:$0xff]  ;;  %v13041_v24 = vpack.c.bf16 %v6614_v62, %v6613_v16  ;;  %v13101_v22 = vpack.c.bf16 %v6902_v12, %v6901_v19  ;;  %v13103_v49 = vpack.c.bf16 %v6904_v3, %v6903_v1  ;;  %v7174_v41 = vld [vmem:[#allocation4 + $0xa] sm:$0xff]  ;;  %v7185_v14 = vld [vmem:[#allocation4 + $0x92] sm:$0xff] }
 0x50c   : > { %6574 = vst.msk [vmem:[#allocation4 + $0x171] sm:$0xff] %vm2980_vm3, %v6497_v44  ;;  %v13039_v4 = vpack.c.bf16 %v6612_v21, %v6611_v7  ;;  %v6906_v35 = vld [vmem:[#allocation4 + $0x141] sm:$0xff]  ;;  %v6908_v44 = vld [vmem:[#allocation4 + $0x159] sm:$0xff]  ;;  %v6907_v21 = vld [vmem:[#allocation4 + $0x151] sm:$0xff] }
 0x50d   : > { %v6905_v62 = vld [vmem:[#allocation4 + $0x139] sm:$0xff]  ;;  %v13111_v16 = vpack.c.bf16 %v6908_v44, %v6907_v21  ;;  %v7173_v38 = vld [vmem:[#allocation4 + $0x2] sm:$0xff]  ;;  %v7179_v50 = vld [vmem:[#allocation4 + $0x4a] sm:$0xff] }
 0x50e   : > { %10407 = vmatmul.mubr.msk.bf16.gmra.mrb[40].mxu1 %vm2980_vm3, %v13039_v4  ;;  %v13109_v7 = vpack.c.bf16 %v6906_v35, %v6905_v62  ;;  %v7182_v42 = vld [vmem:[#allocation4 + $0x6a] sm:$0xff]  ;;  %v7186_v25 = vld [vmem:[#allocation4 + $0x9a] sm:$0xff]  ;;  %v7188_v12 = vld [vmem:[#allocation4 + $0xb2] sm:$0xff] }
 0x50f   : > { %10410 = vmatprep.mubr.msk.bf16.mxu1 %vm2980_vm3, %v13041_v24  ;;  %v13138_v55 = vpack.c.bf16 %v7182_v42, %v7181_v33  ;;  %v13146_v61 = vpack.c.bf16 %v7186_v25, %v7185_v14  ;;  %v7187_v59 = vld [vmem:[#allocation4 + $0xaa] sm:$0xff]  ;;  %v7189_v3 = vld [vmem:[#allocation4 + $0xc2] sm:$0xff]  ;;  %v7191_v44 = vld [vmem:[#allocation4 + $0xda] sm:$0xff] }
 0x510   : > { %v7190_v19 = vld [vmem:[#allocation4 + $0xca] sm:$0xff]  ;;  %v13152_v1 = vpack.c.bf16 %v7188_v12, %v7187_v59  ;;  %v7192_v62 = vld [vmem:[#allocation4 + $0xe2] sm:$0xff]  ;;  %v7193_v21 = vld [vmem:[#allocation4 + $0xf2] sm:$0xff]  ;;  %v7860_v59 = vsel %vm6682_vm7, %v9618_v28, 0 }
 0x511   : > { %v6615_v0 = vld [vmem:[#allocation4 + $0x168] sm:$0xff]  ;;  %v13154_v35 = vpack.c.bf16 %v7190_v19, %v7189_v3  ;;  %v7202_v33 = vld [vmem:[#allocation4 + $0x15a] sm:$0xff] }
 0x512   : > { %v7197_v48 = vld [vmem:[#allocation4 + $0x122] sm:$0xff]  ;;  %v7198_v40 = vld [vmem:[#allocation4 + $0x12a] sm:$0xff]  ;;  %v9635_v12 = vld [vmem:[%s13517_s6 + $0xa] sm:$0x3] }
 0x513   : > { %v6616_v46 = vld [vmem:[#allocation4 + $0x170] sm:$0xff]  ;;  %v8154_v19 = vsel %vm6682_vm7, %v9635_v12, 0 }
 0x514   : > { %v13047_v57 = vpack.c.bf16 %v6616_v46, %v6615_v0  ;;  %v6910_v0 = vld [vmem:[#allocation4 + $0x171] sm:$0xff]  ;;  %v6909_v46 = vld [vmem:[#allocation4 + $0x169] sm:$0xff] }
 0x515   : > { %v13117_v10 = vpack.c.bf16 %v6910_v0, %v6909_v46  ;;  %v7195_v46 = vld [vmem:[#allocation4 + $0x10a] sm:$0xff]  ;;  %v7204_v14 = vld [vmem:[#allocation4 + $0x172] sm:$0xff] }
 0x516   : > { %10411 = vmatmul.mubr.msk.bf16.gmra.mrb[44].mxu1 %vm2980_vm3, %v13047_v57  ;;  %v7203_v45 = vld [vmem:[#allocation4 + $0x16a] sm:$0xff] }
 0x517   : > { %10416 = vmatprep.mubr.msk.bf16.mxu1 %vm2980_vm3, %v6911_v52  ;;  %v7205_v52 = vpack.c.bf16 %v7174_v41, %v7173_v38  ;;  %v7194_v38 = vld [vmem:[#allocation4 + $0xfa] sm:$0xff]  ;;  %v13160_v41 = vpack.c.bf16 %v7192_v62, %v7191_v44  ;;  %v13184_v25 = vpack.c.bf16 %v7204_v14, %v7203_v45 }
 0x518   : > { %v13162_v0 = vpack.c.bf16 %v7194_v38, %v7193_v21  ;;  %v9652_v44 = vld [vmem:[%s13517_s6 + $0xc] sm:$0x3]  ;;  %v7791_v62 = vld [vmem:[#allocation4 + $0x181] sm:$0xff] }
 0x519   : > { %v8449_v38 = vsel %vm6682_vm7, %v9652_v44, 0 }
 0x51e   : > { %10417 = vmatmul.mubr.msk.bf16.vlgmr.msra.gmra.mrb[16].mxu1 %vm2980_vm3, %v13052_v2 }
 0x51f   : > { %10449 = vmatpush3.bf16.msra.mxu1 %v7272_v27  ;;  %10420 = vmatprep.mubr.msk.bf16.mxu1 %vm2980_vm3, %v13056_v26  ;;  %v7177_v27 = vld [vmem:[#allocation4 + $0x32] sm:$0xff] }
 0x520   : > { %11278 = vmatprep.subr.msk.bf16.mxu1 %vm6682_vm7, %v13061_v20  ;;  %v13126_v11 = vpack.c.bf16 %v7178_v17, %v7177_v27  ;;  %v13136_v20 = vpack.c.bf16 %v7180_v9, %v7179_v50  ;;  %v13170_v17 = vpack.c.bf16 %v7198_v40, %v7197_v48  ;;  %v7200_v50 = vld [vmem:[#allocation4 + $0x142] sm:$0xff]  ;;  %v7201_v9 = vld [vmem:[#allocation4 + $0x152] sm:$0xff] }
 0x521   : > { %v13178_v63 = vpack.c.bf16 %v7202_v33, %v7201_v9 }
 0x526   : > { %10421 = vmatmul.mubr.msk.bf16.gmra.mrb[20].mxu1 %vm2980_vm3, %v13069_v32 }
 0x527   : > { %10424 = vmatprep.mubr.msk.bf16.mxu1 %vm2980_vm3, %v13071_v30 }
 0x52e   : > { %10425 = vmatmul.mubr.msk.bf16.gmra.mrb[24].mxu1 %vm2980_vm3, %v13077_v36 }
 0x52f   : > { %10428 = vmatprep.mubr.msk.bf16.mxu1 %vm2980_vm3, %v13079_v34 }
 0x536   : > { %10429 = vmatmul.mubr.msk.bf16.gmra.mrb[28].mxu1 %vm2980_vm3, %v13085_v13 }
 0x537   : > { %10432 = vmatprep.mubr.msk.bf16.mxu1 %vm2980_vm3, %v13087_v18 }
 0x53e   : > { %10433 = vmatmul.mubr.msk.bf16.gmra.mrb[32].mxu1 %vm2980_vm3, %v13093_v39 }
 0x53f   : > { %10436 = vmatprep.mubr.msk.bf16.mxu1 %vm2980_vm3, %v13095_v47 }
 0x546   : > { %10437 = vmatmul.mubr.msk.bf16.gmra.mrb[36].mxu1 %vm2980_vm3, %v13101_v22 }
 0x547   : > { %10440 = vmatprep.mubr.msk.bf16.mxu1 %vm2980_vm3, %v13103_v49 }
 0x54e   : > { %10441 = vmatmul.mubr.msk.bf16.gmra.mrb[40].mxu1 %vm2980_vm3, %v13109_v7 }
 0x54f   : > { %10444 = vmatprep.mubr.msk.bf16.mxu1 %vm2980_vm3, %v13111_v16 }
 0x556   : > { %10445 = vmatmul.mubr.msk.bf16.gmra.mrb[44].mxu1 %vm2980_vm3, %v13117_v10 }
 0x557   : > { %10450 = vmatprep.mubr.msk.bf16.mxu1 %vm2980_vm3, %v7205_v52  ;;  %v7196_v52 = vld [vmem:[#allocation4 + $0x112] sm:$0xff] }
 0x558   : > { %v13168_v27 = vpack.c.bf16 %v7196_v52, %v7195_v46  ;;  %v9669_v46 = vld [vmem:[%s13517_s6 + $0xe] sm:$0x3]  ;;  %v8086_v52 = vld [vmem:[#allocation4 + $0x18a] sm:$0xff] }
 0x559   : > { %v8743_v40 = vsel %vm6682_vm7, %v9669_v46, 0 }
 0x55e   : > { %10451 = vmatmul.mubr.msk.bf16.vlgmr.msra.gmra.mrb[16].mxu1 %vm2980_vm3, %v13122_v23 }
 0x55f   : > { %10483 = vmatpush3.bf16.msra.mxu1 %v7566_v15  ;;  %10454 = vmatprep.mubr.msk.bf16.mxu1 %vm2980_vm3, %v13126_v11  ;;  %v7199_v15 = vld [vmem:[#allocation4 + $0x13a] sm:$0xff] }
 0x560   : > { %11279 = vmatprep.subr.msk.bf16.mxu1 %vm6682_vm7, %v9618_v28  ;;  %v13176_v42 = vpack.c.bf16 %v7200_v50, %v7199_v15  ;;  %v7497_v28 = vld [vmem:[#allocation4 + $0x180] sm:$0xff] }
 0x561   : > { %v9686_v15 = vld [vmem:[%s13517_s6 + $0x10] sm:$0x3] }
 0x566   : > { %10455 = vmatmul.mubr.msk.bf16.gmra.mrb[20].mxu1 %vm2980_vm3, %v13136_v20 }
 0x567   : > { %10458 = vmatprep.mubr.msk.bf16.mxu1 %vm2980_vm3, %v13138_v55 }
 0x56e   : > { %10459 = vmatmul.mubr.msk.bf16.gmra.mrb[24].mxu1 %vm2980_vm3, %v13144_v31 }
 0x56f   : > { %10462 = vmatprep.mubr.msk.bf16.mxu1 %vm2980_vm3, %v13146_v61 }
 0x576   : > { %10463 = vmatmul.mubr.msk.bf16.gmra.mrb[28].mxu1 %vm2980_vm3, %v13152_v1 }
 0x577   : > { %10466 = vmatprep.mubr.msk.bf16.mxu1 %vm2980_vm3, %v13154_v35 }
 0x57e   : > { %10467 = vmatmul.mubr.msk.bf16.gmra.mrb[32].mxu1 %vm2980_vm3, %v13160_v41 }
 0x57f   : > { %10470 = vmatprep.mubr.msk.bf16.mxu1 %vm2980_vm3, %v13162_v0 }
 0x586   : > { %10471 = vmatmul.mubr.msk.bf16.gmra.mrb[36].mxu1 %vm2980_vm3, %v13168_v27 }
 0x587   : > { %10474 = vmatprep.mubr.msk.bf16.mxu1 %vm2980_vm3, %v13170_v17 }
 0x58e   : > { %10475 = vmatmul.mubr.msk.bf16.gmra.mrb[40].mxu1 %vm2980_vm3, %v13176_v42 }
 0x58f   : > { %10478 = vmatprep.mubr.msk.bf16.mxu1 %vm2980_vm3, %v13178_v63 }
 0x596   : > { %10479 = vmatmul.mubr.msk.bf16.gmra.mrb[44].mxu1 %vm2980_vm3, %v13184_v25 }
 0x597   : > { %10484 = vmatprep.mubr.msk.bf16.mxu1 %vm2980_vm3, %v12935_v29  ;;  %v7498_v29 = vld [vmem:[#allocation4 + $0x188] sm:$0xff] }
 0x598   : > { %v13223_v3 = vpack.c.bf16 %v7498_v29, %v7497_v28 }
 0x59e   : > { %10485 = vmatmul.mubr.msk.bf16.vlgmr.msra.gmra.mrb[16].mxu1 %vm2980_vm3, %v12939_v51 }
 0x59f   : > { %10517 = vmatpush3.bf16.msra.mxu1 %v7860_v59  ;;  %10488 = vmatprep.mubr.msk.bf16.mxu1 %vm2980_vm3, %v12959_v8 }
 0x5a0   : > { %11280 = vmatprep.subr.msk.bf16.mxu1 %vm6682_vm7, %v9635_v12 }
 0x5a6   : > { %10489 = vmatmul.mubr.msk.bf16.gmra.mrb[20].mxu1 %vm2980_vm3, %v12962_v60 }
 0x5a7   : > { %10492 = vmatprep.mubr.msk.bf16.mxu1 %vm2980_vm3, %v12975_v56 }
 0x5ae   : > { %10493 = vmatmul.mubr.msk.bf16.gmra.mrb[24].mxu1 %vm2980_vm3, %v12978_v53 }
 0x5af   : > { %10496 = vmatprep.mubr.msk.bf16.mxu1 %vm2980_vm3, %v12991_v37 }
 0x5b6   : > { %10497 = vmatmul.mubr.msk.bf16.gmra.mrb[28].mxu1 %vm2980_vm3, %v12994_v54 }
 0x5b7   : > { %10500 = vmatprep.mubr.msk.bf16.mxu1 %vm2980_vm3, %v13007_v5 }
 0x5be   : > { %10501 = vmatmul.mubr.msk.bf16.gmra.mrb[32].mxu1 %vm2980_vm3, %v13010_v43 }
 0x5bf   : > { %10504 = vmatprep.mubr.msk.bf16.mxu1 %vm2980_vm3, %v13023_v58 }
 0x5c6   : > { %10505 = vmatmul.mubr.msk.bf16.gmra.mrb[36].mxu1 %vm2980_vm3, %v13026_v6 }
 0x5c7   : > { %10508 = vmatprep.mubr.msk.bf16.mxu1 %vm2980_vm3, %v13039_v4 }
 0x5ce   : > { %10509 = vmatmul.mubr.msk.bf16.gmra.mrb[40].mxu1 %vm2980_vm3, %v13041_v24 }
 0x5cf   : > { %10512 = vmatprep.mubr.msk.bf16.mxu1 %vm2980_vm3, %v13047_v57 }
 0x5d6   : > { %10513 = vmatmul.mubr.msk.bf16.gmra.mrb[44].mxu1 %vm2980_vm3, %v13223_v3 }
 0x5d7   : > { %10518 = vmatprep.mubr.msk.bf16.mxu1 %vm2980_vm3, %v13052_v2  ;;  %v7792_v2 = vld [vmem:[#allocation4 + $0x189] sm:$0xff] }
 0x5d8   : > { %v13262_v21 = vpack.c.bf16 %v7792_v2, %v7791_v62 }
 0x5de   : > { %10519 = vmatmul.mubr.msk.bf16.vlgmr.msra.gmra.mrb[16].mxu1 %vm2980_vm3, %v13056_v26 }
 0x5df   : > { %10551 = vmatpush3.bf16.msra.mxu1 %v8154_v19  ;;  %10522 = vmatprep.mubr.msk.bf16.mxu1 %vm2980_vm3, %v13069_v32 }
 0x5e0   : > { %11281 = vmatprep.subr.msk.bf16.mxu1 %vm6682_vm7, %v9652_v44 }
 0x5e6   : > { %10523 = vmatmul.mubr.msk.bf16.gmra.mrb[20].mxu1 %vm2980_vm3, %v13071_v30 }
 0x5e7   : > { %10526 = vmatprep.mubr.msk.bf16.mxu1 %vm2980_vm3, %v13077_v36 }
 0x5ee   : > { %10527 = vmatmul.mubr.msk.bf16.gmra.mrb[24].mxu1 %vm2980_vm3, %v13079_v34 }
 0x5ef   : > { %10530 = vmatprep.mubr.msk.bf16.mxu1 %vm2980_vm3, %v13085_v13 }
 0x5f6   : > { %10531 = vmatmul.mubr.msk.bf16.gmra.mrb[28].mxu1 %vm2980_vm3, %v13087_v18 }
 0x5f7   : > { %10534 = vmatprep.mubr.msk.bf16.mxu1 %vm2980_vm3, %v13093_v39 }
 0x5fe   : > { %10535 = vmatmul.mubr.msk.bf16.gmra.mrb[32].mxu1 %vm2980_vm3, %v13095_v47 }
 0x5ff   : > { %10538 = vmatprep.mubr.msk.bf16.mxu1 %vm2980_vm3, %v13101_v22 }
 0x606   : > { %10539 = vmatmul.mubr.msk.bf16.gmra.mrb[36].mxu1 %vm2980_vm3, %v13103_v49 }
 0x607   : > { %10542 = vmatprep.mubr.msk.bf16.mxu1 %vm2980_vm3, %v13109_v7 }
 0x60e   : > { %10543 = vmatmul.mubr.msk.bf16.gmra.mrb[40].mxu1 %vm2980_vm3, %v13111_v16 }
 0x60f   : > { %10546 = vmatprep.mubr.msk.bf16.mxu1 %vm2980_vm3, %v13117_v10 }
 0x616   : > { %10547 = vmatmul.mubr.msk.bf16.gmra.mrb[44].mxu1 %vm2980_vm3, %v13262_v21 }
 0x617   : > { %10552 = vmatprep.mubr.msk.bf16.mxu1 %vm2980_vm3, %v13122_v23  ;;  %v8085_v23 = vld [vmem:[#allocation4 + $0x182] sm:$0xff] }
 0x618   : > { %v8102_v48 = vpack.c.bf16 %v8086_v52, %v8085_v23 }
 0x61e   : > { %10553 = vmatmul.mubr.msk.bf16.vlgmr.msra.gmra.mrb[16].mxu1 %vm2980_vm3, %v13126_v11 }
 0x61f   : > { %10585 = vmatpush3.bf16.msra.mxu1 %v8449_v38  ;;  %10556 = vmatprep.mubr.msk.bf16.mxu1 %vm2980_vm3, %v13136_v20 }
 0x620   : > { %11282 = vmatprep.subr.msk.bf16.mxu1 %vm6682_vm7, %v9669_v46 }
 0x626   : > { %10557 = vmatmul.mubr.msk.bf16.gmra.mrb[20].mxu1 %vm2980_vm3, %v13138_v55 }
 0x627   : > { %10560 = vmatprep.mubr.msk.bf16.mxu1 %vm2980_vm3, %v13144_v31 }
 0x62e   : > { %10561 = vmatmul.mubr.msk.bf16.gmra.mrb[24].mxu1 %vm2980_vm3, %v13146_v61 }
 0x62f   : > { %10564 = vmatprep.mubr.msk.bf16.mxu1 %vm2980_vm3, %v13152_v1 }
 0x636   : > { %10565 = vmatmul.mubr.msk.bf16.gmra.mrb[28].mxu1 %vm2980_vm3, %v13154_v35 }
 0x637   : > { %10568 = vmatprep.mubr.msk.bf16.mxu1 %vm2980_vm3, %v13160_v41 }
 0x63e   : > { %10569 = vmatmul.mubr.msk.bf16.gmra.mrb[32].mxu1 %vm2980_vm3, %v13162_v0 }
 0x63f   : > { %10572 = vmatprep.mubr.msk.bf16.mxu1 %vm2980_vm3, %v13168_v27 }
 0x646   : > { %10573 = vmatmul.mubr.msk.bf16.gmra.mrb[36].mxu1 %vm2980_vm3, %v13170_v17 }
 0x647   : > { %10576 = vmatprep.mubr.msk.bf16.mxu1 %vm2980_vm3, %v13176_v42 }
 0x64e   : > { %10577 = vmatmul.mubr.msk.bf16.gmra.mrb[40].mxu1 %vm2980_vm3, %v13178_v63 }
 0x64f   : > { %10580 = vmatprep.mubr.msk.bf16.mxu1 %vm2980_vm3, %v13184_v25 }
 0x656   : > { %10581 = vmatmul.mubr.msk.bf16.gmra.mrb[44].mxu1 %vm2980_vm3, %v8102_v48 }
 0x657   : > { %10586 = vmatprep.mubr.msk.bf16.mxu1 %vm2980_vm3, %v12939_v51  ;;  %v8380_v51 = vld [vmem:[#allocation4 + $0x198] sm:$0xff] }
 0x65e   : > { %10587 = vmatmul.mubr.msk.bf16.vlgmr.msra.gmra.mrb[16].mxu1 %vm2980_vm3, %v12959_v8  ;;  %v8381_v8 = vld [vmem:[#allocation4 + $0x1a0] sm:$0xff] }
 0x65f   : > { %10619 = vmatpush3.bf16.msra.mxu1 %v8743_v40  ;;  %10590 = vmatprep.mubr.msk.bf16.mxu1 %vm2980_vm3, %v12962_v60  ;;  %v8397_v60 = vpack.c.bf16 %v8381_v8, %v8380_v51 }
 0x660   : > { %11283 = vmatprep.subr.msk.bf16.mxu1 %vm6682_vm7, %v9686_v15 }
 0x666   : > { %10591 = vmatmul.mubr.msk.bf16.gmra.mrb[20].mxu1 %vm2980_vm3, %v12975_v56  ;;  %v9037_v56 = vsel %vm6682_vm7, %v9686_v15, 0 }
 0x667   : > { %10594 = vmatprep.mubr.msk.bf16.mxu1 %vm2980_vm3, %v12978_v53  ;;  %v8674_v53 = vld [vmem:[#allocation4 + $0x199] sm:$0xff] }
 0x66e   : > { %10595 = vmatmul.mubr.msk.bf16.gmra.mrb[24].mxu1 %vm2980_vm3, %v12991_v37  ;;  %v8675_v37 = vld [vmem:[#allocation4 + $0x1a1] sm:$0xff] }
 0x66f   : > { %10598 = vmatprep.mubr.msk.bf16.mxu1 %vm2980_vm3, %v12994_v54  ;;  %v8691_v54 = vpack.c.bf16 %v8675_v37, %v8674_v53 }
 0x676   : > { %10599 = vmatmul.mubr.msk.bf16.gmra.mrb[28].mxu1 %vm2980_vm3, %v13007_v5  ;;  %v8968_v5 = vld [vmem:[#allocation4 + $0x19a] sm:$0xff] }
 0x677   : > { %10602 = vmatprep.mubr.msk.bf16.mxu1 %vm2980_vm3, %v13010_v43  ;;  %v8969_v43 = vld [vmem:[#allocation4 + $0x1a2] sm:$0xff] }
 0x67e   : > { %10603 = vmatmul.mubr.msk.bf16.gmra.mrb[32].mxu1 %vm2980_vm3, %v13023_v58  ;;  %v8985_v58 = vpack.c.bf16 %v8969_v43, %v8968_v5 }
 0x67f   : > { %10606 = vmatprep.mubr.msk.bf16.mxu1 %vm2980_vm3, %v13026_v6  ;;  %v13403_v6 = vld [vmem:[%s13518_s7] ss:$0 sm:$0xff] }
 0x686   : > { %10607 = vmatmul.mubr.msk.bf16.gmra.mrb[36].mxu1 %vm2980_vm3, %v13039_v4 }
 0x687   : > { %10610 = vmatprep.mubr.msk.bf16.mxu1 %vm2980_vm3, %v13041_v24 }
 0x68e   : > { %10611 = vmatmul.mubr.msk.bf16.gmra.mrb[40].mxu1 %vm2980_vm3, %v13047_v57 }
 0x68f   : > { %10614 = vmatprep.mubr.msk.bf16.mxu1 %vm2980_vm3, %v13223_v3 }
 0x696   : > { %10615 = vmatmul.mubr.msk.bf16.gmra.mrb[44].mxu1 %vm2980_vm3, %v8397_v60 }
 0x697   : > { %10620 = vmatprep.mubr.msk.bf16.mxu1 %vm2980_vm3, %v13056_v26 }
 0x69e   : > { %10621 = vmatmul.mubr.msk.bf16.vlgmr.msra.gmra.mrb[16].mxu1 %vm2980_vm3, %v13069_v32 }
 0x69f   : > { %10653 = vmatpush3.bf16.msra.mxu1 %v9037_v56  ;;  %10624 = vmatprep.mubr.msk.bf16.mxu1 %vm2980_vm3, %v13071_v30 }
 0x6a6   : > { %10625 = vmatmul.mubr.msk.bf16.gmra.mrb[20].mxu1 %vm2980_vm3, %v13077_v36 }
 0x6a7   : > { %10628 = vmatprep.mubr.msk.bf16.mxu1 %vm2980_vm3, %v13079_v34 }
 0x6ae   : > { %10629 = vmatmul.mubr.msk.bf16.gmra.mrb[24].mxu1 %vm2980_vm3, %v13085_v13 }
 0x6af   : > { %10632 = vmatprep.mubr.msk.bf16.mxu1 %vm2980_vm3, %v13087_v18 }
 0x6b6   : > { %10633 = vmatmul.mubr.msk.bf16.gmra.mrb[28].mxu1 %vm2980_vm3, %v13093_v39 }
 0x6b7   : > { %10636 = vmatprep.mubr.msk.bf16.mxu1 %vm2980_vm3, %v13095_v47 }
 0x6be   : > { %10637 = vmatmul.mubr.msk.bf16.gmra.mrb[32].mxu1 %vm2980_vm3, %v13101_v22 }
 0x6bf   : > { %10640 = vmatprep.mubr.msk.bf16.mxu1 %vm2980_vm3, %v13103_v49 }
 0x6c6   : > { %10641 = vmatmul.mubr.msk.bf16.gmra.mrb[36].mxu1 %vm2980_vm3, %v13109_v7 }
 0x6c7   : > { %10644 = vmatprep.mubr.msk.bf16.mxu1 %vm2980_vm3, %v13111_v16 }
 0x6ce   : > { %10645 = vmatmul.mubr.msk.bf16.gmra.mrb[40].mxu1 %vm2980_vm3, %v13117_v10 }
 0x6cf   : > { %10648 = vmatprep.mubr.msk.bf16.mxu1 %vm2980_vm3, %v13262_v21 }
 0x6d6   : > { %10649 = vmatmul.mubr.msk.bf16.gmra.mrb[44].mxu1 %vm2980_vm3, %v8691_v54 }
 0x6d7   : > { %10654 = vmatprep.mubr.msk.bf16.mxu1 %vm2980_vm3, %v13126_v11 }
 0x6de   : > { %10655 = vmatmul.mubr.msk.bf16.vlgmr.msra.gmra.mrb[16].mxu1 %vm2980_vm3, %v13136_v20 }
 0x6df   : > { %10658 = vmatprep.mubr.msk.bf16.mxu1 %vm2980_vm3, %v13138_v55 }
 0x6e6   : > { %10659 = vmatmul.mubr.msk.bf16.gmra.mrb[20].mxu1 %vm2980_vm3, %v13144_v31 }
 0x6e7   : > { %10662 = vmatprep.mubr.msk.bf16.mxu1 %vm2980_vm3, %v13146_v61 }
 0x6ee   : > { %10663 = vmatmul.mubr.msk.bf16.gmra.mrb[24].mxu1 %vm2980_vm3, %v13152_v1 }
 0x6ef   : > { %10666 = vmatprep.mubr.msk.bf16.mxu1 %vm2980_vm3, %v13154_v35 }
 0x6f6   : > { %10667 = vmatmul.mubr.msk.bf16.gmra.mrb[28].mxu1 %vm2980_vm3, %v13160_v41 }
 0x6f7   : > { %10670 = vmatprep.mubr.msk.bf16.mxu1 %vm2980_vm3, %v13162_v0 }
 0x6fe   : > { %10671 = vmatmul.mubr.msk.bf16.gmra.mrb[32].mxu1 %vm2980_vm3, %v13168_v27 }
 0x6ff   : > { %10674 = vmatprep.mubr.msk.bf16.mxu1 %vm2980_vm3, %v13170_v17 }
 0x706   : > { %10675 = vmatmul.mubr.msk.bf16.gmra.mrb[36].mxu1 %vm2980_vm3, %v13176_v42 }
 0x707   : > { %10678 = vmatprep.mubr.msk.bf16.mxu1 %vm2980_vm3, %v13178_v63 }
 0x70e   : > { %10679 = vmatmul.mubr.msk.bf16.gmra.mrb[40].mxu1 %vm2980_vm3, %v13184_v25 }
 0x70f   : > { %10682 = vmatprep.mubr.msk.bf16.mxu1 %vm2980_vm3, %v8102_v48 }
 0x716   : > { %10683 = vmatmul.mubr.msk.bf16.gmra.mrb[44].mxu1 %vm2980_vm3, %v8985_v58 }
 0x7b1   : > { %v10656_v4 = vpop.f32.mrb[16].mxu1 }
 0x7b2   : > { %v10718_v24 = vadd.f32 %v10656_v4, %v13403_v6  ;;  %v9073_v57 = vpop.f32.mrb[17].mxu1 }
 0x7b3   : > { %v10719_v26 = vadd.f32 %v13403_v6, %v9073_v57  ;;  %v10657_v32 = vpop.f32.mrb[18].mxu1 }
 0x7b4   : > { %v9234_v30 = vmax.f32 %v10718_v24, 0.0  ;;  %v10720_v36 = vadd.f32 %v10657_v32, %v13403_v6  ;;  %v9076_v34 = vpop.f32.mrb[19].mxu1 }
 0x7b5   : > { %v9232_v13 = vmax.f32 %v10719_v26, 0.0  ;;  %v10721_v18 = vadd.f32 %v13403_v6, %v9076_v34 }
 0x7b6   : > { %9266 = vst.msk [vmem:[%s13411_s12 + $0x10] sm:$0xff] %vm2980_vm3, %v9234_v30  ;;  %v9235_v39 = vmax.f32 %v10720_v36, 0.0 }
 0x7b7   : > { %9264 = vst.msk [vmem:[%s13411_s12] sm:$0xff] %vm2980_vm3, %v9232_v13  ;;  %v9233_v47 = vmax.f32 %v10721_v18, 0.0 }
 0x7b8   : > { %9267 = vst.msk [vmem:[%s13411_s12 + $0x18] sm:$0xff] %vm2980_vm3, %v9235_v39 }
 0x7b9   : > { %9265 = vst.msk [vmem:[%s13411_s12 + $0x8] sm:$0xff] %vm2980_vm3, %v9233_v47  ;;  %v10660_v22 = vpop.f32.mrb[20].mxu1 }
 0x7ba   : > { %v10722_v49 = vadd.f32 %v10660_v22, %v13403_v6  ;;  %v9089_v7 = vpop.f32.mrb[21].mxu1 }
 0x7bb   : > { %v10723_v16 = vadd.f32 %v13403_v6, %v9089_v7  ;;  %v10661_v10 = vpop.f32.mrb[22].mxu1 }
 0x7bc   : > { %v9238_v11 = vmax.f32 %v10722_v49, 0.0  ;;  %v10724_v20 = vadd.f32 %v10661_v10, %v13403_v6  ;;  %v9092_v55 = vpop.f32.mrb[23].mxu1 }
 0x7bd   : > { %v9236_v31 = vmax.f32 %v10723_v16, 0.0  ;;  %v10725_v61 = vadd.f32 %v13403_v6, %v9092_v55 }
 0x7be   : > { %9270 = vst.msk [vmem:[%s13411_s12 + $0x30] sm:$0xff] %vm2980_vm3, %v9238_v11  ;;  %v9239_v1 = vmax.f32 %v10724_v20, 0.0 }
 0x7bf   : > { %9268 = vst.msk [vmem:[%s13411_s12 + $0x20] sm:$0xff] %vm2980_vm3, %v9236_v31  ;;  %v9237_v35 = vmax.f32 %v10725_v61, 0.0 }
 0x7c0   : > { %9271 = vst.msk [vmem:[%s13411_s12 + $0x38] sm:$0xff] %vm2980_vm3, %v9239_v1 }
 0x7c1   : > { %9269 = vst.msk [vmem:[%s13411_s12 + $0x28] sm:$0xff] %vm2980_vm3, %v9237_v35  ;;  %v10664_v41 = vpop.f32.mrb[24].mxu1 }
 0x7c2   : > { %v10726_v0 = vadd.f32 %v10664_v41, %v13403_v6  ;;  %v9105_v27 = vpop.f32.mrb[25].mxu1 }
 0x7c3   : > { %v10727_v17 = vadd.f32 %v13403_v6, %v9105_v27  ;;  %v10665_v50 = vpop.f32.mrb[26].mxu1 }
 0x7c4   : > { %v9242_v9 = vmax.f32 %v10726_v0, 0.0  ;;  %v10728_v33 = vadd.f32 %v10665_v50, %v13403_v6  ;;  %v9108_v42 = vpop.f32.mrb[27].mxu1 }
 0x7c5   : > { %v9240_v63 = vmax.f32 %v10727_v17, 0.0  ;;  %v10729_v45 = vadd.f32 %v13403_v6, %v9108_v42 }
 0x7c6   : > { %9274 = vst.msk [vmem:[%s13411_s12 + $0x50] sm:$0xff] %vm2980_vm3, %v9242_v9  ;;  %v9243_v14 = vmax.f32 %v10728_v33, 0.0 }
 0x7c7   : > { %9272 = vst.msk [vmem:[%s13411_s12 + $0x40] sm:$0xff] %vm2980_vm3, %v9240_v63  ;;  %v9241_v25 = vmax.f32 %v10729_v45, 0.0 }
 0x7c8   : > { %9275 = vst.msk [vmem:[%s13411_s12 + $0x58] sm:$0xff] %vm2980_vm3, %v9243_v14 }
 0x7c9   : > { %9273 = vst.msk [vmem:[%s13411_s12 + $0x48] sm:$0xff] %vm2980_vm3, %v9241_v25  ;;  %v10668_v59 = vpop.f32.mrb[28].mxu1 }
 0x7ca   : > { %v10730_v12 = vadd.f32 %v10668_v59, %v13403_v6  ;;  %v9121_v29 = vpop.f32.mrb[29].mxu1 }
 0x7cb   : > { %v10731_v28 = vadd.f32 %v13403_v6, %v9121_v29  ;;  %v10669_v3 = vpop.f32.mrb[30].mxu1 }
 0x7cc   : > { %v9246_v19 = vmax.f32 %v10730_v12, 0.0  ;;  %v10732_v44 = vadd.f32 %v10669_v3, %v13403_v6  ;;  %v9124_v2 = vpop.f32.mrb[31].mxu1 }
 0x7cd   : > { %v9244_v62 = vmax.f32 %v10731_v28, 0.0  ;;  %v10733_v21 = vadd.f32 %v13403_v6, %v9124_v2 }
 0x7ce   : > { %9278 = vst.msk [vmem:[%s13411_s12 + $0x70] sm:$0xff] %vm2980_vm3, %v9246_v19  ;;  %v9247_v38 = vmax.f32 %v10732_v44, 0.0 }
 0x7cf   : > { %9276 = vst.msk [vmem:[%s13411_s12 + $0x60] sm:$0xff] %vm2980_vm3, %v9244_v62  ;;  %v9245_v46 = vmax.f32 %v10733_v21, 0.0 }
 0x7d0   : > { %9279 = vst.msk [vmem:[%s13411_s12 + $0x78] sm:$0xff] %vm2980_vm3, %v9247_v38 }
 0x7d1   : > { %9277 = vst.msk [vmem:[%s13411_s12 + $0x68] sm:$0xff] %vm2980_vm3, %v9245_v46  ;;  %v10672_v23 = vpop.f32.mrb[32].mxu1 }
 0x7d2   : > { %v10734_v52 = vadd.f32 %v10672_v23, %v13403_v6  ;;  %v9137_v48 = vpop.f32.mrb[33].mxu1 }
 0x7d3   : > { %v10735_v40 = vadd.f32 %v13403_v6, %v9137_v48  ;;  %v10673_v15 = vpop.f32.mrb[34].mxu1 }
 0x7d4   : > { %v9250_v51 = vmax.f32 %v10734_v52, 0.0  ;;  %v10736_v8 = vadd.f32 %v10673_v15, %v13403_v6  ;;  %v9140_v60 = vpop.f32.mrb[35].mxu1 }
 0x7d5   : > { %v9248_v56 = vmax.f32 %v10735_v40, 0.0  ;;  %v10737_v53 = vadd.f32 %v13403_v6, %v9140_v60 }
 0x7d6   : > { %9282 = vst.msk [vmem:[%s13411_s12 + $0x90] sm:$0xff] %vm2980_vm3, %v9250_v51  ;;  %v9251_v37 = vmax.f32 %v10736_v8, 0.0 }
 0x7d7   : > { %9280 = vst.msk [vmem:[%s13411_s12 + $0x80] sm:$0xff] %vm2980_vm3, %v9248_v56  ;;  %v9249_v54 = vmax.f32 %v10737_v53, 0.0 }
 0x7d8   : > { %9283 = vst.msk [vmem:[%s13411_s12 + $0x98] sm:$0xff] %vm2980_vm3, %v9251_v37 }
 0x7d9   : > { %9281 = vst.msk [vmem:[%s13411_s12 + $0x88] sm:$0xff] %vm2980_vm3, %v9249_v54  ;;  %v10676_v5 = vpop.f32.mrb[36].mxu1 }
 0x7da   : > { %v10738_v43 = vadd.f32 %v10676_v5, %v13403_v6  ;;  %v9153_v58 = vpop.f32.mrb[37].mxu1 }
 0x7db   : > { %v10739_v4 = vadd.f32 %v13403_v6, %v9153_v58  ;;  %v10677_v24 = vpop.f32.mrb[38].mxu1 }
 0x7dc   : > { %v9254_v57 = vmax.f32 %v10738_v43, 0.0  ;;  %v10740_v26 = vadd.f32 %v10677_v24, %v13403_v6  ;;  %v9156_v32 = vpop.f32.mrb[39].mxu1 }
 0x7dd   : > { %v9252_v30 = vmax.f32 %v10739_v4, 0.0  ;;  %v10741_v36 = vadd.f32 %v13403_v6, %v9156_v32 }
 0x7de   : > { %9286 = vst.msk [vmem:[%s13411_s12 + $0xb0] sm:$0xff] %vm2980_vm3, %v9254_v57  ;;  %v9255_v34 = vmax.f32 %v10740_v26, 0.0 }
 0x7df   : > { %9284 = vst.msk [vmem:[%s13411_s12 + $0xa0] sm:$0xff] %vm2980_vm3, %v9252_v30  ;;  %v9253_v13 = vmax.f32 %v10741_v36, 0.0 }
 0x7e0   : > { %9287 = vst.msk [vmem:[%s13411_s12 + $0xb8] sm:$0xff] %vm2980_vm3, %v9255_v34 }
 0x7e1   : > { %9285 = vst.msk [vmem:[%s13411_s12 + $0xa8] sm:$0xff] %vm2980_vm3, %v9253_v13  ;;  %v10680_v18 = vpop.f32.mrb[40].mxu1 }
 0x7e2   : > { %v10742_v39 = vadd.f32 %v10680_v18, %v13403_v6  ;;  %v9169_v47 = vpop.f32.mrb[41].mxu1 }
 0x7e3   : > { %v10743_v22 = vadd.f32 %v13403_v6, %v9169_v47  ;;  %v10681_v49 = vpop.f32.mrb[42].mxu1 }
 0x7e4   : > { %v9258_v7 = vmax.f32 %v10742_v39, 0.0  ;;  %v10744_v16 = vadd.f32 %v10681_v49, %v13403_v6  ;;  %v9172_v10 = vpop.f32.mrb[43].mxu1 }
 0x7e5   : > { %v9256_v11 = vmax.f32 %v10743_v22, 0.0  ;;  %v10745_v20 = vadd.f32 %v13403_v6, %v9172_v10 }
 0x7e6   : > { %9290 = vst.msk [vmem:[%s13411_s12 + $0xd0] sm:$0xff] %vm2980_vm3, %v9258_v7  ;;  %v9259_v55 = vmax.f32 %v10744_v16, 0.0 }
 0x7e7   : > { %9288 = vst.msk [vmem:[%s13411_s12 + $0xc0] sm:$0xff] %vm2980_vm3, %v9256_v11  ;;  %v9257_v31 = vmax.f32 %v10745_v20, 0.0 }
 0x7e8   : > { %9291 = vst.msk [vmem:[%s13411_s12 + $0xd8] sm:$0xff] %vm2980_vm3, %v9259_v55 }
 0x7e9   : > { %9289 = vst.msk [vmem:[%s13411_s12 + $0xc8] sm:$0xff] %vm2980_vm3, %v9257_v31  ;;  %v10684_v61 = vpop.f32.mrb[44].mxu1 }
 0x7ea   : > { %v10746_v1 = vadd.f32 %v10684_v61, %v13403_v6  ;;  %v9185_v35 = vpop.f32.mrb[45].mxu1 }
 0x7eb   : > { %v10747_v41 = vadd.f32 %v13403_v6, %v9185_v35  ;;  %v10685_v0 = vpop.f32.mrb[46].mxu1 }
 0x7ec   : > { %v9262_v27 = vmax.f32 %v10746_v1, 0.0  ;;  %v10748_v17 = vadd.f32 %v10685_v0, %v13403_v6  ;;  %v9188_v50 = vpop.f32.mrb[47].mxu1 }
 0x7ed   : > { %v9260_v9 = vmax.f32 %v10747_v41, 0.0  ;;  %v10749_v33 = vadd.f32 %v13403_v6, %v9188_v50 }
 0x7ee   : > { %9294 = vst.msk [vmem:[%s13411_s12 + $0xf0] sm:$0xff] %vm2980_vm3, %v9262_v27  ;;  %v9263_v42 = vmax.f32 %v10748_v17, 0.0 }
 0x7ef   : > { %9292 = vst.msk [vmem:[%s13411_s12 + $0xe0] sm:$0xff] %vm2980_vm3, %v9260_v9  ;;  %v9261_v63 = vmax.f32 %v10749_v33, 0.0 }
 0x7f0   : > { %9295 = vst.msk [vmem:[%s13411_s12 + $0xf8] sm:$0xff] %vm2980_vm3, %v9263_v42 }
 0x7f1   : > { %9293 = vst.msk [vmem:[%s13411_s12 + $0xe8] sm:$0xff] %vm2980_vm3, %v9261_v63 }
 0x7f2 PF: > { %s18_s27 = sadd.s32 1, %s11303_s27  }
 0x7f3   : > { %p15_p4 = scmp.ge.s32.totalorder %s18_s27, 4  }
 0x7f5   :  { %17 = sbr.rel (!%p15_p4) target bundleno = 1 (0x1), region = 111 }

</bundles_post_ra>
